<compile_context>
chip_gen: v7x
topology: tpu7x:2x2x1
jax: 0.10.0
libtpu: 0.0.40
codegen_flags: <defaults>
</compile_context>

<pallas_src>
import functools
import math

import numpy as np

import jax
import jax.numpy as jnp
from jax import lax
from jax.experimental import pallas as pl
from jax.experimental.pallas import tpu as pltpu

NUM_LINEARS = 13        # conv1 MLP: 3, conv2 MLP: 4, fc1: 1, conv3 MLP: 3, fc2: 1, fc3: 1
NODE_TILE = 128         # node slots per packed block (MXU row fill)
GRAPH_TILE = 8          # graph slots per packed block (sublane aligned)
DIM_PAD = 128           # padded feature / hidden / class dim (lane dense)
BLOCKS_PER_STEP = 8     # node blocks per grid step -> flattened M = 1024 for the linears


def gin_forward_kernel(adj_ref, pool_ref, x_ref, w_ref, b_ref, out_ref, *, out_dim):
    """Fused GIN forward for BLOCKS_PER_STEP node blocks per grid step.

    adj_ref : [bps, 128, 128] bf16, adj_plus[b, i, j] = (#edges j->i) + 1 on diag
    pool_ref: [bps, 8, 128]   bf16, pool[b, g, n] = 1 iff node slot n is in graph g
    x_ref   : [bps, 128, 128] bf16, zero-padded node features
    w_ref   : [13, 128, 128]  bf16, zero-padded weight slab (VMEM resident)
    b_ref   : [13, 1, 128]    f32,  zero-padded bias slab   (VMEM resident)
    out_ref : [bps, 8, 128]   f32,  log-probs (padded lanes/slots are junk)
    """
    bps = adj_ref.shape[0]
    adj = adj_ref[...]                                    # bf16 [bps, 128, 128]

    def linear(h, idx, relu, out_bf16=True):
        # MXU matmul bf16 x bf16 with f32 accumulation; bias/ReLU stay f32 on
        # the VPU (v5e has no bf16 VALU).  Return bf16 so the next layer's MXU
        # operand is ready without an extra cast on the dependent path.
        y = jnp.dot(h, w_ref[idx], preferred_element_type=jnp.float32) + b_ref[idx]
        if relu:
            y = jnp.maximum(y, 0.0)
        return y.astype(jnp.bfloat16) if out_bf16 else y

    def aggregate(h_flat):
        # GINConv aggregation (eps=0): (1+eps)*x_i + sum_{j in N(i)} x_j.
        # Per-block batched matmul on the block-diagonal adjacency — keeps the
        # zero-padding blow-up out of the MXU (vs. one giant (bps*128)^2 adj).
        hb = h_flat.reshape(bps, NODE_TILE, DIM_PAD)
        agg = jnp.einsum("bij,bjd->bid", adj, hb,
                         preferred_element_type=jnp.float32)
        return agg.astype(jnp.bfloat16).reshape(bps * NODE_TILE, DIM_PAD)

    # Node-level activations flattened to M = bps*128 rows so every one of the
    # 13 linears runs as a single lane-dense matmul (M multiple of 256 on v6e/v7x).
    h = x_ref[...].reshape(bps * NODE_TILE, DIM_PAD)      # bf16

    # ---- conv1 (3-layer MLP); outer F.relu fused into the last linear ----
    h = aggregate(h)
    h = linear(h, 0, True)
    h = linear(h, 1, True)
    h = linear(h, 2, True)

    # ---- conv2 (4-layer MLP) ----
    h = aggregate(h)
    h = linear(h, 3, True)
    h = linear(h, 4, True)
    h = linear(h, 5, True)
    h = linear(h, 6, False)

    # ---- relu(fc1) ----
    h = linear(h, 7, True)

    # ---- conv3 (3-layer MLP) ----
    h = aggregate(h)
    h = linear(h, 8, True)
    h = linear(h, 9, True)
    h = linear(h, 10, False)

    # ---- global_add_pool, then batch the graph-level tail at M = bps*8 rows
    # so fc2/fc3/log_softmax are not near-empty 8-row MXU passes per block ----
    hb = h.reshape(bps, NODE_TILE, DIM_PAD)
    g = jnp.einsum("bgn,bnd->bgd", pool_ref[...], hb,
                   preferred_element_type=jnp.float32)
    g = g.astype(jnp.bfloat16).reshape(bps * GRAPH_TILE, DIM_PAD)

    # ---- relu(fc2) ----
    g = linear(g, 11, True)

    # TODO(synk): F.dropout(p=0.5, training=True) is treated as identity
    # (inference semantics); no RNG-based dropping inside the kernel.

    # ---- fc3 (keep f32 output for the softmax epilogue) ----
    g = linear(g, 12, False, out_bf16=False)

    # ---- log_softmax over the real out_dim classes (padded lanes masked), f32 ----
    col = lax.broadcasted_iota(jnp.int32, g.shape, 1)
    valid = col < out_dim
    g = jnp.where(valid, g, -1e30)
    m = jnp.max(g, axis=1, keepdims=True)
    z = g - m
    e = jnp.where(valid, jnp.exp(z), 0.0)
    lse = jnp.log(jnp.sum(e, axis=1, keepdims=True))
    out_ref[...] = (z - lse).reshape(bps, GRAPH_TILE, DIM_PAD)


def _grid_dim_semantics(num_steps):
    # v7x has 2 TensorCores/chip: shard the block-batch axis across them with
    # core-parallel semantics (plain "parallel" vs "arbitrary" has ~zero measured
    # codegen effect).  Only enable with >= 2 grid steps so both TCs get work.
    kind = ""
    try:
        kind = jax.devices()[0].device_kind.lower()
    except Exception:
        pass
    if num_steps >= 2 and "v7" in kind:
        return (pltpu.CORE_PARALLEL,)
    return ("parallel",)


@functools.partial(jax.jit, static_argnames=("out_dim", "blocks_per_step"))
def _gin_pallas(adj, pool, x, w_slab, b_slab, *, out_dim, blocks_per_step):
    total_blocks = adj.shape[0]
    num_steps = total_blocks // blocks_per_step
    kernel = functools.partial(gin_forward_kernel, out_dim=out_dim)
    return pl.pallas_call(
        kernel,
        out_shape=jax.ShapeDtypeStruct((total_blocks, GRAPH_TILE, DIM_PAD),
                                       jnp.float32),
        grid_spec=pltpu.PrefetchScalarGridSpec(
            num_scalar_prefetch=0,
            grid=(num_steps,),
            in_specs=[
                pl.BlockSpec((blocks_per_step, NODE_TILE, NODE_TILE),
                             lambda s: (s, 0, 0)),
                pl.BlockSpec((blocks_per_step, GRAPH_TILE, NODE_TILE),
                             lambda s: (s, 0, 0)),
                pl.BlockSpec((blocks_per_step, NODE_TILE, DIM_PAD),
                             lambda s: (s, 0, 0)),
                # Parameter slabs: constant block index -> VMEM resident across
                # grid steps (no per-step re-DMA).  Single-buffering them would
                # save ~420 KiB more but the total footprint is already < 3 MiB,
                # so default buffering is kept for maximum compatibility.
                pl.BlockSpec((NUM_LINEARS, DIM_PAD, DIM_PAD),
                             lambda s: (0, 0, 0)),
                pl.BlockSpec((NUM_LINEARS, 1, DIM_PAD),
                             lambda s: (0, 0, 0)),
            ],
            out_specs=pl.BlockSpec((blocks_per_step, GRAPH_TILE, DIM_PAD),
                                   lambda s: (s, 0, 0)),
        ),
        compiler_params=pltpu.CompilerParams(
            dimension_semantics=_grid_dim_semantics(num_steps)),
    )(adj, pool, x, w_slab, b_slab)


def _effective_blocks_per_step(requested, num_blocks):
    # Keep the step-batch even so the flattened M is a multiple of 256 (full
    # MXU rows on v6e/v7x); shrink for tiny inputs to avoid dead padded blocks.
    bps = max(2, 2 * (int(requested) // 2))
    return min(bps, max(2, 2 * ((num_blocks + 1) // 2)))


def pack_graph_blocks(x, edge_index, batch, num_graphs, blocks_per_step):
    """Block-diagonal packing of graphs into [total_blocks, 128, ...] operands.

    Per-node / per-edge work is fully vectorized numpy; only an O(num_graphs)
    greedy bin-packing loop remains (node-count capacity + graph-slot capacity).
    """
    x = np.asarray(x, np.float32)
    edge_index = np.asarray(edge_index, np.int64)
    batch = np.asarray(batch, np.int64)
    n, in_dim = x.shape
    assert in_dim <= DIM_PAD, "input_dim exceeds DIM_PAD"

    nodes_per_graph = np.bincount(batch, minlength=num_graphs)
    assert int(nodes_per_graph.max()) <= NODE_TILE, "a single graph exceeds NODE_TILE"

    # --- greedy graph -> block packing (O(num_graphs) Python, cheap) ---
    block_of_graph = np.zeros(num_graphs, np.int64)
    graph_slot = np.zeros(num_graphs, np.int64)
    node_base = np.zeros(num_graphs, np.int64)
    cur_block = cur_nodes = cur_graphs = 0
    for g in range(num_graphs):
        ng = int(nodes_per_graph[g])
        if cur_nodes + ng > NODE_TILE or cur_graphs >= GRAPH_TILE:
            cur_block += 1
            cur_nodes = cur_graphs = 0
        block_of_graph[g] = cur_block
        graph_slot[g] = cur_graphs
        node_base[g] = cur_nodes
        cur_nodes += ng
        cur_graphs += 1
    num_blocks = cur_block + 1

    # --- vectorized per-node local slot index (occurrence rank within graph) ---
    order = np.argsort(batch, kind="stable")
    starts = np.zeros(num_graphs, np.int64)
    starts[1:] = np.cumsum(nodes_per_graph)[:-1]
    occ = np.empty(n, np.int64)
    occ[order] = np.arange(n) - np.repeat(starts, nodes_per_graph)
    node_local = node_base[batch] + occ
    block_of_node = block_of_graph[batch]

    bps = _effective_blocks_per_step(blocks_per_step, num_blocks)
    num_steps = -(-num_blocks // bps)
    total_blocks = num_steps * bps

    x_pad = np.zeros((total_blocks, NODE_TILE, DIM_PAD), np.float32)
    x_pad[block_of_node, node_local, :in_dim] = x

    adj = np.zeros((total_blocks, NODE_TILE, NODE_TILE), np.float32)
    src, dst = edge_index[0], edge_index[1]
    np.add.at(adj, (block_of_node[dst], node_local[dst], node_local[src]), 1.0)
    np.add.at(adj, (block_of_node, node_local, node_local), 1.0)   # (1 + eps), eps = 0
    assert float(adj.max()) < 256.0, "adjacency counts not exactly representable in bf16"

    pool = np.zeros((total_blocks, GRAPH_TILE, NODE_TILE), np.float32)
    pool[block_of_node, graph_slot[batch], node_local] = 1.0

    return adj, pool, x_pad, block_of_graph, graph_slot, bps


class GINPallas:
    """Fused GIN forward. Weight/bias slabs are packed & uploaded to device once."""

    def __init__(self, params, blocks_per_step=BLOCKS_PER_STEP):
        assert len(params) == NUM_LINEARS
        self.out_dim = int(np.asarray(params[-1][0]).shape[1])
        self.blocks_per_step = int(blocks_per_step)
        w_slab = np.zeros((NUM_LINEARS, DIM_PAD, DIM_PAD), np.float32)
        b_slab = np.zeros((NUM_LINEARS, 1, DIM_PAD), np.float32)
        for i, (w, b) in enumerate(params):
            w = np.asarray(w, np.float32)
            b = np.asarray(b, np.float32)
            assert w.shape[0] <= DIM_PAD and w.shape[1] <= DIM_PAD, "dims exceed DIM_PAD"
            w_slab[i, :w.shape[0], :w.shape[1]] = w
            b_slab[i, 0, :b.shape[0]] = b
        # Cached device-resident slabs (avoid 416 KiB re-pad + re-upload per call).
        self.w_slab = jnp.asarray(w_slab, jnp.bfloat16)
        self.b_slab = jnp.asarray(b_slab, jnp.float32)

    def __call__(self, x, edge_index, batch, num_graphs):
        num_graphs = int(num_graphs)
        adj, pool, x_pad, block_of_graph, graph_slot, bps = pack_graph_blocks(
            x, edge_index, batch, num_graphs, self.blocks_per_step)
        out_pad = _gin_pallas(
            jnp.asarray(adj, jnp.bfloat16),
            jnp.asarray(pool, jnp.bfloat16),
            jnp.asarray(x_pad, jnp.bfloat16),     # ship activations as bf16
            self.w_slab, self.b_slab,
            out_dim=self.out_dim, blocks_per_step=bps)
        # gather per-graph rows and slice off padded class lanes
        return out_pad[jnp.asarray(block_of_graph), jnp.asarray(graph_slot), :self.out_dim]


def gin_forward_reference(x, edge_index, batch, params, num_graphs):
    """Pure-JAX reference with the same bf16-matmul / f32-accumulate policy as the
    kernel.  (Vs. an all-f32 PyTorch run, expect ~1e-2 relative deviation.)"""
    f32, bf16 = jnp.float32, jnp.bfloat16
    x = jnp.asarray(x, f32)
    edge_index = jnp.asarray(edge_index, jnp.int32)
    batch = jnp.asarray(batch, jnp.int32)
    n = x.shape[0]
    adj = jnp.zeros((n, n), f32).at[edge_index[1], edge_index[0]].add(1.0)
    adj = (adj + jnp.eye(n, dtype=f32)).astype(bf16)

    def lin(h, i, relu=False):
        w, b = params[i]
        y = jnp.dot(h.astype(bf16), jnp.asarray(w, bf16),
                    preferred_element_type=f32) + jnp.asarray(b, f32)
        return jnp.maximum(y, 0.0) if relu else y

    def agg(h):
        return jnp.dot(adj, h.astype(bf16), preferred_element_type=f32)

    h = agg(x)
    h = lin(h, 0, True); h = lin(h, 1, True); h = lin(h, 2, False)
    h = jnp.maximum(h, 0.0)                       # outer F.relu after conv1
    h = agg(h)
    h = lin(h, 3, True); h = lin(h, 4, True); h = lin(h, 5, True); h = lin(h, 6, False)
    h = jnp.maximum(lin(h, 7, False), 0.0)        # relu(fc1)
    h = agg(h)
    h = lin(h, 8, True); h = lin(h, 9, True); h = lin(h, 10, False)
    g = jax.ops.segment_sum(h.astype(bf16).astype(f32), batch, num_segments=num_graphs)
    g = jnp.maximum(lin(g, 11, False), 0.0)       # relu(fc2); dropout = identity
    g = lin(g, 12, False)                         # fc3
    return jax.nn.log_softmax(g, axis=1)


def init_linear(key, fan_in, fan_out):
    """Deterministic PyTorch-style init: U(-1/sqrt(fan_in), 1/sqrt(fan_in))."""
    kw, kb = jax.random.split(key)
    bound = 1.0 / math.sqrt(fan_in)
    w = jax.random.uniform(kw, (fan_in, fan_out), jnp.float32, -bound, bound)
    b = jax.random.uniform(kb, (fan_out,), jnp.float32, -bound, bound)
    return w, b


def init_gin_params(key, input_dim, hidden_dim, output_dim):
    dims = (
        [(input_dim, hidden_dim), (hidden_dim, hidden_dim), (hidden_dim, hidden_dim)]   # conv1 MLP
        + [(hidden_dim, hidden_dim)] * 4                                                # conv2 MLP
        + [(hidden_dim, hidden_dim)]                                                    # fc1
        + [(hidden_dim, hidden_dim)] * 3                                                # conv3 MLP
        + [(hidden_dim, hidden_dim)]                                                    # fc2
        + [(hidden_dim, output_dim)]                                                    # fc3
    )
    keys = jax.random.split(key, len(dims))
    return [init_linear(k, fi, fo) for k, (fi, fo) in zip(keys, dims)]


if __name__ == "__main__":
    INPUT_DIM, HIDDEN_DIM, OUTPUT_DIM = 16, 32, 4
    N_NODES, N_GRAPHS = 16, 2

    key = jax.random.PRNGKey(0)
    k_x, k_p = jax.random.split(key)

    # Node features: [N, input_dim]
    x = jax.random.normal(k_x, (N_NODES, INPUT_DIM), jnp.float32)

    # Two graphs of 8 nodes each; undirected ring inside each graph.
    batch = jnp.array([0] * 8 + [1] * 8, dtype=jnp.int32)
    edges = []
    for base in (0, 8):
        for i in range(8):
            a = base + i
            b = base + (i + 1) % 8
            edges.append((a, b))
            edges.append((b, a))
    edge_index = jnp.array(edges, dtype=jnp.int32).T  # [2, E]

    params = init_gin_params(k_p, INPUT_DIM, HIDDEN_DIM, OUTPUT_DIM)

    model = GINPallas(params)                         # packs + uploads slabs once
    out = model(x, edge_index, batch, N_GRAPHS)
    out = jax.block_until_ready(out)

    assert out.shape == (N_GRAPHS, OUTPUT_DIM)
    assert bool(jnp.all(jnp.isfinite(out)))
    # log_softmax rows should (approximately) normalize to 1 in prob space
    assert bool(jnp.all(jnp.abs(jnp.sum(jnp.exp(out), axis=1) - 1.0) < 1e-3))

    # Compare against a pure-JAX reference using the same bf16/f32 dtype policy.
    ref = gin_forward_reference(x, edge_index, batch, params, N_GRAPHS)
    max_err = float(jnp.max(jnp.abs(out - ref)))
    assert max_err < 2e-2, f"mismatch vs reference: {max_err}"

    print("KERNEL_OK")
</pallas_src>

<mosaic_0001>
module attributes {stable_mosaic.version = 11 : i64} {
  func.func @gin_forward_kernel(%arg0: i32, %arg1: memref<2x128x128xbf16, #tpu.memory_space<vmem>>, %arg2: memref<2x8x128xbf16, #tpu.memory_space<vmem>>, %arg3: memref<2x128x128xbf16, #tpu.memory_space<vmem>>, %arg4: memref<13x128x128xbf16, #tpu.memory_space<vmem>>, %arg5: memref<13x1x128xf32, #tpu.memory_space<vmem>>, %arg6: memref<2x8x128xf32, #tpu.memory_space<vmem>>) attributes {dimension_semantics = [#tpu.dimension_semantics<parallel>], iteration_bounds = array<i64: 1>, scalar_prefetch = 0 : i64, scratch_operands = 0 : i64, tpu.core_type = #tpu.core_type<tc>, window_params = [{transform_indices = @transform_0, window_bounds = array<i64: 2, 128, 128>}, {transform_indices = @transform_1, window_bounds = array<i64: 2, 8, 128>}, {transform_indices = @transform_2, window_bounds = array<i64: 2, 128, 128>}, {pipeline_mode = #tpu.pipeline_mode<synchronous>, transform_indices = @transform_3, window_bounds = array<i64: 13, 128, 128>}, {pipeline_mode = #tpu.pipeline_mode<synchronous>, transform_indices = @transform_4, window_bounds = array<i64: 13, 1, 128>}, {transform_indices = @transform_5, window_bounds = array<i64: 2, 8, 128>}]} {
    %c0 = arith.constant 0 : index
    %c0_0 = arith.constant 0 : index
    %c0_1 = arith.constant 0 : index
    %0 = vector.load %arg1[%c0, %c0_0, %c0_1] : memref<2x128x128xbf16, #tpu.memory_space<vmem>>, vector<2x128x128xbf16>
    %c0_2 = arith.constant 0 : index
    %c0_3 = arith.constant 0 : index
    %c0_4 = arith.constant 0 : index
    %1 = vector.load %arg3[%c0_2, %c0_3, %c0_4] : memref<2x128x128xbf16, #tpu.memory_space<vmem>>, vector<2x128x128xbf16>
    %2 = vector.shape_cast %1 : vector<2x128x128xbf16> to vector<256x128xbf16>
    %3 = vector.shape_cast %2 : vector<256x128xbf16> to vector<2x128x128xbf16>
    "tpu.trace_start"() <{level = 10 : i32, message = "bij,bjd->bid"}> : () -> ()
    %cst = arith.constant dense<0.000000e+00> : vector<2x128x128xf32>
    %4 = tpu.matmul %0, %3, %cst {dimension_numbers = #tpu.dot_dimension_numbers<[2], [1], [1], [2], [0, 0, 0, 1, 1, 2], [0], [0]>} : vector<2x128x128xbf16>, vector<2x128x128xbf16>, vector<2x128x128xf32> -> vector<2x128x128xf32>
    "tpu.trace_stop"() : () -> ()
    %5 = arith.truncf %4 : vector<2x128x128xf32> to vector<2x128x128xbf16>
    %6 = vector.shape_cast %5 : vector<2x128x128xbf16> to vector<256x128xbf16>
    %c0_5 = arith.constant 0 : index
    %c0_6 = arith.constant 0 : index
    %c0_7 = arith.constant 0 : index
    %7 = vector.load %arg4[%c0_5, %c0_6, %c0_7] : memref<13x128x128xbf16, #tpu.memory_space<vmem>>, vector<1x128x128xbf16>
    %8 = vector.shape_cast %7 : vector<1x128x128xbf16> to vector<128x128xbf16>
    %cst_8 = arith.constant dense<0.000000e+00> : vector<256x128xf32>
    %9 = tpu.matmul %6, %8, %cst_8 {dimension_numbers = #tpu.dot_dimension_numbers<[1], [0], [0], [1], [0, 0, 1, 1], [], []>} : vector<256x128xbf16>, vector<128x128xbf16>, vector<256x128xf32> -> vector<256x128xf32>
    %c0_9 = arith.constant 0 : index
    %c0_10 = arith.constant 0 : index
    %c0_11 = arith.constant 0 : index
    %10 = vector.load %arg5[%c0_9, %c0_10, %c0_11] : memref<13x1x128xf32, #tpu.memory_space<vmem>>, vector<1x1x128xf32>
    %11 = vector.shape_cast %10 : vector<1x1x128xf32> to vector<1x128xf32>
    %12 = vector.broadcast %11 : vector<1x128xf32> to vector<256x128xf32>
    %13 = arith.addf %9, %12 : vector<256x128xf32>
    %cst_12 = arith.constant 0.000000e+00 : f32
    %14 = vector.broadcast %cst_12 : f32 to vector<256x128xf32>
    %15 = arith.maximumf %13, %14 : vector<256x128xf32>
    %16 = arith.truncf %15 : vector<256x128xf32> to vector<256x128xbf16>
    %c1 = arith.constant 1 : index
    %c0_13 = arith.constant 0 : index
    %c0_14 = arith.constant 0 : index
    %17 = vector.load %arg4[%c1, %c0_13, %c0_14] : memref<13x128x128xbf16, #tpu.memory_space<vmem>>, vector<1x128x128xbf16>
    %18 = vector.shape_cast %17 : vector<1x128x128xbf16> to vector<128x128xbf16>
    %cst_15 = arith.constant dense<0.000000e+00> : vector<256x128xf32>
    %19 = tpu.matmul %16, %18, %cst_15 {dimension_numbers = #tpu.dot_dimension_numbers<[1], [0], [0], [1], [0, 0, 1, 1], [], []>} : vector<256x128xbf16>, vector<128x128xbf16>, vector<256x128xf32> -> vector<256x128xf32>
    %c1_16 = arith.constant 1 : index
    %c0_17 = arith.constant 0 : index
    %c0_18 = arith.constant 0 : index
    %20 = vector.load %arg5[%c1_16, %c0_17, %c0_18] : memref<13x1x128xf32, #tpu.memory_space<vmem>>, vector<1x1x128xf32>
    %21 = vector.shape_cast %20 : vector<1x1x128xf32> to vector<1x128xf32>
    %22 = vector.broadcast %21 : vector<1x128xf32> to vector<256x128xf32>
    %23 = arith.addf %19, %22 : vector<256x128xf32>
    %cst_19 = arith.constant 0.000000e+00 : f32
    %24 = vector.broadcast %cst_19 : f32 to vector<256x128xf32>
    %25 = arith.maximumf %23, %24 : vector<256x128xf32>
    %26 = arith.truncf %25 : vector<256x128xf32> to vector<256x128xbf16>
    %c2 = arith.constant 2 : index
    %c0_20 = arith.constant 0 : index
    %c0_21 = arith.constant 0 : index
    %27 = vector.load %arg4[%c2, %c0_20, %c0_21] : memref<13x128x128xbf16, #tpu.memory_space<vmem>>, vector<1x128x128xbf16>
    %28 = vector.shape_cast %27 : vector<1x128x128xbf16> to vector<128x128xbf16>
    %cst_22 = arith.constant dense<0.000000e+00> : vector<256x128xf32>
    %29 = tpu.matmul %26, %28, %cst_22 {dimension_numbers = #tpu.dot_dimension_numbers<[1], [0], [0], [1], [0, 0, 1, 1], [], []>} : vector<256x128xbf16>, vector<128x128xbf16>, vector<256x128xf32> -> vector<256x128xf32>
    %c2_23 = arith.constant 2 : index
    %c0_24 = arith.constant 0 : index
    %c0_25 = arith.constant 0 : index
    %30 = vector.load %arg5[%c2_23, %c0_24, %c0_25] : memref<13x1x128xf32, #tpu.memory_space<vmem>>, vector<1x1x128xf32>
    %31 = vector.shape_cast %30 : vector<1x1x128xf32> to vector<1x128xf32>
    %32 = vector.broadcast %31 : vector<1x128xf32> to vector<256x128xf32>
    %33 = arith.addf %29, %32 : vector<256x128xf32>
    %cst_26 = arith.constant 0.000000e+00 : f32
    %34 = vector.broadcast %cst_26 : f32 to vector<256x128xf32>
    %35 = arith.maximumf %33, %34 : vector<256x128xf32>
    %36 = arith.truncf %35 : vector<256x128xf32> to vector<256x128xbf16>
    %37 = vector.shape_cast %36 : vector<256x128xbf16> to vector<2x128x128xbf16>
    "tpu.trace_start"() <{level = 10 : i32, message = "bij,bjd->bid"}> : () -> ()
    %cst_27 = arith.constant dense<0.000000e+00> : vector<2x128x128xf32>
    %38 = tpu.matmul %0, %37, %cst_27 {dimension_numbers = #tpu.dot_dimension_numbers<[2], [1], [1], [2], [0, 0, 0, 1, 1, 2], [0], [0]>} : vector<2x128x128xbf16>, vector<2x128x128xbf16>, vector<2x128x128xf32> -> vector<2x128x128xf32>
    "tpu.trace_stop"() : () -> ()
    %39 = arith.truncf %38 : vector<2x128x128xf32> to vector<2x128x128xbf16>
    %40 = vector.shape_cast %39 : vector<2x128x128xbf16> to vector<256x128xbf16>
    %c3 = arith.constant 3 : index
    %c0_28 = arith.constant 0 : index
    %c0_29 = arith.constant 0 : index
    %41 = vector.load %arg4[%c3, %c0_28, %c0_29] : memref<13x128x128xbf16, #tpu.memory_space<vmem>>, vector<1x128x128xbf16>
    %42 = vector.shape_cast %41 : vector<1x128x128xbf16> to vector<128x128xbf16>
    %cst_30 = arith.constant dense<0.000000e+00> : vector<256x128xf32>
    %43 = tpu.matmul %40, %42, %cst_30 {dimension_numbers = #tpu.dot_dimension_numbers<[1], [0], [0], [1], [0, 0, 1, 1], [], []>} : vector<256x128xbf16>, vector<128x128xbf16>, vector<256x128xf32> -> vector<256x128xf32>
    %c3_31 = arith.constant 3 : index
    %c0_32 = arith.constant 0 : index
    %c0_33 = arith.constant 0 : index
    %44 = vector.load %arg5[%c3_31, %c0_32, %c0_33] : memref<13x1x128xf32, #tpu.memory_space<vmem>>, vector<1x1x128xf32>
    %45 = vector.shape_cast %44 : vector<1x1x128xf32> to vector<1x128xf32>
    %46 = vector.broadcast %45 : vector<1x128xf32> to vector<256x128xf32>
    %47 = arith.addf %43, %46 : vector<256x128xf32>
    %cst_34 = arith.constant 0.000000e+00 : f32
    %48 = vector.broadcast %cst_34 : f32 to vector<256x128xf32>
    %49 = arith.maximumf %47, %48 : vector<256x128xf32>
    %50 = arith.truncf %49 : vector<256x128xf32> to vector<256x128xbf16>
    %c4 = arith.constant 4 : index
    %c0_35 = arith.constant 0 : index
    %c0_36 = arith.constant 0 : index
    %51 = vector.load %arg4[%c4, %c0_35, %c0_36] : memref<13x128x128xbf16, #tpu.memory_space<vmem>>, vector<1x128x128xbf16>
    %52 = vector.shape_cast %51 : vector<1x128x128xbf16> to vector<128x128xbf16>
    %cst_37 = arith.constant dense<0.000000e+00> : vector<256x128xf32>
    %53 = tpu.matmul %50, %52, %cst_37 {dimension_numbers = #tpu.dot_dimension_numbers<[1], [0], [0], [1], [0, 0, 1, 1], [], []>} : vector<256x128xbf16>, vector<128x128xbf16>, vector<256x128xf32> -> vector<256x128xf32>
    %c4_38 = arith.constant 4 : index
    %c0_39 = arith.constant 0 : index
    %c0_40 = arith.constant 0 : index
    %54 = vector.load %arg5[%c4_38, %c0_39, %c0_40] : memref<13x1x128xf32, #tpu.memory_space<vmem>>, vector<1x1x128xf32>
    %55 = vector.shape_cast %54 : vector<1x1x128xf32> to vector<1x128xf32>
    %56 = vector.broadcast %55 : vector<1x128xf32> to vector<256x128xf32>
    %57 = arith.addf %53, %56 : vector<256x128xf32>
    %cst_41 = arith.constant 0.000000e+00 : f32
    %58 = vector.broadcast %cst_41 : f32 to vector<256x128xf32>
    %59 = arith.maximumf %57, %58 : vector<256x128xf32>
    %60 = arith.truncf %59 : vector<256x128xf32> to vector<256x128xbf16>
    %c5 = arith.constant 5 : index
    %c0_42 = arith.constant 0 : index
    %c0_43 = arith.constant 0 : index
    %61 = vector.load %arg4[%c5, %c0_42, %c0_43] : memref<13x128x128xbf16, #tpu.memory_space<vmem>>, vector<1x128x128xbf16>
    %62 = vector.shape_cast %61 : vector<1x128x128xbf16> to vector<128x128xbf16>
    %cst_44 = arith.constant dense<0.000000e+00> : vector<256x128xf32>
    %63 = tpu.matmul %60, %62, %cst_44 {dimension_numbers = #tpu.dot_dimension_numbers<[1], [0], [0], [1], [0, 0, 1, 1], [], []>} : vector<256x128xbf16>, vector<128x128xbf16>, vector<256x128xf32> -> vector<256x128xf32>
    %c5_45 = arith.constant 5 : index
    %c0_46 = arith.constant 0 : index
    %c0_47 = arith.constant 0 : index
    %64 = vector.load %arg5[%c5_45, %c0_46, %c0_47] : memref<13x1x128xf32, #tpu.memory_space<vmem>>, vector<1x1x128xf32>
    %65 = vector.shape_cast %64 : vector<1x1x128xf32> to vector<1x128xf32>
    %66 = vector.broadcast %65 : vector<1x128xf32> to vector<256x128xf32>
    %67 = arith.addf %63, %66 : vector<256x128xf32>
    %cst_48 = arith.constant 0.000000e+00 : f32
    %68 = vector.broadcast %cst_48 : f32 to vector<256x128xf32>
    %69 = arith.maximumf %67, %68 : vector<256x128xf32>
    %70 = arith.truncf %69 : vector<256x128xf32> to vector<256x128xbf16>
    %c6 = arith.constant 6 : index
    %c0_49 = arith.constant 0 : index
    %c0_50 = arith.constant 0 : index
    %71 = vector.load %arg4[%c6, %c0_49, %c0_50] : memref<13x128x128xbf16, #tpu.memory_space<vmem>>, vector<1x128x128xbf16>
    %72 = vector.shape_cast %71 : vector<1x128x128xbf16> to vector<128x128xbf16>
    %cst_51 = arith.constant dense<0.000000e+00> : vector<256x128xf32>
    %73 = tpu.matmul %70, %72, %cst_51 {dimension_numbers = #tpu.dot_dimension_numbers<[1], [0], [0], [1], [0, 0, 1, 1], [], []>} : vector<256x128xbf16>, vector<128x128xbf16>, vector<256x128xf32> -> vector<256x128xf32>
    %c6_52 = arith.constant 6 : index
    %c0_53 = arith.constant 0 : index
    %c0_54 = arith.constant 0 : index
    %74 = vector.load %arg5[%c6_52, %c0_53, %c0_54] : memref<13x1x128xf32, #tpu.memory_space<vmem>>, vector<1x1x128xf32>
    %75 = vector.shape_cast %74 : vector<1x1x128xf32> to vector<1x128xf32>
    %76 = vector.broadcast %75 : vector<1x128xf32> to vector<256x128xf32>
    %77 = arith.addf %73, %76 : vector<256x128xf32>
    %78 = arith.truncf %77 : vector<256x128xf32> to vector<256x128xbf16>
    %c7 = arith.constant 7 : index
    %c0_55 = arith.constant 0 : index
    %c0_56 = arith.constant 0 : index
    %79 = vector.load %arg4[%c7, %c0_55, %c0_56] : memref<13x128x128xbf16, #tpu.memory_space<vmem>>, vector<1x128x128xbf16>
    %80 = vector.shape_cast %79 : vector<1x128x128xbf16> to vector<128x128xbf16>
    %cst_57 = arith.constant dense<0.000000e+00> : vector<256x128xf32>
    %81 = tpu.matmul %78, %80, %cst_57 {dimension_numbers = #tpu.dot_dimension_numbers<[1], [0], [0], [1], [0, 0, 1, 1], [], []>} : vector<256x128xbf16>, vector<128x128xbf16>, vector<256x128xf32> -> vector<256x128xf32>
    %c7_58 = arith.constant 7 : index
    %c0_59 = arith.constant 0 : index
    %c0_60 = arith.constant 0 : index
    %82 = vector.load %arg5[%c7_58, %c0_59, %c0_60] : memref<13x1x128xf32, #tpu.memory_space<vmem>>, vector<1x1x128xf32>
    %83 = vector.shape_cast %82 : vector<1x1x128xf32> to vector<1x128xf32>
    %84 = vector.broadcast %83 : vector<1x128xf32> to vector<256x128xf32>
    %85 = arith.addf %81, %84 : vector<256x128xf32>
    %cst_61 = arith.constant 0.000000e+00 : f32
    %86 = vector.broadcast %cst_61 : f32 to vector<256x128xf32>
    %87 = arith.maximumf %85, %86 : vector<256x128xf32>
    %88 = arith.truncf %87 : vector<256x128xf32> to vector<256x128xbf16>
    %89 = vector.shape_cast %88 : vector<256x128xbf16> to vector<2x128x128xbf16>
    "tpu.trace_start"() <{level = 10 : i32, message = "bij,bjd->bid"}> : () -> ()
    %cst_62 = arith.constant dense<0.000000e+00> : vector<2x128x128xf32>
    %90 = tpu.matmul %0, %89, %cst_62 {dimension_numbers = #tpu.dot_dimension_numbers<[2], [1], [1], [2], [0, 0, 0, 1, 1, 2], [0], [0]>} : vector<2x128x128xbf16>, vector<2x128x128xbf16>, vector<2x128x128xf32> -> vector<2x128x128xf32>
    "tpu.trace_stop"() : () -> ()
    %91 = arith.truncf %90 : vector<2x128x128xf32> to vector<2x128x128xbf16>
    %92 = vector.shape_cast %91 : vector<2x128x128xbf16> to vector<256x128xbf16>
    %c8 = arith.constant 8 : index
    %c0_63 = arith.constant 0 : index
    %c0_64 = arith.constant 0 : index
    %93 = vector.load %arg4[%c8, %c0_63, %c0_64] : memref<13x128x128xbf16, #tpu.memory_space<vmem>>, vector<1x128x128xbf16>
    %94 = vector.shape_cast %93 : vector<1x128x128xbf16> to vector<128x128xbf16>
    %cst_65 = arith.constant dense<0.000000e+00> : vector<256x128xf32>
    %95 = tpu.matmul %92, %94, %cst_65 {dimension_numbers = #tpu.dot_dimension_numbers<[1], [0], [0], [1], [0, 0, 1, 1], [], []>} : vector<256x128xbf16>, vector<128x128xbf16>, vector<256x128xf32> -> vector<256x128xf32>
    %c8_66 = arith.constant 8 : index
    %c0_67 = arith.constant 0 : index
    %c0_68 = arith.constant 0 : index
    %96 = vector.load %arg5[%c8_66, %c0_67, %c0_68] : memref<13x1x128xf32, #tpu.memory_space<vmem>>, vector<1x1x128xf32>
    %97 = vector.shape_cast %96 : vector<1x1x128xf32> to vector<1x128xf32>
    %98 = vector.broadcast %97 : vector<1x128xf32> to vector<256x128xf32>
    %99 = arith.addf %95, %98 : vector<256x128xf32>
    %cst_69 = arith.constant 0.000000e+00 : f32
    %100 = vector.broadcast %cst_69 : f32 to vector<256x128xf32>
    %101 = arith.maximumf %99, %100 : vector<256x128xf32>
    %102 = arith.truncf %101 : vector<256x128xf32> to vector<256x128xbf16>
    %c9 = arith.constant 9 : index
    %c0_70 = arith.constant 0 : index
    %c0_71 = arith.constant 0 : index
    %103 = vector.load %arg4[%c9, %c0_70, %c0_71] : memref<13x128x128xbf16, #tpu.memory_space<vmem>>, vector<1x128x128xbf16>
    %104 = vector.shape_cast %103 : vector<1x128x128xbf16> to vector<128x128xbf16>
    %cst_72 = arith.constant dense<0.000000e+00> : vector<256x128xf32>
    %105 = tpu.matmul %102, %104, %cst_72 {dimension_numbers = #tpu.dot_dimension_numbers<[1], [0], [0], [1], [0, 0, 1, 1], [], []>} : vector<256x128xbf16>, vector<128x128xbf16>, vector<256x128xf32> -> vector<256x128xf32>
    %c9_73 = arith.constant 9 : index
    %c0_74 = arith.constant 0 : index
    %c0_75 = arith.constant 0 : index
    %106 = vector.load %arg5[%c9_73, %c0_74, %c0_75] : memref<13x1x128xf32, #tpu.memory_space<vmem>>, vector<1x1x128xf32>
    %107 = vector.shape_cast %106 : vector<1x1x128xf32> to vector<1x128xf32>
    %108 = vector.broadcast %107 : vector<1x128xf32> to vector<256x128xf32>
    %109 = arith.addf %105, %108 : vector<256x128xf32>
    %cst_76 = arith.constant 0.000000e+00 : f32
    %110 = vector.broadcast %cst_76 : f32 to vector<256x128xf32>
    %111 = arith.maximumf %109, %110 : vector<256x128xf32>
    %112 = arith.truncf %111 : vector<256x128xf32> to vector<256x128xbf16>
    %c10 = arith.constant 10 : index
    %c0_77 = arith.constant 0 : index
    %c0_78 = arith.constant 0 : index
    %113 = vector.load %arg4[%c10, %c0_77, %c0_78] : memref<13x128x128xbf16, #tpu.memory_space<vmem>>, vector<1x128x128xbf16>
    %114 = vector.shape_cast %113 : vector<1x128x128xbf16> to vector<128x128xbf16>
    %cst_79 = arith.constant dense<0.000000e+00> : vector<256x128xf32>
    %115 = tpu.matmul %112, %114, %cst_79 {dimension_numbers = #tpu.dot_dimension_numbers<[1], [0], [0], [1], [0, 0, 1, 1], [], []>} : vector<256x128xbf16>, vector<128x128xbf16>, vector<256x128xf32> -> vector<256x128xf32>
    %c10_80 = arith.constant 10 : index
    %c0_81 = arith.constant 0 : index
    %c0_82 = arith.constant 0 : index
    %116 = vector.load %arg5[%c10_80, %c0_81, %c0_82] : memref<13x1x128xf32, #tpu.memory_space<vmem>>, vector<1x1x128xf32>
    %117 = vector.shape_cast %116 : vector<1x1x128xf32> to vector<1x128xf32>
    %118 = vector.broadcast %117 : vector<1x128xf32> to vector<256x128xf32>
    %119 = arith.addf %115, %118 : vector<256x128xf32>
    %120 = arith.truncf %119 : vector<256x128xf32> to vector<256x128xbf16>
    %121 = vector.shape_cast %120 : vector<256x128xbf16> to vector<2x128x128xbf16>
    %c0_83 = arith.constant 0 : index
    %c0_84 = arith.constant 0 : index
    %c0_85 = arith.constant 0 : index
    %122 = vector.load %arg2[%c0_83, %c0_84, %c0_85] : memref<2x8x128xbf16, #tpu.memory_space<vmem>>, vector<2x8x128xbf16>
    "tpu.trace_start"() <{level = 10 : i32, message = "bgn,bnd->bgd"}> : () -> ()
    %cst_86 = arith.constant dense<0.000000e+00> : vector<2x8x128xf32>
    %123 = tpu.matmul %122, %121, %cst_86 {dimension_numbers = #tpu.dot_dimension_numbers<[2], [1], [1], [2], [0, 0, 0, 1, 1, 2], [0], [0]>} : vector<2x8x128xbf16>, vector<2x128x128xbf16>, vector<2x8x128xf32> -> vector<2x8x128xf32>
    "tpu.trace_stop"() : () -> ()
    %124 = arith.truncf %123 : vector<2x8x128xf32> to vector<2x8x128xbf16>
    %125 = vector.shape_cast %124 : vector<2x8x128xbf16> to vector<16x128xbf16>
    %c11 = arith.constant 11 : index
    %c0_87 = arith.constant 0 : index
    %c0_88 = arith.constant 0 : index
    %126 = vector.load %arg4[%c11, %c0_87, %c0_88] : memref<13x128x128xbf16, #tpu.memory_space<vmem>>, vector<1x128x128xbf16>
    %127 = vector.shape_cast %126 : vector<1x128x128xbf16> to vector<128x128xbf16>
    %cst_89 = arith.constant dense<0.000000e+00> : vector<16x128xf32>
    %128 = tpu.matmul %125, %127, %cst_89 {dimension_numbers = #tpu.dot_dimension_numbers<[1], [0], [0], [1], [0, 0, 1, 1], [], []>} : vector<16x128xbf16>, vector<128x128xbf16>, vector<16x128xf32> -> vector<16x128xf32>
    %c11_90 = arith.constant 11 : index
    %c0_91 = arith.constant 0 : index
    %c0_92 = arith.constant 0 : index
    %129 = vector.load %arg5[%c11_90, %c0_91, %c0_92] : memref<13x1x128xf32, #tpu.memory_space<vmem>>, vector<1x1x128xf32>
    %130 = vector.shape_cast %129 : vector<1x1x128xf32> to vector<1x128xf32>
    %131 = vector.broadcast %130 : vector<1x128xf32> to vector<16x128xf32>
    %132 = arith.addf %128, %131 : vector<16x128xf32>
    %cst_93 = arith.constant 0.000000e+00 : f32
    %133 = vector.broadcast %cst_93 : f32 to vector<16x128xf32>
    %134 = arith.maximumf %132, %133 : vector<16x128xf32>
    %135 = arith.truncf %134 : vector<16x128xf32> to vector<16x128xbf16>
    %c12 = arith.constant 12 : index
    %c0_94 = arith.constant 0 : index
    %c0_95 = arith.constant 0 : index
    %136 = vector.load %arg4[%c12, %c0_94, %c0_95] : memref<13x128x128xbf16, #tpu.memory_space<vmem>>, vector<1x128x128xbf16>
    %137 = vector.shape_cast %136 : vector<1x128x128xbf16> to vector<128x128xbf16>
    %cst_96 = arith.constant dense<0.000000e+00> : vector<16x128xf32>
    %138 = tpu.matmul %135, %137, %cst_96 {dimension_numbers = #tpu.dot_dimension_numbers<[1], [0], [0], [1], [0, 0, 1, 1], [], []>} : vector<16x128xbf16>, vector<128x128xbf16>, vector<16x128xf32> -> vector<16x128xf32>
    %c12_97 = arith.constant 12 : index
    %c0_98 = arith.constant 0 : index
    %c0_99 = arith.constant 0 : index
    %139 = vector.load %arg5[%c12_97, %c0_98, %c0_99] : memref<13x1x128xf32, #tpu.memory_space<vmem>>, vector<1x1x128xf32>
    %140 = vector.shape_cast %139 : vector<1x1x128xf32> to vector<1x128xf32>
    %141 = vector.broadcast %140 : vector<1x128xf32> to vector<16x128xf32>
    %142 = arith.addf %138, %141 : vector<16x128xf32>
    %143 = tpu.iota {dimensions = array<i32: 1>} : vector<16x128xi32>
    %c4_i32 = arith.constant 4 : i32
    %144 = vector.broadcast %c4_i32 : i32 to vector<16x128xi32>
    %145 = arith.cmpi slt, %143, %144 : vector<16x128xi32>
    %cst_100 = arith.constant -1.000000e+30 : f32
    %146 = vector.broadcast %cst_100 : f32 to vector<16x128xf32>
    %147 = arith.select %145, %142, %146 : vector<16x128xi1>, vector<16x128xf32>
    %cst_101 = arith.constant dense<0xFF800000> : vector<16xf32>
    %148 = vector.multi_reduction <maximumf>, %147, %cst_101 [1] : vector<16x128xf32> to vector<16xf32>
    %149 = vector.shape_cast %148 : vector<16xf32> to vector<16x1xf32>
    %150 = vector.broadcast %149 : vector<16x1xf32> to vector<16x128xf32>
    %151 = arith.subf %147, %150 : vector<16x128xf32>
    %152 = math.exp %151 : vector<16x128xf32>
    %cst_102 = arith.constant 0.000000e+00 : f32
    %153 = vector.broadcast %cst_102 : f32 to vector<16x128xf32>
    %154 = arith.select %145, %152, %153 : vector<16x128xi1>, vector<16x128xf32>
    %cst_103 = arith.constant dense<0.000000e+00> : vector<16xf32>
    %155 = vector.multi_reduction <add>, %154, %cst_103 [1] : vector<16x128xf32> to vector<16xf32>
    %156 = vector.shape_cast %155 : vector<16xf32> to vector<16x1xf32>
    %157 = math.log %156 : vector<16x1xf32>
    %158 = vector.broadcast %157 : vector<16x1xf32> to vector<16x128xf32>
    %159 = arith.subf %151, %158 : vector<16x128xf32>
    %160 = vector.shape_cast %159 : vector<16x128xf32> to vector<2x8x128xf32>
    %c0_104 = arith.constant 0 : index
    %c0_105 = arith.constant 0 : index
    %c0_106 = arith.constant 0 : index
    %161 = vector.load %arg6[%c0_104, %c0_105, %c0_106] : memref<2x8x128xf32, #tpu.memory_space<vmem>>, vector<2x8x128xf32>
    tpu.vector_store %arg6[%c0_104, %c0_105, %c0_106], %160 {strides = array<i32>} : memref<2x8x128xf32, #tpu.memory_space<vmem>>, vector<2x8x128xf32>,
    return
  }
  func.func @transform_0(%arg0: i32) -> (i32, i32, i32) {
    %c0_i32 = arith.constant 0 : i32
    %c0_i32_0 = arith.constant 0 : i32
    %c0_i32_1 = arith.constant 0 : i32
    return %arg0, %c0_i32, %c0_i32_0 : i32, i32, i32
  }
  func.func @transform_1(%arg0: i32) -> (i32, i32, i32) {
    %c0_i32 = arith.constant 0 : i32
    %c0_i32_0 = arith.constant 0 : i32
    %c0_i32_1 = arith.constant 0 : i32
    return %arg0, %c0_i32, %c0_i32_0 : i32, i32, i32
  }
  func.func @transform_2(%arg0: i32) -> (i32, i32, i32) {
    %c0_i32 = arith.constant 0 : i32
    %c0_i32_0 = arith.constant 0 : i32
    %c0_i32_1 = arith.constant 0 : i32
    return %arg0, %c0_i32, %c0_i32_0 : i32, i32, i32
  }
  func.func @transform_3(%arg0: i32) -> (i32, i32, i32) {
    %c0_i32 = arith.constant 0 : i32
    %c0_i32_0 = arith.constant 0 : i32
    %c0_i32_1 = arith.constant 0 : i32
    %c0_i32_2 = arith.constant 0 : i32
    return %c0_i32, %c0_i32_0, %c0_i32_1 : i32, i32, i32
  }
  func.func @transform_4(%arg0: i32) -> (i32, i32, i32) {
    %c0_i32 = arith.constant 0 : i32
    %c0_i32_0 = arith.constant 0 : i32
    %c0_i32_1 = arith.constant 0 : i32
    %c0_i32_2 = arith.constant 0 : i32
    return %c0_i32, %c0_i32_0, %c0_i32_1 : i32, i32, i32
  }
  func.func @transform_5(%arg0: i32) -> (i32, i32, i32) {
    %c0_i32 = arith.constant 0 : i32
    %c0_i32_0 = arith.constant 0 : i32
    %c0_i32_1 = arith.constant 0 : i32
    return %arg0, %c0_i32, %c0_i32_0 : i32, i32, i32
  }
}

</mosaic_0001>

<bundles_post_ra>
// kernel: _gin_pallas.1
= control target key start
LH: loop header
LB: loop body
LE: loop exit
PB: predicated region body
PF: predicated region fallthrough
CT: control target
= control target key end

     0   :  { %10 = vsyncpa [#allocation3], 0  ;;  %s6616_s0 = inlined_call_operand.hbm [shape: bf16[2,128,128], index: 0, kind: input, shape index: {}]   ;;  %s6617_s1 = inlined_call_operand.hbm [shape: bf16[2,8,128], index: 1, kind: input, shape index: {}]   ;;  %s6618_s2 = inlined_call_operand.hbm [shape: bf16[2,128,128], index: 2, kind: input, shape index: {}]   ;;  %s6619_s3 = inlined_call_operand.hbm [shape: bf16[13,128,128], index: 3, kind: input, shape index: {}]   ;;  %s6620_s4 = inlined_call_operand.vmem [shape: f32[13,1,128], index: 4, kind: input, shape index: {}]   ;;  %s6621_s5 = inlined_call_operand.hbm [shape: f32[2,8,128], index: 5, kind: output, shape index: {}]  }
   0x1   :  { %11 = vsyncpa [#allocation6], 0 }
   0x2   :  { %12 = vsyncpa [#allocation9], 0 }
   0x3   :  { %13 = vsyncpa [#allocation4], 0  ;;  %s6032_s18 = smov [#allocation5]   ;;  %s6033_s20 = smov [#allocation2]  }
   0x4   :  { %s31_s19 = sshll.u32 %s6032_s18, 4  ;;  %s19_s21 = sshll.u32 %s6033_s20, 4  ;;  %s32_s19 = int_to_ptr.vmem [resolvable:$true] %s31_s19  ;;  %s6073_s21 = int_to_ptr.vmem [resolvable:$true] %s19_s21 }
   0x5   :  { %s5914_s24 = scalar_lea.hbm %s6617_s1, 128 }
   0x6   :  { %p5915_p0 = scmp.ne.s32.totalorder %s6617_s1, %s5914_s24  ;;  %p5918_p1 = scmp.lt.u32.totalorder %s5914_s24, %s6617_s1 }
   0x8   :  { %p5920_p2 = pnand %p5918_p1, %p5915_p0 }
   0xa   :  { %5923 = shalt.err (!%p5920_p2)
}
   0xb   :  { %s5924_s29 = scalar_lea.vmem %s32_s19, 128  ;;  %p5929_p4 = scmp.lt.s32.totalorder %s32_s19, %s32_s19 }
   0xc   :  { %p5925_p3 = scmp.ne.s32.totalorder %s32_s19, %s5924_s29  ;;  %p5930_p5 = scmp.lt.s32.totalorder %s5924_s29, %s5924_s29 }
   0xe   :  { %p5931_p6 = por %p5930_p5, %p5929_p4 }
  0x10   :  { %p5932_p7 = pnand %p5931_p6, %p5925_p3 }
  0x12   :  { %5935 = shalt.err (!%p5932_p7)
}
  0x13   :  { %s6034_s30 = smov 64   ;;  %s6035_s6 = smov 4  }
  0x14   :  { %37 = dma.hbm_to_vmem [thread:$0]  %s6617_s1, 128, %s32_s19, [#allocation6], %s6034_s30, %s6034_s30, %s6035_s6  }
  0x15   :  { %s5936_s11 = scalar_lea.hbm %s6616_s0, 2048 }
  0x16   :  { %p5937_p8 = scmp.ne.s32.totalorder %s6616_s0, %s5936_s11  ;;  %p5940_p9 = scmp.lt.u32.totalorder %s5936_s11, %s6616_s0 }
  0x18   :  { %p5942_p10 = pnand %p5940_p9, %p5937_p8 }
  0x1a   :  { %5945 = shalt.err (!%p5942_p10)
}
  0x1b   :  { %s5946_s16 = scalar_lea.vmem %s6073_s21, 2048  ;;  %p5951_p12 = scmp.lt.s32.totalorder %s6073_s21, %s6073_s21 }
  0x1c   :  { %p5947_p11 = scmp.ne.s32.totalorder %s6073_s21, %s5946_s16  ;;  %p5952_p13 = scmp.lt.s32.totalorder %s5946_s16, %s5946_s16 }
  0x1e   :  { %p5953_p0 = por %p5952_p13, %p5951_p12 }
  0x20   :  { %p5954_p1 = pnand %p5953_p0, %p5947_p11 }
  0x22   :  { %5957 = shalt.err (!%p5954_p1)
}
  0x23   :  { %25 = dma.hbm_to_vmem [thread:$0]  %s6616_s0, 2048, %s6073_s21, [#allocation3], %s6034_s30, %s6034_s30, %s6035_s6  }
  0x24   :  { %s6036_s18 = smov [#allocation7]   ;;  %s6037_s20 = smov [#allocation8]  }
  0x25   :  { %s43_s19 = sshll.u32 %s6036_s18, 4  ;;  %s55_s22 = sshll.u32 %s6037_s20, 4  ;;  %s44_s19 = int_to_ptr.vmem [resolvable:$true] %s43_s19  ;;  %s6110_s22 = int_to_ptr.vmem [resolvable:$true] %s55_s22 }
  0x26   :  { %s5958_s25 = scalar_lea.hbm %s6618_s2, 2048 }
  0x27   :  { %p5959_p2 = scmp.ne.s32.totalorder %s6618_s2, %s5958_s25  ;;  %p5962_p3 = scmp.lt.u32.totalorder %s5958_s25, %s6618_s2 }
  0x29   :  { %p5964_p4 = pnand %p5962_p3, %p5959_p2 }
  0x2b   :  { %5967 = shalt.err (!%p5964_p4)
}
  0x2c   :  { %s5968_s0 = scalar_lea.vmem %s44_s19, 2048  ;;  %p5973_p6 = scmp.lt.s32.totalorder %s44_s19, %s44_s19 }
  0x2d   :  { %p5969_p5 = scmp.ne.s32.totalorder %s44_s19, %s5968_s0  ;;  %p5974_p7 = scmp.lt.s32.totalorder %s5968_s0, %s5968_s0 }
  0x2f   :  { %p5975_p8 = por %p5974_p7, %p5973_p6 }
  0x31   :  { %p5976_p9 = pnand %p5975_p8, %p5969_p5 }
  0x33   :  { %5979 = shalt.err (!%p5976_p9)
}
  0x34   :  { %49 = dma.hbm_to_vmem [thread:$0]  %s6618_s2, 2048, %s44_s19, [#allocation6], %s6034_s30, %s6034_s30, %s6035_s6  }
  0x35   :  { %s5980_s10 = scalar_lea.hbm %s6619_s3, 13312 }
  0x36   :  { %p5981_p10 = scmp.ne.s32.totalorder %s6619_s3, %s5980_s10  ;;  %p5984_p11 = scmp.lt.u32.totalorder %s5980_s10, %s6619_s3 }
  0x38   :  { %p5986_p12 = pnand %p5984_p11, %p5981_p10 }
  0x3a   :  { %5989 = shalt.err (!%p5986_p12)
}
  0x3b   :  { %s5990_s15 = scalar_lea.vmem %s6110_s22, 13312  ;;  %p5995_p0 = scmp.lt.s32.totalorder %s6110_s22, %s6110_s22 }
  0x3c   :  { %p5991_p13 = scmp.ne.s32.totalorder %s6110_s22, %s5990_s15  ;;  %p5996_p1 = scmp.lt.s32.totalorder %s5990_s15, %s5990_s15 }
  0x3e   :  { %p5997_p2 = por %p5996_p1, %p5995_p0 }
  0x40   :  { %p5998_p3 = pnand %p5997_p2, %p5991_p13 }
  0x42   :  { %6001 = shalt.err (!%p5998_p3)
}
  0x43   :  { %61 = dma.hbm_to_vmem [thread:$0]  %s6619_s3, 13312, %s6110_s22, [#allocation9], %s6034_s30, %s6034_s30, %s6035_s6  }
  0x44   :  { %6024 = dma.done.wait [#allocation3], 2048  }
  0x45   :  { %6025 = vsyncadd [#allocation3], 4294965248 }
  0x46   :  { %6026 = dma.done.wait [#allocation6], 2176  }
  0x47   :  { %6027 = vsyncadd [#allocation6], 4294965120 }
  0x48   :  { %6028 = dma.done.wait [#allocation9], 13312  }
  0x49   :  { %6029 = vsyncadd [#allocation9], 4294953984  ;;  %v5738_v0 = vld [vmem:[#allocation7] sm:$0xff]   ;;  %v5739_v1 = vld [vmem:[#allocation7 + $0x8] sm:$0xff]   ;;  %vm6039_vm0 = vmmov 0  }
  0x4a   :  { %4927 = vmatprep.subr.bf16.mxu0 %v5738_v0  ;;  %v5740_v2 = vld [vmem:[#allocation7 + $0x10] sm:$0xff]   ;;  %v5741_v3 = vld [vmem:[#allocation7 + $0x18] sm:$0xff]   ;;  %v5748_v5 = vld [vmem:[#allocation7 + $0x40] sm:$0xff]  }
  0x4b   :  { %4928 = vmatpush3.bf16.msra.mxu0 %v5738_v0  ;;  %v5746_v4 = vld [vmem:[#allocation2] sm:$0xff]   ;;  %v5749_v6 = vld [vmem:[#allocation7 + $0x48] sm:$0xff]   ;;  %v5742_v7 = vld [vmem:[#allocation7 + $0x20] sm:$0xff]   ;;  %4959 = vmatprep.subr.bf16.mxu1 %v5748_v5 }
  0x4c   :  { %4929 = vmatprep.subr.bf16.mxu0 %v5739_v1  ;;  %4943 = vmatprep.mubr.bf16.mxu0 %v5746_v4  ;;  %v5752_v8 = vld [vmem:[#allocation7 + $0x50] sm:$0xff]   ;;  %v5743_v9 = vld [vmem:[#allocation7 + $0x28] sm:$0xff]   ;;  %v5753_v10 = vld [vmem:[#allocation7 + $0x58] sm:$0xff]  }
  0x4d   :  { %4960 = vmatpush3.bf16.msra.mxu1 %v5748_v5  ;;  %v5744_v11 = vld [vmem:[#allocation7 + $0x30] sm:$0xff]   ;;  %v5756_v12 = vld [vmem:[#allocation7 + $0x60] sm:$0xff]   ;;  %v5745_v13 = vld [vmem:[#allocation7 + $0x38] sm:$0xff]  }
  0x4e   :  { %4961 = vmatprep.subr.bf16.mxu1 %v5749_v6  ;;  %v5762_v14 = vld [vmem:[#allocation2 + $0x40] sm:$0xff]   ;;  %v5757_v15 = vld [vmem:[#allocation7 + $0x68] sm:$0xff]   ;;  %v5747_v16 = vld [vmem:[#allocation2 + $0x8] sm:$0xff]  }
  0x4f   :  { %4930 = vmatpush3.bf16.msra.mxu0 %v5739_v1  ;;  %4975 = vmatprep.mubr.bf16.mxu1 %v5762_v14  ;;  %v5760_v17 = vld [vmem:[#allocation7 + $0x70] sm:$0xff]   ;;  %v5750_v18 = vld [vmem:[#allocation2 + $0x10] sm:$0xff]   ;;  %v5770_v19 = vld [vmem:[#allocation8] sm:$0xff]  }
  0x50   :  { %4931 = vmatprep.subr.bf16.mxu0 %v5740_v2  ;;  %v5771_v20 = vld [vmem:[#allocation8 + $0x8] sm:$0xff]   ;;  %v5761_v21 = vld [vmem:[#allocation7 + $0x78] sm:$0xff]   ;;  %v5751_v22 = vld [vmem:[#allocation2 + $0x18] sm:$0xff]  }
  0x51   :  { %4962 = vmatpush3.bf16.msra.mxu1 %v5749_v6  ;;  %v5754_v23 = vld [vmem:[#allocation2 + $0x20] sm:$0xff]   ;;  %v5772_v24 = vld [vmem:[#allocation8 + $0x10] sm:$0xff]   ;;  %v5763_v25 = vld [vmem:[#allocation2 + $0x48] sm:$0xff]  }
  0x52   :  { %4963 = vmatprep.subr.bf16.mxu1 %v5752_v8  ;;  %v5764_v26 = vld [vmem:[#allocation2 + $0x50] sm:$0xff]   ;;  %v5773_v27 = vld [vmem:[#allocation8 + $0x18] sm:$0xff]   ;;  %v5774_v28 = vld [vmem:[#allocation8 + $0x20] sm:$0xff]  }
  0x53   :  { %4932 = vmatpush3.bf16.msra.mxu0 %v5740_v2  ;;  %v5755_v29 = vld [vmem:[#allocation2 + $0x28] sm:$0xff]   ;;  %v5758_v30 = vld [vmem:[#allocation2 + $0x30] sm:$0xff]   ;;  %v5765_v31 = vld [vmem:[#allocation2 + $0x58] sm:$0xff]  }
  0x54   :  { %4933 = vmatprep.subr.bf16.mxu0 %v5741_v3  ;;  %v5766_v32 = vld [vmem:[#allocation2 + $0x60] sm:$0xff]   ;;  %v5775_v33 = vld [vmem:[#allocation8 + $0x28] sm:$0xff]   ;;  %v5776_v34 = vld [vmem:[#allocation8 + $0x30] sm:$0xff]  }
  0x55   :  { %4964 = vmatpush3.bf16.msra.mxu1 %v5752_v8  ;;  %v5759_v35 = vld [vmem:[#allocation2 + $0x38] sm:$0xff]   ;;  %v5767_v36 = vld [vmem:[#allocation2 + $0x68] sm:$0xff]   ;;  %v5768_v37 = vld [vmem:[#allocation2 + $0x70] sm:$0xff]  }
  0x56   :  { %4965 = vmatprep.subr.bf16.mxu1 %v5753_v10  ;;  %v5769_v38 = vld [vmem:[#allocation2 + $0x78] sm:$0xff]   ;;  %v5777_v39 = vld [vmem:[#allocation8 + $0x38] sm:$0xff]   ;;  %v5778_v40 = vld [vmem:[#allocation8 + $0x40] sm:$0xff]  }
  0x57   :  { %4934 = vmatpush3.bf16.msra.mxu0 %v5741_v3  ;;  %v5779_v41 = vld [vmem:[#allocation8 + $0x48] sm:$0xff]   ;;  %v5780_v42 = vld [vmem:[#allocation8 + $0x50] sm:$0xff]   ;;  %v5781_v43 = vld [vmem:[#allocation8 + $0x58] sm:$0xff]  }
  0x58   :  { %4935 = vmatprep.subr.bf16.mxu0 %v5742_v7  ;;  %v5782_v44 = vld [vmem:[#allocation8 + $0x60] sm:$0xff]   ;;  %v5783_v45 = vld [vmem:[#allocation8 + $0x68] sm:$0xff]  }
  0x59   :  { %4966 = vmatpush3.bf16.msra.mxu1 %v5753_v10 }
  0x5a   :  { %4967 = vmatprep.subr.bf16.mxu1 %v5756_v12 }
  0x5b   :  { %4936 = vmatpush3.bf16.msra.mxu0 %v5742_v7 }
  0x5c   :  { %4937 = vmatprep.subr.bf16.mxu0 %v5743_v9 }
  0x5d   :  { %4968 = vmatpush3.bf16.msra.mxu1 %v5756_v12 }
  0x5e   :  { %4969 = vmatprep.subr.bf16.mxu1 %v5757_v15 }
  0x5f   :  { %4938 = vmatpush3.bf16.msra.mxu0 %v5743_v9 }
  0x60   :  { %4939 = vmatprep.subr.bf16.mxu0 %v5744_v11 }
  0x61   :  { %4970 = vmatpush3.bf16.msra.mxu1 %v5757_v15 }
  0x62   :  { %4971 = vmatprep.subr.bf16.mxu1 %v5760_v17 }
  0x63   :  { %4940 = vmatpush3.bf16.msra.mxu0 %v5744_v11 }
  0x64   :  { %4941 = vmatprep.subr.bf16.mxu0 %v5745_v13 }
  0x65   :  { %4972 = vmatpush3.bf16.msra.mxu1 %v5760_v17 }
  0x66   :  { %4973 = vmatprep.subr.bf16.mxu1 %v5761_v21 }
  0x67   :  { %4942 = vmatpush3.bf16.msra.mxu0 %v5745_v13 }
  0x68   :  { %4991 = vmatprep.subr.bf16.mxu0 %v5770_v19 }
  0x69   :  { %4974 = vmatpush3.bf16.msra.mxu1 %v5761_v21 }
  0x6a   :  { %4944 = vmatmul.mubr.bf16.vlgmr.msra.gmra.mrb[0].mxu0 %v5747_v16  ;;  %5039 = vmatprep.subr.bf16.mxu1 %v5778_v40 }
  0x6b   :  { %4947 = vmatprep.mubr.bf16.mxu0 %v5750_v18  ;;  %4992 = vmatpush3.bf16.msra.mxu0 %v5770_v19 }
  0x6c   :  { %4993 = vmatprep.subr.bf16.mxu0 %v5771_v20  ;;  %4976 = vmatmul.mubr.bf16.vlgmr.msra.gmra.mrb[0].mxu1 %v5763_v25 }
  0x6d   :  { %4979 = vmatprep.mubr.bf16.mxu1 %v5764_v26  ;;  %5040 = vmatpush3.bf16.msra.mxu1 %v5778_v40 }
  0x6e   :  { %5041 = vmatprep.subr.bf16.mxu1 %v5779_v41 }
  0x6f   :  { %4994 = vmatpush3.bf16.msra.mxu0 %v5771_v20 }
  0x70   :  { %4995 = vmatprep.subr.bf16.mxu0 %v5772_v24 }
  0x71   :  { %5042 = vmatpush3.bf16.msra.mxu1 %v5779_v41 }
  0x72   :  { %4948 = vmatmul.mubr.bf16.gmra.mrb[4].mxu0 %v5751_v22  ;;  %5043 = vmatprep.subr.bf16.mxu1 %v5780_v42 }
  0x73   :  { %4951 = vmatprep.mubr.bf16.mxu0 %v5754_v23  ;;  %4996 = vmatpush3.bf16.msra.mxu0 %v5772_v24 }
  0x74   :  { %4997 = vmatprep.subr.bf16.mxu0 %v5773_v27  ;;  %4980 = vmatmul.mubr.bf16.gmra.mrb[4].mxu1 %v5765_v31  ;;  %v5785_v31 = vld [vmem:[#allocation8 + $0x78] sm:$0xff]  }
  0x75   :  { %4983 = vmatprep.mubr.bf16.mxu1 %v5766_v32  ;;  %5044 = vmatpush3.bf16.msra.mxu1 %v5780_v42  ;;  %v5786_v32 = vld [vmem:[#allocation8 + $0x80] sm:$0xff]  }
  0x76   :  { %5045 = vmatprep.subr.bf16.mxu1 %v5781_v43 }
  0x77   :  { %4998 = vmatpush3.bf16.msra.mxu0 %v5773_v27 }
  0x78   :  { %4999 = vmatprep.subr.bf16.mxu0 %v5774_v28 }
  0x79   :  { %5046 = vmatpush3.bf16.msra.mxu1 %v5781_v43 }
  0x7a   :  { %4952 = vmatmul.mubr.bf16.gmra.mrb[8].mxu0 %v5755_v29  ;;  %5047 = vmatprep.subr.bf16.mxu1 %v5782_v44 }
  0x7b   :  { %4955 = vmatprep.mubr.bf16.mxu0 %v5758_v30  ;;  %5000 = vmatpush3.bf16.msra.mxu0 %v5774_v28  ;;  %v5784_v30 = vld [vmem:[#allocation8 + $0x70] sm:$0xff]  }
  0x7c   :  { %5001 = vmatprep.subr.bf16.mxu0 %v5775_v33  ;;  %4984 = vmatmul.mubr.bf16.gmra.mrb[8].mxu1 %v5767_v36  ;;  %v5790_v36 = vld [vmem:[#allocation8 + $0xa0] sm:$0xff]  }
  0x7d   :  { %4987 = vmatprep.mubr.bf16.mxu1 %v5768_v37  ;;  %5048 = vmatpush3.bf16.msra.mxu1 %v5782_v44  ;;  %v5791_v37 = vld [vmem:[#allocation8 + $0xa8] sm:$0xff]  }
  0x7e   :  { %5049 = vmatprep.subr.bf16.mxu1 %v5783_v45 }
  0x7f   :  { %5002 = vmatpush3.bf16.msra.mxu0 %v5775_v33  ;;  %v5787_v33 = vld [vmem:[#allocation8 + $0x88] sm:$0xff]  }
  0x80   :  { %5003 = vmatprep.subr.bf16.mxu0 %v5776_v34 }
  0x81   :  { %5050 = vmatpush3.bf16.msra.mxu1 %v5783_v45 }
  0x82   :  { %4956 = vmatmul.mubr.bf16.gmra.mrb[12].mxu0 %v5759_v35  ;;  %5051 = vmatprep.subr.bf16.mxu1 %v5784_v30  ;;  %v5789_v35 = vld [vmem:[#allocation8 + $0x98] sm:$0xff]  }
  0x83   :  { %5004 = vmatpush3.bf16.msra.mxu0 %v5776_v34  ;;  %v5788_v34 = vld [vmem:[#allocation8 + $0x90] sm:$0xff]  }
  0x84   :  { %4988 = vmatmul.mubr.bf16.gmra.mrb[12].mxu1 %v5769_v38  ;;  %5005 = vmatprep.subr.bf16.mxu0 %v5777_v39  ;;  %v6150_v38 = vld [vmem:[%s6620_s4] ss:$0 sm:$0xff] }
  0x85   :  { %5052 = vmatpush3.bf16.msra.mxu1 %v5784_v30 }
  0x86   :  { %5053 = vmatprep.subr.bf16.mxu1 %v5785_v31 }
  0x87   :  { %5006 = vmatpush3.bf16.msra.mxu0 %v5777_v39 }
  0x88   :  { %5087 = vmatprep.subr.bf16.mxu0 %v5786_v32 }
  0x89   :  { %5054 = vmatpush3.bf16.msra.mxu1 %v5785_v31 }
 0x13d   :  { %v4945_v46 = vpop.f32.mrb[0].mxu0 }
 0x13e   :  { %v271_v47 = vpop.f32.mrb[1].mxu0 }
 0x13f   :  { %v4946_v48 = vpop.f32.mrb[2].mxu0  ;;  %v4977_v55 = vpop.f32.mrb[0].mxu1 }
 0x140   :  { %v528_v49 = vpack.c.bf16 %v4946_v48, %v4945_v46  ;;  %v274_v50 = vpop.f32.mrb[3].mxu0  ;;  %v464_v58 = vpop.f32.mrb[1].mxu1 }
 0x141   :  { %v527_v51 = vpack.c.bf16 %v274_v50, %v271_v47  ;;  %v4978_v60 = vpop.f32.mrb[2].mxu1 }
 0x142   :  { %v536_v61 = vpack.c.bf16 %v4978_v60, %v4977_v55  ;;  %v467_v62 = vpop.f32.mrb[3].mxu1 }
 0x143   :  { %5007 = vmatprep.mubr.bf16.mxu0 %v527_v51  ;;  %v535_v63 = vpack.c.bf16 %v467_v62, %v464_v58 }
 0x144   :  { %5008 = vmatmul.mubr.bf16.vlgmr.msra.gmra.mrb[16].mxu0 %v528_v49 }
 0x145   :  { %v4949_v52 = vpop.f32.mrb[4].mxu0  ;;  %5088 = vmatpush3.bf16.msra.mxu0 %v5786_v32 }
 0x146   :  { %v287_v53 = vpop.f32.mrb[5].mxu0  ;;  %5089 = vmatprep.subr.bf16.mxu0 %v5787_v33 }
 0x147   :  { %v4950_v54 = vpop.f32.mrb[6].mxu0  ;;  %v4981_v3 = vpop.f32.mrb[4].mxu1 }
 0x148   :  { %v530_v56 = vpack.c.bf16 %v4950_v54, %v4949_v52  ;;  %v290_v57 = vpop.f32.mrb[7].mxu0  ;;  %v480_v6 = vpop.f32.mrb[5].mxu1 }
 0x149   :  { %v529_v59 = vpack.c.bf16 %v290_v57, %v287_v53  ;;  %v4982_v8 = vpop.f32.mrb[6].mxu1  ;;  %5090 = vmatpush3.bf16.msra.mxu0 %v5787_v33 }
 0x14a   :  { %v538_v9 = vpack.c.bf16 %v4982_v8, %v4981_v3  ;;  %v483_v10 = vpop.f32.mrb[7].mxu1  ;;  %5091 = vmatprep.subr.bf16.mxu0 %v5788_v34 }
 0x14b   :  { %5011 = vmatprep.mubr.bf16.mxu0 %v529_v59  ;;  %v537_v11 = vpack.c.bf16 %v483_v10, %v480_v6 }
 0x14c   :  { %5012 = vmatmul.mubr.bf16.gmra.mrb[20].mxu0 %v530_v56 }
 0x14d   :  { %v4953_v0 = vpop.f32.mrb[8].mxu0  ;;  %5092 = vmatpush3.bf16.msra.mxu0 %v5788_v34 }
 0x14e   :  { %v303_v1 = vpop.f32.mrb[9].mxu0  ;;  %5093 = vmatprep.subr.bf16.mxu0 %v5789_v35 }
 0x14f   :  { %v4954_v2 = vpop.f32.mrb[10].mxu0  ;;  %v4985_v15 = vpop.f32.mrb[8].mxu1 }
 0x150   :  { %v532_v4 = vpack.c.bf16 %v4954_v2, %v4953_v0  ;;  %v306_v5 = vpop.f32.mrb[11].mxu0  ;;  %v496_v18 = vpop.f32.mrb[9].mxu1 }
 0x151   :  { %v531_v7 = vpack.c.bf16 %v306_v5, %v303_v1  ;;  %v4986_v20 = vpop.f32.mrb[10].mxu1  ;;  %5094 = vmatpush3.bf16.msra.mxu0 %v5789_v35 }
 0x152   :  { %v540_v21 = vpack.c.bf16 %v4986_v20, %v4985_v15  ;;  %v499_v22 = vpop.f32.mrb[11].mxu1  ;;  %5095 = vmatprep.subr.bf16.mxu0 %v5790_v36 }
 0x153   :  { %5015 = vmatprep.mubr.bf16.mxu0 %v531_v7  ;;  %v539_v23 = vpack.c.bf16 %v499_v22, %v496_v18 }
 0x154   :  { %5016 = vmatmul.mubr.bf16.gmra.mrb[24].mxu0 %v532_v4 }
 0x155   :  { %v4957_v12 = vpop.f32.mrb[12].mxu0  ;;  %5096 = vmatpush3.bf16.msra.mxu0 %v5790_v36 }
 0x156   :  { %v319_v13 = vpop.f32.mrb[13].mxu0  ;;  %5097 = vmatprep.subr.bf16.mxu0 %v5791_v37 }
 0x157   :  { %v4958_v14 = vpop.f32.mrb[14].mxu0  ;;  %v4989_v24 = vpop.f32.mrb[12].mxu1 }
 0x158   :  { %v534_v16 = vpack.c.bf16 %v4958_v14, %v4957_v12  ;;  %v322_v17 = vpop.f32.mrb[15].mxu0  ;;  %v512_v25 = vpop.f32.mrb[13].mxu1 }
 0x159   :  { %v533_v19 = vpack.c.bf16 %v322_v17, %v319_v13  ;;  %v4990_v26 = vpop.f32.mrb[14].mxu1  ;;  %5098 = vmatpush3.bf16.msra.mxu0 %v5791_v37 }
 0x15a   :  { %v542_v27 = vpack.c.bf16 %v4990_v26, %v4989_v24  ;;  %v515_v28 = vpop.f32.mrb[15].mxu1 }
 0x15b   :  { %5019 = vmatprep.mubr.bf16.mxu0 %v533_v19  ;;  %v541_v29 = vpack.c.bf16 %v515_v28, %v512_v25 }
 0x15c   :  { %5020 = vmatmul.mubr.bf16.gmra.mrb[28].mxu0 %v534_v16 }
 0x15d   :  { %5023 = vmatprep.mubr.bf16.mxu0 %v535_v63 }
 0x164   :  { %5024 = vmatmul.mubr.bf16.gmra.mrb[32].mxu0 %v536_v61 }
 0x165   :  { %5027 = vmatprep.mubr.bf16.mxu0 %v537_v11 }
 0x16c   :  { %5028 = vmatmul.mubr.bf16.gmra.mrb[36].mxu0 %v538_v9 }
 0x16d   :  { %5031 = vmatprep.mubr.bf16.mxu0 %v539_v23 }
 0x174   :  { %5032 = vmatmul.mubr.bf16.gmra.mrb[40].mxu0 %v540_v21 }
 0x175   :  { %5035 = vmatprep.mubr.bf16.mxu0 %v541_v29 }
 0x17c   :  { %5036 = vmatmul.mubr.bf16.gmra.mrb[44].mxu0 %v542_v27 }
 0x217   :  { %v5009_v39 = vpop.f32.mrb[16].mxu0 }
 0x218   :  { %v657_v40 = vadd.f32 %v5009_v39, %v6150_v38  ;;  %v648_v41 = vpop.f32.mrb[17].mxu0 }
 0x219   :  { %v649_v42 = vadd.f32 %v6150_v38, %v648_v41  ;;  %v5010_v43 = vpop.f32.mrb[18].mxu0 }
 0x21a   :  { %v660_v44 = vadd.f32 %v5010_v43, %v6150_v38  ;;  %v651_v45 = vpop.f32.mrb[19].mxu0  ;;  %v777_v47 = vmax.f32 %v657_v40, 0.0 }
 0x21b   :  { %v652_v46 = vadd.f32 %v6150_v38, %v651_v45  ;;  %v775_v49 = vmax.f32 %v649_v42, 0.0 }
 0x21c   :  { %v778_v48 = vmax.f32 %v660_v44, 0.0 }
 0x21d   :  { %v776_v50 = vmax.f32 %v652_v46, 0.0 }
 0x21e   :  { %v808_v51 = vpack.c.bf16 %v778_v48, %v777_v47 }
 0x21f   :  { %v807_v52 = vpack.c.bf16 %v776_v50, %v775_v49  ;;  %v5013_v53 = vpop.f32.mrb[20].mxu0 }
 0x220   :  { %v673_v54 = vadd.f32 %v5013_v53, %v6150_v38  ;;  %v664_v55 = vpop.f32.mrb[21].mxu0 }
 0x221   :  { %v665_v56 = vadd.f32 %v6150_v38, %v664_v55  ;;  %v5014_v57 = vpop.f32.mrb[22].mxu0  ;;  %5055 = vmatprep.mubr.bf16.mxu1 %v807_v52 }
 0x222   :  { %v676_v58 = vadd.f32 %v5014_v57, %v6150_v38  ;;  %v667_v59 = vpop.f32.mrb[23].mxu0  ;;  %5056 = vmatmul.mubr.bf16.vlgmr.msra.gmra.mrb[16].mxu1 %v808_v51  ;;  %v781_v61 = vmax.f32 %v673_v54, 0.0 }
 0x223   :  { %v668_v60 = vadd.f32 %v6150_v38, %v667_v59  ;;  %v779_v63 = vmax.f32 %v665_v56, 0.0 }
 0x224   :  { %v782_v62 = vmax.f32 %v676_v58, 0.0 }
 0x225   :  { %v780_v0 = vmax.f32 %v668_v60, 0.0 }
 0x226   :  { %v810_v1 = vpack.c.bf16 %v782_v62, %v781_v61 }
 0x227   :  { %v809_v2 = vpack.c.bf16 %v780_v0, %v779_v63  ;;  %v5017_v3 = vpop.f32.mrb[24].mxu0 }
 0x228   :  { %v689_v4 = vadd.f32 %v5017_v3, %v6150_v38  ;;  %v680_v5 = vpop.f32.mrb[25].mxu0 }
 0x229   :  { %v681_v6 = vadd.f32 %v6150_v38, %v680_v5  ;;  %v5018_v7 = vpop.f32.mrb[26].mxu0  ;;  %5059 = vmatprep.mubr.bf16.mxu1 %v809_v2 }
 0x22a   :  { %v692_v8 = vadd.f32 %v5018_v7, %v6150_v38  ;;  %v683_v9 = vpop.f32.mrb[27].mxu0  ;;  %5060 = vmatmul.mubr.bf16.gmra.mrb[20].mxu1 %v810_v1  ;;  %v785_v11 = vmax.f32 %v689_v4, 0.0 }
 0x22b   :  { %v684_v10 = vadd.f32 %v6150_v38, %v683_v9  ;;  %v783_v13 = vmax.f32 %v681_v6, 0.0 }
 0x22c   :  { %v786_v12 = vmax.f32 %v692_v8, 0.0 }
 0x22d   :  { %v784_v14 = vmax.f32 %v684_v10, 0.0 }
 0x22e   :  { %v812_v15 = vpack.c.bf16 %v786_v12, %v785_v11 }
 0x22f   :  { %v811_v16 = vpack.c.bf16 %v784_v14, %v783_v13  ;;  %v5021_v17 = vpop.f32.mrb[28].mxu0 }
 0x230   :  { %v705_v18 = vadd.f32 %v5021_v17, %v6150_v38  ;;  %v696_v19 = vpop.f32.mrb[29].mxu0 }
 0x231   :  { %v697_v20 = vadd.f32 %v6150_v38, %v696_v19  ;;  %v5022_v21 = vpop.f32.mrb[30].mxu0  ;;  %5063 = vmatprep.mubr.bf16.mxu1 %v811_v16 }
 0x232   :  { %v708_v22 = vadd.f32 %v5022_v21, %v6150_v38  ;;  %v699_v23 = vpop.f32.mrb[31].mxu0  ;;  %5064 = vmatmul.mubr.bf16.gmra.mrb[24].mxu1 %v812_v15  ;;  %v789_v25 = vmax.f32 %v705_v18, 0.0 }
 0x233   :  { %v700_v24 = vadd.f32 %v6150_v38, %v699_v23  ;;  %v787_v27 = vmax.f32 %v697_v20, 0.0 }
 0x234   :  { %v790_v26 = vmax.f32 %v708_v22, 0.0 }
 0x235   :  { %v788_v28 = vmax.f32 %v700_v24, 0.0  ;;  %v5882_v24 = vld [vmem:[#allocation2] sm:$0xff]  }
 0x236   :  { %v814_v29 = vpack.c.bf16 %v790_v26, %v789_v25  ;;  %v5792_v25 = vld [vmem:[#allocation8 + $0xb0] sm:$0xff]   ;;  %v5793_v26 = vld [vmem:[#allocation8 + $0xb8] sm:$0xff]  }
 0x237   :  { %v813_v30 = vpack.c.bf16 %v788_v28, %v787_v27  ;;  %v5025_v31 = vpop.f32.mrb[32].mxu0  ;;  %5099 = vmatprep.subr.bf16.mxu0 %v5792_v25 }
 0x238   :  { %v721_v32 = vadd.f32 %v5025_v31, %v6150_v38  ;;  %v712_v33 = vpop.f32.mrb[33].mxu0  ;;  %5100 = vmatpush3.bf16.msra.mxu0 %v5792_v25 }
 0x239   :  { %v713_v34 = vadd.f32 %v6150_v38, %v712_v33  ;;  %v5026_v35 = vpop.f32.mrb[34].mxu0  ;;  %5067 = vmatprep.mubr.bf16.mxu1 %v813_v30  ;;  %5101 = vmatprep.subr.bf16.mxu0 %v5793_v26 }
 0x23a   :  { %v724_v36 = vadd.f32 %v5026_v35, %v6150_v38  ;;  %v715_v37 = vpop.f32.mrb[35].mxu0  ;;  %5068 = vmatmul.mubr.bf16.gmra.mrb[28].mxu1 %v814_v29  ;;  %v793_v40 = vmax.f32 %v721_v32, 0.0 }
 0x23b   :  { %v716_v39 = vadd.f32 %v6150_v38, %v715_v37  ;;  %v791_v42 = vmax.f32 %v713_v34, 0.0 }
 0x23c   :  { %v794_v41 = vmax.f32 %v724_v36, 0.0  ;;  %5102 = vmatpush3.bf16.msra.mxu0 %v5793_v26 }
 0x23d   :  { %v792_v43 = vmax.f32 %v716_v39, 0.0 }
 0x23e   :  { %v816_v44 = vpack.c.bf16 %v794_v41, %v793_v40 }
 0x23f   :  { %v815_v45 = vpack.c.bf16 %v792_v43, %v791_v42  ;;  %v5029_v46 = vpop.f32.mrb[36].mxu0 }
 0x240   :  { %v737_v47 = vadd.f32 %v5029_v46, %v6150_v38  ;;  %v728_v48 = vpop.f32.mrb[37].mxu0 }
 0x241   :  { %v729_v49 = vadd.f32 %v6150_v38, %v728_v48  ;;  %v5030_v50 = vpop.f32.mrb[38].mxu0  ;;  %5071 = vmatprep.mubr.bf16.mxu1 %v815_v45 }
 0x242   :  { %v740_v51 = vadd.f32 %v5030_v50, %v6150_v38  ;;  %v731_v52 = vpop.f32.mrb[39].mxu0  ;;  %5072 = vmatmul.mubr.bf16.gmra.mrb[32].mxu1 %v816_v44  ;;  %v797_v54 = vmax.f32 %v737_v47, 0.0 }
 0x243   :  { %v732_v53 = vadd.f32 %v6150_v38, %v731_v52  ;;  %v795_v56 = vmax.f32 %v729_v49, 0.0 }
 0x244   :  { %v798_v55 = vmax.f32 %v740_v51, 0.0 }
 0x245   :  { %v796_v57 = vmax.f32 %v732_v53, 0.0 }
 0x246   :  { %v818_v58 = vpack.c.bf16 %v798_v55, %v797_v54 }
 0x247   :  { %v817_v59 = vpack.c.bf16 %v796_v57, %v795_v56  ;;  %v5033_v60 = vpop.f32.mrb[40].mxu0 }
 0x248   :  { %v753_v61 = vadd.f32 %v5033_v60, %v6150_v38  ;;  %v744_v62 = vpop.f32.mrb[41].mxu0 }
 0x249   :  { %v745_v63 = vadd.f32 %v6150_v38, %v744_v62  ;;  %v5034_v0 = vpop.f32.mrb[42].mxu0  ;;  %5075 = vmatprep.mubr.bf16.mxu1 %v817_v59 }
 0x24a   :  { %v756_v1 = vadd.f32 %v5034_v0, %v6150_v38  ;;  %v747_v2 = vpop.f32.mrb[43].mxu0  ;;  %5076 = vmatmul.mubr.bf16.gmra.mrb[36].mxu1 %v818_v58  ;;  %v801_v4 = vmax.f32 %v753_v61, 0.0 }
 0x24b   :  { %v748_v3 = vadd.f32 %v6150_v38, %v747_v2  ;;  %v799_v6 = vmax.f32 %v745_v63, 0.0 }
 0x24c   :  { %v802_v5 = vmax.f32 %v756_v1, 0.0 }
 0x24d   :  { %v800_v7 = vmax.f32 %v748_v3, 0.0 }
 0x24e   :  { %v820_v8 = vpack.c.bf16 %v802_v5, %v801_v4 }
 0x24f   :  { %v819_v9 = vpack.c.bf16 %v800_v7, %v799_v6  ;;  %v5037_v10 = vpop.f32.mrb[44].mxu0 }
 0x250   :  { %v769_v11 = vadd.f32 %v5037_v10, %v6150_v38  ;;  %v760_v12 = vpop.f32.mrb[45].mxu0 }
 0x251   :  { %v761_v13 = vadd.f32 %v6150_v38, %v760_v12  ;;  %v5038_v14 = vpop.f32.mrb[46].mxu0  ;;  %5079 = vmatprep.mubr.bf16.mxu1 %v819_v9 }
 0x252   :  { %v772_v15 = vadd.f32 %v5038_v14, %v6150_v38  ;;  %v763_v16 = vpop.f32.mrb[47].mxu0  ;;  %5080 = vmatmul.mubr.bf16.gmra.mrb[40].mxu1 %v820_v8  ;;  %v805_v18 = vmax.f32 %v769_v11, 0.0 }
 0x253   :  { %v764_v17 = vadd.f32 %v6150_v38, %v763_v16  ;;  %v803_v20 = vmax.f32 %v761_v13, 0.0  ;;  %v6187_v38 = vld [vmem:[%s6620_s4 + $0x1] ss:$0 sm:$0xff] }
 0x254   :  { %v806_v19 = vmax.f32 %v772_v15, 0.0 }
 0x255   :  { %v804_v21 = vmax.f32 %v764_v17, 0.0 }
 0x256   :  { %v822_v22 = vpack.c.bf16 %v806_v19, %v805_v18 }
 0x257   :  { %v821_v23 = vpack.c.bf16 %v804_v21, %v803_v20 }
 0x259   :  { %5083 = vmatprep.mubr.bf16.mxu1 %v821_v23 }
 0x25a   :  { %5084 = vmatmul.mubr.bf16.gmra.mrb[44].mxu1 %v822_v22 }
 0x25b   :  { %5151 = vmatprep.mubr.bf16.mxu1 %v5882_v24 }
 0x2f5   :  { %v5057_v27 = vpop.f32.mrb[16].mxu1 }
 0x2f6   :  { %v939_v28 = vadd.f32 %v5057_v27, %v6187_v38  ;;  %v930_v29 = vpop.f32.mrb[17].mxu1 }
 0x2f7   :  { %v931_v30 = vadd.f32 %v6187_v38, %v930_v29  ;;  %v5058_v31 = vpop.f32.mrb[18].mxu1 }
 0x2f8   :  { %v942_v32 = vadd.f32 %v5058_v31, %v6187_v38  ;;  %v933_v33 = vpop.f32.mrb[19].mxu1  ;;  %v1059_v35 = vmax.f32 %v939_v28, 0.0 }
 0x2f9   :  { %v934_v34 = vadd.f32 %v6187_v38, %v933_v33  ;;  %v1057_v37 = vmax.f32 %v931_v30, 0.0 }
 0x2fa   :  { %v1060_v36 = vmax.f32 %v942_v32, 0.0 }
 0x2fb   :  { %v1058_v39 = vmax.f32 %v934_v34, 0.0 }
 0x2fc   :  { %v1090_v40 = vpack.c.bf16 %v1060_v36, %v1059_v35 }
 0x2fd   :  { %v1089_v41 = vpack.c.bf16 %v1058_v39, %v1057_v37  ;;  %v5061_v42 = vpop.f32.mrb[20].mxu1 }
 0x2fe   :  { %v955_v43 = vadd.f32 %v5061_v42, %v6187_v38  ;;  %v946_v44 = vpop.f32.mrb[21].mxu1 }
 0x2ff   :  { %v947_v45 = vadd.f32 %v6187_v38, %v946_v44  ;;  %v5062_v46 = vpop.f32.mrb[22].mxu1  ;;  %5103 = vmatprep.mubr.bf16.mxu0 %v1089_v41 }
 0x300   :  { %v958_v47 = vadd.f32 %v5062_v46, %v6187_v38  ;;  %v949_v48 = vpop.f32.mrb[23].mxu1  ;;  %5104 = vmatmul.mubr.bf16.vlgmr.msra.gmra.mrb[48].mxu0 %v1090_v40  ;;  %v1063_v50 = vmax.f32 %v955_v43, 0.0 }
 0x301   :  { %v950_v49 = vadd.f32 %v6187_v38, %v949_v48  ;;  %v1061_v52 = vmax.f32 %v947_v45, 0.0 }
 0x302   :  { %v1064_v51 = vmax.f32 %v958_v47, 0.0 }
 0x303   :  { %v1062_v53 = vmax.f32 %v950_v49, 0.0 }
 0x304   :  { %v1092_v54 = vpack.c.bf16 %v1064_v51, %v1063_v50 }
 0x305   :  { %v1091_v55 = vpack.c.bf16 %v1062_v53, %v1061_v52  ;;  %v5065_v56 = vpop.f32.mrb[24].mxu1 }
 0x306   :  { %v971_v57 = vadd.f32 %v5065_v56, %v6187_v38  ;;  %v962_v58 = vpop.f32.mrb[25].mxu1 }
 0x307   :  { %v963_v59 = vadd.f32 %v6187_v38, %v962_v58  ;;  %v5066_v60 = vpop.f32.mrb[26].mxu1  ;;  %5107 = vmatprep.mubr.bf16.mxu0 %v1091_v55 }
 0x308   :  { %v974_v61 = vadd.f32 %v5066_v60, %v6187_v38  ;;  %v965_v62 = vpop.f32.mrb[27].mxu1  ;;  %5108 = vmatmul.mubr.bf16.gmra.mrb[52].mxu0 %v1092_v54  ;;  %v1067_v0 = vmax.f32 %v971_v57, 0.0 }
 0x309   :  { %v966_v63 = vadd.f32 %v6187_v38, %v965_v62  ;;  %v1065_v2 = vmax.f32 %v963_v59, 0.0 }
 0x30a   :  { %v1068_v1 = vmax.f32 %v974_v61, 0.0 }
 0x30b   :  { %v1066_v3 = vmax.f32 %v966_v63, 0.0 }
 0x30c   :  { %v1094_v4 = vpack.c.bf16 %v1068_v1, %v1067_v0 }
 0x30d   :  { %v1093_v5 = vpack.c.bf16 %v1066_v3, %v1065_v2  ;;  %v5069_v6 = vpop.f32.mrb[28].mxu1 }
 0x30e   :  { %v987_v7 = vadd.f32 %v5069_v6, %v6187_v38  ;;  %v978_v8 = vpop.f32.mrb[29].mxu1 }
 0x30f   :  { %v979_v9 = vadd.f32 %v6187_v38, %v978_v8  ;;  %v5070_v10 = vpop.f32.mrb[30].mxu1  ;;  %5111 = vmatprep.mubr.bf16.mxu0 %v1093_v5 }
 0x310   :  { %v990_v11 = vadd.f32 %v5070_v10, %v6187_v38  ;;  %v981_v12 = vpop.f32.mrb[31].mxu1  ;;  %5112 = vmatmul.mubr.bf16.gmra.mrb[56].mxu0 %v1094_v4  ;;  %v1071_v14 = vmax.f32 %v987_v7, 0.0 }
 0x311   :  { %v982_v13 = vadd.f32 %v6187_v38, %v981_v12  ;;  %v1069_v16 = vmax.f32 %v979_v9, 0.0 }
 0x312   :  { %v1072_v15 = vmax.f32 %v990_v11, 0.0 }
 0x313   :  { %v1070_v17 = vmax.f32 %v982_v13, 0.0  ;;  %v5794_v13 = vld [vmem:[#allocation8 + $0xc0] sm:$0xff]  }
 0x314   :  { %v1096_v18 = vpack.c.bf16 %v1072_v15, %v1071_v14  ;;  %v5795_v14 = vld [vmem:[#allocation8 + $0xc8] sm:$0xff]   ;;  %5199 = vmatprep.subr.bf16.mxu0 %v5794_v13  ;;  %v5796_v15 = vld [vmem:[#allocation8 + $0xd0] sm:$0xff]  }
 0x315   :  { %v1095_v19 = vpack.c.bf16 %v1070_v17, %v1069_v16  ;;  %v5073_v20 = vpop.f32.mrb[32].mxu1  ;;  %5200 = vmatpush3.bf16.msra.mxu0 %v5794_v13  ;;  %v5797_v16 = vld [vmem:[#allocation8 + $0xd8] sm:$0xff]   ;;  %v5799_v17 = vld [vmem:[#allocation8 + $0xe8] sm:$0xff]  }
 0x316   :  { %v1003_v21 = vadd.f32 %v5073_v20, %v6187_v38  ;;  %v994_v22 = vpop.f32.mrb[33].mxu1  ;;  %5201 = vmatprep.subr.bf16.mxu0 %v5795_v14 }
 0x317   :  { %v995_v23 = vadd.f32 %v6187_v38, %v994_v22  ;;  %v5074_v24 = vpop.f32.mrb[34].mxu1  ;;  %5115 = vmatprep.mubr.bf16.mxu0 %v1095_v19  ;;  %v6224_v19 = vld [vmem:[%s6620_s4 + $0x2] ss:$0 sm:$0xff] }
 0x318   :  { %v1006_v25 = vadd.f32 %v5074_v24, %v6187_v38  ;;  %v997_v26 = vpop.f32.mrb[35].mxu1  ;;  %5116 = vmatmul.mubr.bf16.gmra.mrb[60].mxu0 %v1096_v18  ;;  %v1075_v28 = vmax.f32 %v1003_v21, 0.0  ;;  %v5800_v18 = vld [vmem:[#allocation8 + $0xf0] sm:$0xff]  }
 0x319   :  { %v998_v27 = vadd.f32 %v6187_v38, %v997_v26  ;;  %v1073_v30 = vmax.f32 %v995_v23, 0.0  ;;  %5202 = vmatpush3.bf16.msra.mxu0 %v5795_v14 }
 0x31a   :  { %v1076_v29 = vmax.f32 %v1006_v25, 0.0  ;;  %5203 = vmatprep.subr.bf16.mxu0 %v5796_v15 }
 0x31b   :  { %v1074_v31 = vmax.f32 %v998_v27, 0.0 }
 0x31c   :  { %v1098_v32 = vpack.c.bf16 %v1076_v29, %v1075_v28 }
 0x31d   :  { %v1097_v33 = vpack.c.bf16 %v1074_v31, %v1073_v30  ;;  %v5077_v34 = vpop.f32.mrb[36].mxu1  ;;  %5204 = vmatpush3.bf16.msra.mxu0 %v5796_v15 }
 0x31e   :  { %v1019_v35 = vadd.f32 %v5077_v34, %v6187_v38  ;;  %v1010_v36 = vpop.f32.mrb[37].mxu1  ;;  %5205 = vmatprep.subr.bf16.mxu0 %v5797_v16 }
 0x31f   :  { %v1011_v37 = vadd.f32 %v6187_v38, %v1010_v36  ;;  %v5078_v39 = vpop.f32.mrb[38].mxu1  ;;  %5119 = vmatprep.mubr.bf16.mxu0 %v1097_v33 }
 0x320   :  { %v1022_v40 = vadd.f32 %v5078_v39, %v6187_v38  ;;  %v1013_v41 = vpop.f32.mrb[39].mxu1  ;;  %5120 = vmatmul.mubr.bf16.gmra.mrb[64].mxu0 %v1098_v32  ;;  %v1079_v43 = vmax.f32 %v1019_v35, 0.0 }
 0x321   :  { %v1014_v42 = vadd.f32 %v6187_v38, %v1013_v41  ;;  %v1077_v45 = vmax.f32 %v1011_v37, 0.0  ;;  %5206 = vmatpush3.bf16.msra.mxu0 %v5797_v16 }
 0x322   :  { %v1080_v44 = vmax.f32 %v1022_v40, 0.0 }
 0x323   :  { %v1078_v46 = vmax.f32 %v1014_v42, 0.0 }
 0x324   :  { %v1100_v47 = vpack.c.bf16 %v1080_v44, %v1079_v43 }
 0x325   :  { %v1099_v48 = vpack.c.bf16 %v1078_v46, %v1077_v45  ;;  %v5081_v49 = vpop.f32.mrb[40].mxu1 }
 0x326   :  { %v1035_v50 = vadd.f32 %v5081_v49, %v6187_v38  ;;  %v1026_v51 = vpop.f32.mrb[41].mxu1 }
 0x327   :  { %v1027_v52 = vadd.f32 %v6187_v38, %v1026_v51  ;;  %v5082_v53 = vpop.f32.mrb[42].mxu1  ;;  %5123 = vmatprep.mubr.bf16.mxu0 %v1099_v48 }
 0x328   :  { %v1038_v54 = vadd.f32 %v5082_v53, %v6187_v38  ;;  %v1029_v55 = vpop.f32.mrb[43].mxu1  ;;  %5124 = vmatmul.mubr.bf16.gmra.mrb[68].mxu0 %v1100_v47  ;;  %v1083_v57 = vmax.f32 %v1035_v50, 0.0 }
 0x329   :  { %v1030_v56 = vadd.f32 %v6187_v38, %v1029_v55  ;;  %v1081_v59 = vmax.f32 %v1027_v52, 0.0 }
 0x32a   :  { %v1084_v58 = vmax.f32 %v1038_v54, 0.0 }
 0x32b   :  { %v1082_v60 = vmax.f32 %v1030_v56, 0.0 }
 0x32c   :  { %v1102_v61 = vpack.c.bf16 %v1084_v58, %v1083_v57 }
 0x32d   :  { %v1101_v62 = vpack.c.bf16 %v1082_v60, %v1081_v59  ;;  %v5085_v63 = vpop.f32.mrb[44].mxu1 }
 0x32e   :  { %v1051_v0 = vadd.f32 %v5085_v63, %v6187_v38  ;;  %v1042_v1 = vpop.f32.mrb[45].mxu1 }
 0x32f   :  { %v1043_v2 = vadd.f32 %v6187_v38, %v1042_v1  ;;  %v5086_v3 = vpop.f32.mrb[46].mxu1  ;;  %5127 = vmatprep.mubr.bf16.mxu0 %v1101_v62 }
 0x330   :  { %v1054_v4 = vadd.f32 %v5086_v3, %v6187_v38  ;;  %v1045_v5 = vpop.f32.mrb[47].mxu1  ;;  %5128 = vmatmul.mubr.bf16.gmra.mrb[72].mxu0 %v1102_v61  ;;  %v1087_v7 = vmax.f32 %v1051_v0, 0.0 }
 0x331   :  { %v1046_v6 = vadd.f32 %v6187_v38, %v1045_v5  ;;  %v1085_v9 = vmax.f32 %v1043_v2, 0.0  ;;  %v5798_v38 = vld [vmem:[#allocation8 + $0xe0] sm:$0xff]  }
 0x332   :  { %v1088_v8 = vmax.f32 %v1054_v4, 0.0  ;;  %5207 = vmatprep.subr.bf16.mxu0 %v5798_v38 }
 0x333   :  { %v1086_v10 = vmax.f32 %v1046_v6, 0.0  ;;  %5208 = vmatpush3.bf16.msra.mxu0 %v5798_v38 }
 0x334   :  { %v1104_v11 = vpack.c.bf16 %v1088_v8, %v1087_v7  ;;  %5209 = vmatprep.subr.bf16.mxu0 %v5799_v17 }
 0x335   :  { %v1103_v12 = vpack.c.bf16 %v1086_v10, %v1085_v9 }
 0x337   :  { %5131 = vmatprep.mubr.bf16.mxu0 %v1103_v12  ;;  %5210 = vmatpush3.bf16.msra.mxu0 %v5799_v17 }
 0x338   :  { %5132 = vmatmul.mubr.bf16.gmra.mrb[76].mxu0 %v1104_v11  ;;  %5211 = vmatprep.subr.bf16.mxu0 %v5800_v18 }
 0x33b   :  { %5212 = vmatpush3.bf16.msra.mxu0 %v5800_v18 }
 0x3d3   :  { %v5105_v20 = vpop.f32.mrb[48].mxu0 }
 0x3d4   :  { %v1221_v21 = vadd.f32 %v5105_v20, %v6224_v19  ;;  %v1212_v22 = vpop.f32.mrb[49].mxu0 }
 0x3d5   :  { %v1213_v23 = vadd.f32 %v6224_v19, %v1212_v22  ;;  %v5106_v24 = vpop.f32.mrb[50].mxu0 }
 0x3d6   :  { %v1224_v25 = vadd.f32 %v5106_v24, %v6224_v19  ;;  %v1215_v26 = vpop.f32.mrb[51].mxu0  ;;  %v1341_v28 = vmax.f32 %v1221_v21, 0.0 }
 0x3d7   :  { %v1216_v27 = vadd.f32 %v6224_v19, %v1215_v26  ;;  %v1339_v30 = vmax.f32 %v1213_v23, 0.0 }
 0x3d8   :  { %v1342_v29 = vmax.f32 %v1224_v25, 0.0 }
 0x3d9   :  { %v1340_v31 = vmax.f32 %v1216_v27, 0.0 }
 0x3da   :  { %v1372_v32 = vpack.c.bf16 %v1342_v29, %v1341_v28 }
 0x3db   :  { %v1371_v33 = vpack.c.bf16 %v1340_v31, %v1339_v30  ;;  %v5109_v34 = vpop.f32.mrb[52].mxu0 }
 0x3dc   :  { %v1237_v35 = vadd.f32 %v5109_v34, %v6224_v19  ;;  %v1228_v36 = vpop.f32.mrb[53].mxu0 }
 0x3dd   :  { %v1229_v37 = vadd.f32 %v6224_v19, %v1228_v36  ;;  %v5110_v39 = vpop.f32.mrb[54].mxu0  ;;  %5135 = vmatprep.subr.bf16.mxu1 %v1371_v33 }
 0x3de   :  { %v1240_v40 = vadd.f32 %v5110_v39, %v6224_v19  ;;  %v1231_v41 = vpop.f32.mrb[55].mxu0  ;;  %5136 = vmatpush3.bf16.msra.mxu1 %v1371_v33  ;;  %v1345_v43 = vmax.f32 %v1237_v35, 0.0  ;;  %v5884_v35 = vld [vmem:[#allocation2 + $0x10] sm:$0xff]  }
 0x3df   :  { %v1232_v42 = vadd.f32 %v6224_v19, %v1231_v41  ;;  %5137 = vmatprep.subr.bf16.mxu1 %v1372_v32  ;;  %v1343_v45 = vmax.f32 %v1229_v37, 0.0 }
 0x3e0   :  { %v1346_v44 = vmax.f32 %v1240_v40, 0.0 }
 0x3e1   :  { %v1344_v46 = vmax.f32 %v1232_v42, 0.0 }
 0x3e2   :  { %v1374_v47 = vpack.c.bf16 %v1346_v44, %v1345_v43  ;;  %5138 = vmatpush3.bf16.msra.mxu1 %v1372_v32  ;;  %v5883_v32 = vld [vmem:[#allocation2 + $0x8] sm:$0xff]  }
 0x3e3   :  { %v1373_v48 = vpack.c.bf16 %v1344_v46, %v1343_v45  ;;  %v5113_v49 = vpop.f32.mrb[56].mxu0 }
 0x3e4   :  { %v1253_v50 = vadd.f32 %v5113_v49, %v6224_v19  ;;  %v1244_v51 = vpop.f32.mrb[57].mxu0  ;;  %v5885_v49 = vld [vmem:[#allocation2 + $0x18] sm:$0xff]  }
 0x3e5   :  { %v1245_v52 = vadd.f32 %v6224_v19, %v1244_v51  ;;  %v5114_v53 = vpop.f32.mrb[58].mxu0  ;;  %5139 = vmatprep.subr.bf16.mxu1 %v1373_v48 }
 0x3e6   :  { %v1256_v54 = vadd.f32 %v5114_v53, %v6224_v19  ;;  %v1247_v55 = vpop.f32.mrb[59].mxu0  ;;  %5140 = vmatpush3.bf16.msra.mxu1 %v1373_v48  ;;  %v1349_v57 = vmax.f32 %v1253_v50, 0.0 }
 0x3e7   :  { %v1248_v56 = vadd.f32 %v6224_v19, %v1247_v55  ;;  %5141 = vmatprep.subr.bf16.mxu1 %v1374_v47  ;;  %v1347_v59 = vmax.f32 %v1245_v52, 0.0  ;;  %v5886_v52 = vld [vmem:[#allocation2 + $0x20] sm:$0xff]  }
 0x3e8   :  { %v1350_v58 = vmax.f32 %v1256_v54, 0.0 }
 0x3e9   :  { %v1348_v60 = vmax.f32 %v1248_v56, 0.0 }
 0x3ea   :  { %v1376_v61 = vpack.c.bf16 %v1350_v58, %v1349_v57  ;;  %5142 = vmatpush3.bf16.msra.mxu1 %v1374_v47 }
 0x3eb   :  { %v1375_v62 = vpack.c.bf16 %v1348_v60, %v1347_v59  ;;  %v5117_v63 = vpop.f32.mrb[60].mxu0 }
 0x3ec   :  { %v1269_v0 = vadd.f32 %v5117_v63, %v6224_v19  ;;  %v1260_v1 = vpop.f32.mrb[61].mxu0 }
 0x3ed   :  { %v1261_v2 = vadd.f32 %v6224_v19, %v1260_v1  ;;  %v5118_v3 = vpop.f32.mrb[62].mxu0  ;;  %5143 = vmatprep.subr.bf16.mxu1 %v1375_v62  ;;  %v5887_v1 = vld [vmem:[#allocation2 + $0x28] sm:$0xff]  }
 0x3ee   :  { %v1272_v4 = vadd.f32 %v5118_v3, %v6224_v19  ;;  %v1263_v5 = vpop.f32.mrb[63].mxu0  ;;  %5144 = vmatpush3.bf16.msra.mxu1 %v1375_v62  ;;  %v1353_v7 = vmax.f32 %v1269_v0, 0.0 }
 0x3ef   :  { %v1264_v6 = vadd.f32 %v6224_v19, %v1263_v5  ;;  %5145 = vmatprep.subr.bf16.mxu1 %v1376_v61  ;;  %v1351_v9 = vmax.f32 %v1261_v2, 0.0 }
 0x3f0   :  { %v1354_v8 = vmax.f32 %v1272_v4, 0.0  ;;  %v5888_v4 = vld [vmem:[#allocation2 + $0x30] sm:$0xff]  }
 0x3f1   :  { %v1352_v10 = vmax.f32 %v1264_v6, 0.0 }
 0x3f2   :  { %v1378_v11 = vpack.c.bf16 %v1354_v8, %v1353_v7  ;;  %5146 = vmatpush3.bf16.msra.mxu1 %v1376_v61 }
 0x3f3   :  { %v1377_v12 = vpack.c.bf16 %v1352_v10, %v1351_v9  ;;  %v5121_v13 = vpop.f32.mrb[64].mxu0 }
 0x3f4   :  { %v1285_v14 = vadd.f32 %v5121_v13, %v6224_v19  ;;  %v1276_v15 = vpop.f32.mrb[65].mxu0  ;;  %v5890_v13 = vld [vmem:[#allocation2 + $0x40] sm:$0xff]  }
 0x3f5   :  { %v1277_v16 = vadd.f32 %v6224_v19, %v1276_v15  ;;  %v5122_v38 = vpop.f32.mrb[66].mxu0  ;;  %5147 = vmatprep.subr.bf16.mxu1 %v1377_v12  ;;  %v5892_v15 = vld [vmem:[#allocation2 + $0x50] sm:$0xff]  }
 0x3f6   :  { %v1288_v17 = vadd.f32 %v5122_v38, %v6224_v19  ;;  %v1279_v18 = vpop.f32.mrb[67].mxu0  ;;  %5148 = vmatpush3.bf16.msra.mxu1 %v1377_v12  ;;  %v1357_v21 = vmax.f32 %v1285_v14, 0.0  ;;  %v5889_v12 = vld [vmem:[#allocation2 + $0x38] sm:$0xff]   ;;  %v5891_v14 = vld [vmem:[#allocation2 + $0x48] sm:$0xff]  }
 0x3f7   :  { %v1280_v20 = vadd.f32 %v6224_v19, %v1279_v18  ;;  %5149 = vmatprep.subr.bf16.mxu1 %v1378_v11  ;;  %v1355_v23 = vmax.f32 %v1277_v16, 0.0  ;;  %v5894_v16 = vld [vmem:[#allocation2 + $0x60] sm:$0xff]   ;;  %v5895_v38 = vld [vmem:[#allocation2 + $0x68] sm:$0xff]   ;;  %v5897_v18 = vld [vmem:[#allocation2 + $0x78] sm:$0xff]  }
 0x3f8   :  { %v1358_v22 = vmax.f32 %v1288_v17, 0.0  ;;  %v5896_v17 = vld [vmem:[#allocation2 + $0x70] sm:$0xff]  }
 0x3f9   :  { %v1356_v24 = vmax.f32 %v1280_v20, 0.0  ;;  %v5801_v20 = vld [vmem:[#allocation8 + $0xf8] sm:$0xff]  }
 0x3fa   :  { %v1380_v25 = vpack.c.bf16 %v1358_v22, %v1357_v21  ;;  %5150 = vmatpush3.bf16.msra.mxu1 %v1378_v11  ;;  %5213 = vmatprep.subr.bf16.mxu0 %v5801_v20  ;;  %v5802_v21 = vld [vmem:[#allocation8 + $0x100] sm:$0xff]   ;;  %v5803_v22 = vld [vmem:[#allocation8 + $0x108] sm:$0xff]  }
 0x3fb   :  { %v1379_v26 = vpack.c.bf16 %v1356_v24, %v1355_v23  ;;  %v5125_v27 = vpop.f32.mrb[68].mxu0  ;;  %5214 = vmatpush3.bf16.msra.mxu0 %v5801_v20  ;;  %v5804_v23 = vld [vmem:[#allocation8 + $0x110] sm:$0xff]   ;;  %v5805_v24 = vld [vmem:[#allocation8 + $0x118] sm:$0xff]  }
 0x3fc   :  { %v1301_v28 = vadd.f32 %v5125_v27, %v6224_v19  ;;  %v1292_v29 = vpop.f32.mrb[69].mxu0 }
 0x3fd   :  { %v1293_v30 = vadd.f32 %v6224_v19, %v1292_v29  ;;  %v5126_v31 = vpop.f32.mrb[70].mxu0  ;;  %5152 = vmatmul.mubr.bf16.vlgmr.msra.gmra.mrb[48].mxu1 %v5883_v32  ;;  %5167 = vmatprep.subr.bf16.mxu1 %v1379_v26 }
 0x3fe   :  { %v1304_v33 = vadd.f32 %v5126_v31, %v6224_v19  ;;  %v1295_v34 = vpop.f32.mrb[71].mxu0  ;;  %5168 = vmatpush3.bf16.msra.mxu1 %v1379_v26  ;;  %5155 = vmatprep.mubr.bf16.mxu1 %v5884_v35  ;;  %v1361_v37 = vmax.f32 %v1301_v28, 0.0  ;;  %v5807_v26 = vld [vmem:[#allocation8 + $0x128] sm:$0xff]  }
 0x3ff   :  { %v1296_v36 = vadd.f32 %v6224_v19, %v1295_v34  ;;  %5169 = vmatprep.subr.bf16.mxu1 %v1380_v25  ;;  %v1359_v40 = vmax.f32 %v1293_v30, 0.0 }
 0x400   :  { %v1362_v39 = vmax.f32 %v1304_v33, 0.0 }
 0x401   :  { %v1360_v41 = vmax.f32 %v1296_v36, 0.0 }
 0x402   :  { %v1382_v42 = vpack.c.bf16 %v1362_v39, %v1361_v37  ;;  %5170 = vmatpush3.bf16.msra.mxu1 %v1380_v25  ;;  %v5806_v25 = vld [vmem:[#allocation8 + $0x120] sm:$0xff]  }
 0x403   :  { %v1381_v43 = vpack.c.bf16 %v1360_v41, %v1359_v40  ;;  %v5129_v44 = vpop.f32.mrb[72].mxu0 }
 0x404   :  { %v1317_v45 = vadd.f32 %v5129_v44, %v6224_v19  ;;  %v1308_v46 = vpop.f32.mrb[73].mxu0 }
 0x405   :  { %v1309_v47 = vadd.f32 %v6224_v19, %v1308_v46  ;;  %v5130_v48 = vpop.f32.mrb[74].mxu0  ;;  %5156 = vmatmul.mubr.bf16.gmra.mrb[52].mxu1 %v5885_v49  ;;  %5171 = vmatprep.subr.bf16.mxu1 %v1381_v43 }
 0x406   :  { %v1320_v50 = vadd.f32 %v5130_v48, %v6224_v19  ;;  %v1311_v51 = vpop.f32.mrb[75].mxu0  ;;  %5172 = vmatpush3.bf16.msra.mxu1 %v1381_v43  ;;  %5159 = vmatprep.mubr.bf16.mxu1 %v5886_v52  ;;  %v1365_v54 = vmax.f32 %v1317_v45, 0.0 }
 0x407   :  { %v1312_v53 = vadd.f32 %v6224_v19, %v1311_v51  ;;  %5173 = vmatprep.subr.bf16.mxu1 %v1382_v42  ;;  %v1363_v56 = vmax.f32 %v1309_v47, 0.0 }
 0x408   :  { %v1366_v55 = vmax.f32 %v1320_v50, 0.0 }
 0x409   :  { %v1364_v57 = vmax.f32 %v1312_v53, 0.0 }
 0x40a   :  { %v1384_v58 = vpack.c.bf16 %v1366_v55, %v1365_v54  ;;  %5174 = vmatpush3.bf16.msra.mxu1 %v1382_v42 }
 0x40b   :  { %v1383_v59 = vpack.c.bf16 %v1364_v57, %v1363_v56  ;;  %v5133_v60 = vpop.f32.mrb[76].mxu0 }
 0x40c   :  { %v1333_v61 = vadd.f32 %v5133_v60, %v6224_v19  ;;  %v1324_v62 = vpop.f32.mrb[77].mxu0 }
 0x40d   :  { %v1325_v63 = vadd.f32 %v6224_v19, %v1324_v62  ;;  %v5134_v0 = vpop.f32.mrb[78].mxu0  ;;  %5160 = vmatmul.mubr.bf16.gmra.mrb[56].mxu1 %v5887_v1  ;;  %5175 = vmatprep.subr.bf16.mxu1 %v1383_v59 }
 0x40e   :  { %v1336_v2 = vadd.f32 %v5134_v0, %v6224_v19  ;;  %v1327_v3 = vpop.f32.mrb[79].mxu0  ;;  %5176 = vmatpush3.bf16.msra.mxu1 %v1383_v59  ;;  %5163 = vmatprep.mubr.bf16.mxu1 %v5888_v4  ;;  %v1369_v6 = vmax.f32 %v1333_v61, 0.0 }
 0x40f   :  { %v1328_v5 = vadd.f32 %v6224_v19, %v1327_v3  ;;  %5177 = vmatprep.subr.bf16.mxu1 %v1384_v58  ;;  %v1367_v8 = vmax.f32 %v1325_v63, 0.0  ;;  %v5893_v19 = vld [vmem:[#allocation2 + $0x58] sm:$0xff]  }
 0x410   :  { %v1370_v7 = vmax.f32 %v1336_v2, 0.0 }
 0x411   :  { %v1368_v9 = vmax.f32 %v1328_v5, 0.0 }
 0x412   :  { %v1386_v10 = vpack.c.bf16 %v1370_v7, %v1369_v6  ;;  %5178 = vmatpush3.bf16.msra.mxu1 %v1384_v58 }
 0x413   :  { %v1385_v11 = vpack.c.bf16 %v1368_v9, %v1367_v8 }
 0x415   :  { %5164 = vmatmul.mubr.bf16.gmra.mrb[60].mxu1 %v5889_v12  ;;  %5179 = vmatprep.subr.bf16.mxu1 %v1385_v11  ;;  %v5808_v12 = vld [vmem:[#allocation8 + $0x130] sm:$0xff]  }
 0x416   :  { %5180 = vmatpush3.bf16.msra.mxu1 %v1385_v11  ;;  %5183 = vmatprep.mubr.bf16.mxu1 %v5890_v13  ;;  %v5809_v13 = vld [vmem:[#allocation8 + $0x138] sm:$0xff]  }
 0x417   :  { %5181 = vmatprep.subr.bf16.mxu1 %v1386_v10 }
 0x41a   :  { %5182 = vmatpush3.bf16.msra.mxu1 %v1386_v10 }
 0x41b   :  { %5247 = vmatprep.subr.bf16.mxu1 %v5802_v21 }
 0x41d   :  { %5184 = vmatmul.mubr.bf16.vlgmr.msra.gmra.mrb[64].mxu1 %v5891_v14  ;;  %v5810_v14 = vld [vmem:[#allocation8 + $0x140] sm:$0xff]  }
 0x41e   :  { %5187 = vmatprep.mubr.bf16.mxu1 %v5892_v15  ;;  %5248 = vmatpush3.bf16.msra.mxu1 %v5802_v21  ;;  %v5811_v15 = vld [vmem:[#allocation8 + $0x148] sm:$0xff]  }
 0x41f   :  { %5249 = vmatprep.subr.bf16.mxu1 %v5803_v22  ;;  %5295 = vmatprep.subr.bf16.mxu0 %v5810_v14 }
 0x422   :  { %5250 = vmatpush3.bf16.msra.mxu1 %v5803_v22 }
 0x423   :  { %5251 = vmatprep.subr.bf16.mxu1 %v5804_v23 }
 0x425   :  { %5188 = vmatmul.mubr.bf16.gmra.mrb[68].mxu1 %v5893_v19  ;;  %v5812_v19 = vld [vmem:[#allocation8 + $0x150] sm:$0xff]  }
 0x426   :  { %5191 = vmatprep.mubr.bf16.mxu1 %v5894_v16  ;;  %5252 = vmatpush3.bf16.msra.mxu1 %v5804_v23  ;;  %v5813_v16 = vld [vmem:[#allocation8 + $0x158] sm:$0xff]  }
 0x427   :  { %5253 = vmatprep.subr.bf16.mxu1 %v5805_v24 }
 0x42a   :  { %5254 = vmatpush3.bf16.msra.mxu1 %v5805_v24 }
 0x42b   :  { %5255 = vmatprep.subr.bf16.mxu1 %v5806_v25 }
 0x42d   :  { %5192 = vmatmul.mubr.bf16.gmra.mrb[72].mxu1 %v5895_v38  ;;  %v5814_v38 = vld [vmem:[#allocation8 + $0x160] sm:$0xff]  }
 0x42e   :  { %5195 = vmatprep.mubr.bf16.mxu1 %v5896_v17  ;;  %5256 = vmatpush3.bf16.msra.mxu1 %v5806_v25  ;;  %v5815_v17 = vld [vmem:[#allocation8 + $0x168] sm:$0xff]  }
 0x42f   :  { %5257 = vmatprep.subr.bf16.mxu1 %v5807_v26 }
 0x432   :  { %5258 = vmatpush3.bf16.msra.mxu1 %v5807_v26 }
 0x433   :  { %5259 = vmatprep.subr.bf16.mxu1 %v5808_v12 }
 0x435   :  { %5196 = vmatmul.mubr.bf16.gmra.mrb[76].mxu1 %v5897_v18  ;;  %v6261_v18 = vld [vmem:[%s6620_s4 + $0x3] ss:$0 sm:$0xff] }
 0x436   :  { %5260 = vmatpush3.bf16.msra.mxu1 %v5808_v12 }
 0x437   :  { %5261 = vmatprep.subr.bf16.mxu1 %v5809_v13 }
 0x43a   :  { %5262 = vmatpush3.bf16.msra.mxu1 %v5809_v13 }
 0x4d0   :  { %v5153_v27 = vpop.f32.mrb[48].mxu1 }
 0x4d1   :  { %v1421_v28 = vpop.f32.mrb[49].mxu1 }
 0x4d2   :  { %v5154_v29 = vpop.f32.mrb[50].mxu1 }
 0x4d3   :  { %v1582_v30 = vpack.c.bf16 %v5154_v29, %v5153_v27  ;;  %v1424_v31 = vpop.f32.mrb[51].mxu1 }
 0x4d4   :  { %v1581_v32 = vpack.c.bf16 %v1424_v31, %v1421_v28 }
 0x4d6   :  { %5215 = vmatprep.mubr.bf16.mxu0 %v1581_v32 }
 0x4d7   :  { %5216 = vmatmul.mubr.bf16.vlgmr.msra.gmra.mrb[80].mxu0 %v1582_v30 }
 0x4d8   :  { %v5157_v33 = vpop.f32.mrb[52].mxu1  ;;  %5296 = vmatpush3.bf16.msra.mxu0 %v5810_v14 }
 0x4d9   :  { %v1437_v34 = vpop.f32.mrb[53].mxu1  ;;  %5297 = vmatprep.subr.bf16.mxu0 %v5811_v15 }
 0x4da   :  { %v5158_v35 = vpop.f32.mrb[54].mxu1 }
 0x4db   :  { %v1584_v36 = vpack.c.bf16 %v5158_v35, %v5157_v33  ;;  %v1440_v37 = vpop.f32.mrb[55].mxu1 }
 0x4dc   :  { %v1583_v39 = vpack.c.bf16 %v1440_v37, %v1437_v34  ;;  %5298 = vmatpush3.bf16.msra.mxu0 %v5811_v15 }
 0x4dd   :  { %5299 = vmatprep.subr.bf16.mxu0 %v5812_v19 }
 0x4de   :  { %5219 = vmatprep.mubr.bf16.mxu0 %v1583_v39 }
 0x4df   :  { %5220 = vmatmul.mubr.bf16.gmra.mrb[84].mxu0 %v1584_v36 }
 0x4e0   :  { %v5161_v40 = vpop.f32.mrb[56].mxu1  ;;  %5300 = vmatpush3.bf16.msra.mxu0 %v5812_v19 }
 0x4e1   :  { %v1453_v41 = vpop.f32.mrb[57].mxu1  ;;  %5301 = vmatprep.subr.bf16.mxu0 %v5813_v16 }
 0x4e2   :  { %v5162_v42 = vpop.f32.mrb[58].mxu1 }
 0x4e3   :  { %v1586_v43 = vpack.c.bf16 %v5162_v42, %v5161_v40  ;;  %v1456_v44 = vpop.f32.mrb[59].mxu1 }
 0x4e4   :  { %v1585_v45 = vpack.c.bf16 %v1456_v44, %v1453_v41  ;;  %5302 = vmatpush3.bf16.msra.mxu0 %v5813_v16 }
 0x4e5   :  { %5303 = vmatprep.subr.bf16.mxu0 %v5814_v38 }
 0x4e6   :  { %5223 = vmatprep.mubr.bf16.mxu0 %v1585_v45 }
 0x4e7   :  { %5224 = vmatmul.mubr.bf16.gmra.mrb[88].mxu0 %v1586_v43 }
 0x4e8   :  { %v5165_v46 = vpop.f32.mrb[60].mxu1  ;;  %5304 = vmatpush3.bf16.msra.mxu0 %v5814_v38 }
 0x4e9   :  { %v1469_v47 = vpop.f32.mrb[61].mxu1  ;;  %5305 = vmatprep.subr.bf16.mxu0 %v5815_v17 }
 0x4ea   :  { %v5166_v48 = vpop.f32.mrb[62].mxu1 }
 0x4eb   :  { %v1588_v49 = vpack.c.bf16 %v5166_v48, %v5165_v46  ;;  %v1472_v50 = vpop.f32.mrb[63].mxu1 }
 0x4ec   :  { %v1587_v51 = vpack.c.bf16 %v1472_v50, %v1469_v47  ;;  %5306 = vmatpush3.bf16.msra.mxu0 %v5815_v17 }
 0x4ee   :  { %5227 = vmatprep.mubr.bf16.mxu0 %v1587_v51 }
 0x4ef   :  { %5228 = vmatmul.mubr.bf16.gmra.mrb[92].mxu0 %v1588_v49 }
 0x4f0   :  { %v5185_v52 = vpop.f32.mrb[64].mxu1 }
 0x4f1   :  { %v1518_v53 = vpop.f32.mrb[65].mxu1 }
 0x4f2   :  { %v5186_v54 = vpop.f32.mrb[66].mxu1 }
 0x4f3   :  { %v1590_v55 = vpack.c.bf16 %v5186_v54, %v5185_v52  ;;  %v1521_v56 = vpop.f32.mrb[67].mxu1 }
 0x4f4   :  { %v1589_v57 = vpack.c.bf16 %v1521_v56, %v1518_v53 }
 0x4f6   :  { %5231 = vmatprep.mubr.bf16.mxu0 %v1589_v57 }
 0x4f7   :  { %5232 = vmatmul.mubr.bf16.gmra.mrb[96].mxu0 %v1590_v55 }
 0x4f8   :  { %v5189_v58 = vpop.f32.mrb[68].mxu1 }
 0x4f9   :  { %v1534_v59 = vpop.f32.mrb[69].mxu1 }
 0x4fa   :  { %v5190_v60 = vpop.f32.mrb[70].mxu1 }
 0x4fb   :  { %v1592_v61 = vpack.c.bf16 %v5190_v60, %v5189_v58  ;;  %v1537_v62 = vpop.f32.mrb[71].mxu1 }
 0x4fc   :  { %v1591_v63 = vpack.c.bf16 %v1537_v62, %v1534_v59 }
 0x4fe   :  { %5235 = vmatprep.mubr.bf16.mxu0 %v1591_v63 }
 0x4ff   :  { %5236 = vmatmul.mubr.bf16.gmra.mrb[100].mxu0 %v1592_v61 }
 0x500   :  { %v5193_v0 = vpop.f32.mrb[72].mxu1 }
 0x501   :  { %v1550_v1 = vpop.f32.mrb[73].mxu1 }
 0x502   :  { %v5194_v2 = vpop.f32.mrb[74].mxu1 }
 0x503   :  { %v1594_v3 = vpack.c.bf16 %v5194_v2, %v5193_v0  ;;  %v1553_v4 = vpop.f32.mrb[75].mxu1 }
 0x504   :  { %v1593_v5 = vpack.c.bf16 %v1553_v4, %v1550_v1 }
 0x506   :  { %5239 = vmatprep.mubr.bf16.mxu0 %v1593_v5 }
 0x507   :  { %5240 = vmatmul.mubr.bf16.gmra.mrb[104].mxu0 %v1594_v3 }
 0x508   :  { %v5197_v6 = vpop.f32.mrb[76].mxu1 }
 0x509   :  { %v1566_v7 = vpop.f32.mrb[77].mxu1 }
 0x50a   :  { %v5198_v8 = vpop.f32.mrb[78].mxu1 }
 0x50b   :  { %v1596_v9 = vpack.c.bf16 %v5198_v8, %v5197_v6  ;;  %v1569_v10 = vpop.f32.mrb[79].mxu1 }
 0x50c   :  { %v1595_v11 = vpack.c.bf16 %v1569_v10, %v1566_v7 }
 0x50e   :  { %5243 = vmatprep.mubr.bf16.mxu0 %v1595_v11 }
 0x50f   :  { %5244 = vmatmul.mubr.bf16.gmra.mrb[108].mxu0 %v1596_v9 }
 0x5aa   :  { %v5217_v20 = vpop.f32.mrb[80].mxu0 }
 0x5ab   :  { %v1713_v21 = vadd.f32 %v5217_v20, %v6261_v18  ;;  %v1704_v22 = vpop.f32.mrb[81].mxu0 }
 0x5ac   :  { %v1705_v23 = vadd.f32 %v6261_v18, %v1704_v22  ;;  %v5218_v24 = vpop.f32.mrb[82].mxu0 }
 0x5ad   :  { %v1716_v25 = vadd.f32 %v5218_v24, %v6261_v18  ;;  %v1707_v26 = vpop.f32.mrb[83].mxu0  ;;  %v1833_v28 = vmax.f32 %v1713_v21, 0.0 }
 0x5ae   :  { %v1708_v27 = vadd.f32 %v6261_v18, %v1707_v26  ;;  %v1831_v30 = vmax.f32 %v1705_v23, 0.0 }
 0x5af   :  { %v1834_v29 = vmax.f32 %v1716_v25, 0.0 }
 0x5b0   :  { %v1832_v31 = vmax.f32 %v1708_v27, 0.0 }
 0x5b1   :  { %v1864_v32 = vpack.c.bf16 %v1834_v29, %v1833_v28 }
 0x5b2   :  { %v1863_v33 = vpack.c.bf16 %v1832_v31, %v1831_v30  ;;  %v5221_v34 = vpop.f32.mrb[84].mxu0 }
 0x5b3   :  { %v1729_v35 = vadd.f32 %v5221_v34, %v6261_v18  ;;  %v1720_v36 = vpop.f32.mrb[85].mxu0 }
 0x5b4   :  { %v1721_v37 = vadd.f32 %v6261_v18, %v1720_v36  ;;  %v5222_v39 = vpop.f32.mrb[86].mxu0  ;;  %5263 = vmatprep.mubr.bf16.mxu1 %v1863_v33 }
 0x5b5   :  { %v1732_v40 = vadd.f32 %v5222_v39, %v6261_v18  ;;  %v1723_v41 = vpop.f32.mrb[87].mxu0  ;;  %5264 = vmatmul.mubr.bf16.vlgmr.msra.gmra.mrb[80].mxu1 %v1864_v32  ;;  %v1837_v43 = vmax.f32 %v1729_v35, 0.0 }
 0x5b6   :  { %v1724_v42 = vadd.f32 %v6261_v18, %v1723_v41  ;;  %v1835_v45 = vmax.f32 %v1721_v37, 0.0 }
 0x5b7   :  { %v1838_v44 = vmax.f32 %v1732_v40, 0.0 }
 0x5b8   :  { %v1836_v46 = vmax.f32 %v1724_v42, 0.0 }
 0x5b9   :  { %v1866_v47 = vpack.c.bf16 %v1838_v44, %v1837_v43 }
 0x5ba   :  { %v1865_v48 = vpack.c.bf16 %v1836_v46, %v1835_v45  ;;  %v5225_v49 = vpop.f32.mrb[88].mxu0 }
 0x5bb   :  { %v1745_v50 = vadd.f32 %v5225_v49, %v6261_v18  ;;  %v1736_v51 = vpop.f32.mrb[89].mxu0 }
 0x5bc   :  { %v1737_v52 = vadd.f32 %v6261_v18, %v1736_v51  ;;  %v5226_v53 = vpop.f32.mrb[90].mxu0  ;;  %5267 = vmatprep.mubr.bf16.mxu1 %v1865_v48 }
 0x5bd   :  { %v1748_v54 = vadd.f32 %v5226_v53, %v6261_v18  ;;  %v1739_v55 = vpop.f32.mrb[91].mxu0  ;;  %5268 = vmatmul.mubr.bf16.gmra.mrb[84].mxu1 %v1866_v47  ;;  %v1841_v57 = vmax.f32 %v1745_v50, 0.0 }
 0x5be   :  { %v1740_v56 = vadd.f32 %v6261_v18, %v1739_v55  ;;  %v1839_v59 = vmax.f32 %v1737_v52, 0.0 }
 0x5bf   :  { %v1842_v58 = vmax.f32 %v1748_v54, 0.0 }
 0x5c0   :  { %v1840_v60 = vmax.f32 %v1740_v56, 0.0 }
 0x5c1   :  { %v1868_v61 = vpack.c.bf16 %v1842_v58, %v1841_v57 }
 0x5c2   :  { %v1867_v62 = vpack.c.bf16 %v1840_v60, %v1839_v59  ;;  %v5229_v63 = vpop.f32.mrb[92].mxu0 }
 0x5c3   :  { %v1761_v0 = vadd.f32 %v5229_v63, %v6261_v18  ;;  %v1752_v1 = vpop.f32.mrb[93].mxu0 }
 0x5c4   :  { %v1753_v2 = vadd.f32 %v6261_v18, %v1752_v1  ;;  %v5230_v3 = vpop.f32.mrb[94].mxu0  ;;  %5271 = vmatprep.mubr.bf16.mxu1 %v1867_v62 }
 0x5c5   :  { %v1764_v4 = vadd.f32 %v5230_v3, %v6261_v18  ;;  %v1755_v5 = vpop.f32.mrb[95].mxu0  ;;  %5272 = vmatmul.mubr.bf16.gmra.mrb[88].mxu1 %v1868_v61  ;;  %v1845_v7 = vmax.f32 %v1761_v0, 0.0 }
 0x5c6   :  { %v1756_v6 = vadd.f32 %v6261_v18, %v1755_v5  ;;  %v1843_v9 = vmax.f32 %v1753_v2, 0.0 }
 0x5c7   :  { %v1846_v8 = vmax.f32 %v1764_v4, 0.0 }
 0x5c8   :  { %v1844_v10 = vmax.f32 %v1756_v6, 0.0  ;;  %v5816_v6 = vld [vmem:[#allocation8 + $0x170] sm:$0xff]  }
 0x5c9   :  { %v1870_v11 = vpack.c.bf16 %v1846_v8, %v1845_v7  ;;  %5307 = vmatprep.subr.bf16.mxu0 %v5816_v6  ;;  %v5817_v7 = vld [vmem:[#allocation8 + $0x178] sm:$0xff]   ;;  %v5818_v8 = vld [vmem:[#allocation8 + $0x180] sm:$0xff]  }
 0x5ca   :  { %v1869_v12 = vpack.c.bf16 %v1844_v10, %v1843_v9  ;;  %v5233_v13 = vpop.f32.mrb[96].mxu0  ;;  %5308 = vmatpush3.bf16.msra.mxu0 %v5816_v6  ;;  %v5819_v9 = vld [vmem:[#allocation8 + $0x188] sm:$0xff]   ;;  %5343 = vmatprep.subr.bf16.mxu1 %v5818_v8  ;;  %v5821_v10 = vld [vmem:[#allocation8 + $0x198] sm:$0xff]  }
 0x5cb   :  { %v1777_v14 = vadd.f32 %v5233_v13, %v6261_v18  ;;  %v1768_v15 = vpop.f32.mrb[97].mxu0  ;;  %5309 = vmatprep.subr.bf16.mxu0 %v5817_v7  ;;  %5344 = vmatpush3.bf16.msra.mxu1 %v5818_v8  ;;  %v6298_v13 = vld [vmem:[%s6620_s4 + $0x4] ss:$0 sm:$0xff] }
 0x5cc   :  { %v1769_v19 = vadd.f32 %v6261_v18, %v1768_v15  ;;  %v5234_v16 = vpop.f32.mrb[98].mxu0  ;;  %5275 = vmatprep.mubr.bf16.mxu1 %v1869_v12  ;;  %5345 = vmatprep.subr.bf16.mxu1 %v5819_v9  ;;  %v5823_v12 = vld [vmem:[#allocation8 + $0x1a8] sm:$0xff]  }
 0x5cd   :  { %v1780_v38 = vadd.f32 %v5234_v16, %v6261_v18  ;;  %v1771_v17 = vpop.f32.mrb[99].mxu0  ;;  %5276 = vmatmul.mubr.bf16.gmra.mrb[92].mxu1 %v1870_v11  ;;  %v1849_v21 = vmax.f32 %v1777_v14, 0.0  ;;  %v5822_v11 = vld [vmem:[#allocation8 + $0x1a0] sm:$0xff]  }
 0x5ce   :  { %v1772_v20 = vadd.f32 %v6261_v18, %v1771_v17  ;;  %v1847_v23 = vmax.f32 %v1769_v19, 0.0  ;;  %5310 = vmatpush3.bf16.msra.mxu0 %v5817_v7 }
 0x5cf   :  { %v1850_v22 = vmax.f32 %v1780_v38, 0.0  ;;  %5346 = vmatpush3.bf16.msra.mxu1 %v5819_v9 }
 0x5d0   :  { %v1848_v24 = vmax.f32 %v1772_v20, 0.0 }
 0x5d1   :  { %v1872_v25 = vpack.c.bf16 %v1850_v22, %v1849_v21 }
 0x5d2   :  { %v1871_v26 = vpack.c.bf16 %v1848_v24, %v1847_v23  ;;  %v5237_v27 = vpop.f32.mrb[100].mxu0 }
 0x5d3   :  { %v1793_v28 = vadd.f32 %v5237_v27, %v6261_v18  ;;  %v1784_v29 = vpop.f32.mrb[101].mxu0 }
 0x5d4   :  { %v1785_v30 = vadd.f32 %v6261_v18, %v1784_v29  ;;  %v5238_v31 = vpop.f32.mrb[102].mxu0  ;;  %5279 = vmatprep.mubr.bf16.mxu1 %v1871_v26 }
 0x5d5   :  { %v1796_v32 = vadd.f32 %v5238_v31, %v6261_v18  ;;  %v1787_v33 = vpop.f32.mrb[103].mxu0  ;;  %5280 = vmatmul.mubr.bf16.gmra.mrb[96].mxu1 %v1872_v25  ;;  %v1853_v35 = vmax.f32 %v1793_v28, 0.0 }
 0x5d6   :  { %v1788_v34 = vadd.f32 %v6261_v18, %v1787_v33  ;;  %v1851_v37 = vmax.f32 %v1785_v30, 0.0 }
 0x5d7   :  { %v1854_v36 = vmax.f32 %v1796_v32, 0.0 }
 0x5d8   :  { %v1852_v39 = vmax.f32 %v1788_v34, 0.0 }
 0x5d9   :  { %v1874_v40 = vpack.c.bf16 %v1854_v36, %v1853_v35 }
 0x5da   :  { %v1873_v41 = vpack.c.bf16 %v1852_v39, %v1851_v37  ;;  %v5241_v42 = vpop.f32.mrb[104].mxu0 }
 0x5db   :  { %v1809_v43 = vadd.f32 %v5241_v42, %v6261_v18  ;;  %v1800_v44 = vpop.f32.mrb[105].mxu0 }
 0x5dc   :  { %v1801_v45 = vadd.f32 %v6261_v18, %v1800_v44  ;;  %v5242_v46 = vpop.f32.mrb[106].mxu0  ;;  %5283 = vmatprep.mubr.bf16.mxu1 %v1873_v41 }
 0x5dd   :  { %v1812_v47 = vadd.f32 %v5242_v46, %v6261_v18  ;;  %v1803_v48 = vpop.f32.mrb[107].mxu0  ;;  %5284 = vmatmul.mubr.bf16.gmra.mrb[100].mxu1 %v1874_v40  ;;  %v1857_v50 = vmax.f32 %v1809_v43, 0.0 }
 0x5de   :  { %v1804_v49 = vadd.f32 %v6261_v18, %v1803_v48  ;;  %v1855_v52 = vmax.f32 %v1801_v45, 0.0 }
 0x5df   :  { %v1858_v51 = vmax.f32 %v1812_v47, 0.0 }
 0x5e0   :  { %v1856_v53 = vmax.f32 %v1804_v49, 0.0 }
 0x5e1   :  { %v1876_v54 = vpack.c.bf16 %v1858_v51, %v1857_v50 }
 0x5e2   :  { %v1875_v55 = vpack.c.bf16 %v1856_v53, %v1855_v52  ;;  %v5245_v56 = vpop.f32.mrb[108].mxu0 }
 0x5e3   :  { %v1825_v57 = vadd.f32 %v5245_v56, %v6261_v18  ;;  %v1816_v58 = vpop.f32.mrb[109].mxu0 }
 0x5e4   :  { %v1817_v59 = vadd.f32 %v6261_v18, %v1816_v58  ;;  %v5246_v60 = vpop.f32.mrb[110].mxu0  ;;  %5287 = vmatprep.mubr.bf16.mxu1 %v1875_v55 }
 0x5e5   :  { %v1828_v61 = vadd.f32 %v5246_v60, %v6261_v18  ;;  %v1819_v62 = vpop.f32.mrb[111].mxu0  ;;  %5288 = vmatmul.mubr.bf16.gmra.mrb[104].mxu1 %v1876_v54  ;;  %v1861_v0 = vmax.f32 %v1825_v57, 0.0 }
 0x5e6   :  { %v1820_v63 = vadd.f32 %v6261_v18, %v1819_v62  ;;  %v1859_v2 = vmax.f32 %v1817_v59, 0.0  ;;  %v5820_v18 = vld [vmem:[#allocation8 + $0x190] sm:$0xff]  }
 0x5e7   :  { %v1862_v1 = vmax.f32 %v1828_v61, 0.0  ;;  %5347 = vmatprep.subr.bf16.mxu1 %v5820_v18 }
 0x5e8   :  { %v1860_v3 = vmax.f32 %v1820_v63, 0.0  ;;  %5348 = vmatpush3.bf16.msra.mxu1 %v5820_v18 }
 0x5e9   :  { %v1878_v4 = vpack.c.bf16 %v1862_v1, %v1861_v0  ;;  %5349 = vmatprep.subr.bf16.mxu1 %v5821_v10 }
 0x5ea   :  { %v1877_v5 = vpack.c.bf16 %v1860_v3, %v1859_v2 }
 0x5ec   :  { %5291 = vmatprep.mubr.bf16.mxu1 %v1877_v5  ;;  %5350 = vmatpush3.bf16.msra.mxu1 %v5821_v10 }
 0x5ed   :  { %5292 = vmatmul.mubr.bf16.gmra.mrb[108].mxu1 %v1878_v4  ;;  %5351 = vmatprep.subr.bf16.mxu1 %v5822_v11 }
 0x5f0   :  { %5352 = vmatpush3.bf16.msra.mxu1 %v5822_v11 }
 0x5f1   :  { %5353 = vmatprep.subr.bf16.mxu1 %v5823_v12 }
 0x5f4   :  { %5354 = vmatpush3.bf16.msra.mxu1 %v5823_v12 }
 0x688   :  { %v5265_v14 = vpop.f32.mrb[80].mxu1 }
 0x689   :  { %v1995_v15 = vadd.f32 %v5265_v14, %v6298_v13  ;;  %v1986_v19 = vpop.f32.mrb[81].mxu1 }
 0x68a   :  { %v1987_v16 = vadd.f32 %v6298_v13, %v1986_v19  ;;  %v5266_v38 = vpop.f32.mrb[82].mxu1 }
 0x68b   :  { %v1998_v17 = vadd.f32 %v5266_v38, %v6298_v13  ;;  %v1989_v20 = vpop.f32.mrb[83].mxu1  ;;  %v2115_v22 = vmax.f32 %v1995_v15, 0.0 }
 0x68c   :  { %v1990_v21 = vadd.f32 %v6298_v13, %v1989_v20  ;;  %v2113_v24 = vmax.f32 %v1987_v16, 0.0 }
 0x68d   :  { %v2116_v23 = vmax.f32 %v1998_v17, 0.0 }
 0x68e   :  { %v2114_v25 = vmax.f32 %v1990_v21, 0.0 }
 0x68f   :  { %v2146_v26 = vpack.c.bf16 %v2116_v23, %v2115_v22 }
 0x690   :  { %v2145_v27 = vpack.c.bf16 %v2114_v25, %v2113_v24  ;;  %v5269_v28 = vpop.f32.mrb[84].mxu1 }
 0x691   :  { %v2011_v29 = vadd.f32 %v5269_v28, %v6298_v13  ;;  %v2002_v30 = vpop.f32.mrb[85].mxu1 }
 0x692   :  { %v2003_v31 = vadd.f32 %v6298_v13, %v2002_v30  ;;  %v5270_v32 = vpop.f32.mrb[86].mxu1  ;;  %5311 = vmatprep.mubr.bf16.mxu0 %v2145_v27 }
 0x693   :  { %v2014_v33 = vadd.f32 %v5270_v32, %v6298_v13  ;;  %v2005_v34 = vpop.f32.mrb[87].mxu1  ;;  %5312 = vmatmul.mubr.bf16.vlgmr.msra.gmra.mrb[112].mxu0 %v2146_v26  ;;  %v2119_v36 = vmax.f32 %v2011_v29, 0.0 }
 0x694   :  { %v2006_v35 = vadd.f32 %v6298_v13, %v2005_v34  ;;  %v2117_v39 = vmax.f32 %v2003_v31, 0.0 }
 0x695   :  { %v2120_v37 = vmax.f32 %v2014_v33, 0.0 }
 0x696   :  { %v2118_v40 = vmax.f32 %v2006_v35, 0.0 }
 0x697   :  { %v2148_v41 = vpack.c.bf16 %v2120_v37, %v2119_v36 }
 0x698   :  { %v2147_v42 = vpack.c.bf16 %v2118_v40, %v2117_v39  ;;  %v5273_v43 = vpop.f32.mrb[88].mxu1 }
 0x699   :  { %v2027_v44 = vadd.f32 %v5273_v43, %v6298_v13  ;;  %v2018_v45 = vpop.f32.mrb[89].mxu1 }
 0x69a   :  { %v2019_v46 = vadd.f32 %v6298_v13, %v2018_v45  ;;  %v5274_v47 = vpop.f32.mrb[90].mxu1  ;;  %5315 = vmatprep.mubr.bf16.mxu0 %v2147_v42 }
 0x69b   :  { %v2030_v48 = vadd.f32 %v5274_v47, %v6298_v13  ;;  %v2021_v49 = vpop.f32.mrb[91].mxu1  ;;  %5316 = vmatmul.mubr.bf16.gmra.mrb[116].mxu0 %v2148_v41  ;;  %v2123_v51 = vmax.f32 %v2027_v44, 0.0 }
 0x69c   :  { %v2022_v50 = vadd.f32 %v6298_v13, %v2021_v49  ;;  %v2121_v53 = vmax.f32 %v2019_v46, 0.0 }
 0x69d   :  { %v2124_v52 = vmax.f32 %v2030_v48, 0.0 }
 0x69e   :  { %v2122_v54 = vmax.f32 %v2022_v50, 0.0 }
 0x69f   :  { %v2150_v55 = vpack.c.bf16 %v2124_v52, %v2123_v51 }
 0x6a0   :  { %v2149_v56 = vpack.c.bf16 %v2122_v54, %v2121_v53  ;;  %v5277_v57 = vpop.f32.mrb[92].mxu1 }
 0x6a1   :  { %v2043_v58 = vadd.f32 %v5277_v57, %v6298_v13  ;;  %v2034_v59 = vpop.f32.mrb[93].mxu1 }
 0x6a2   :  { %v2035_v60 = vadd.f32 %v6298_v13, %v2034_v59  ;;  %v5278_v61 = vpop.f32.mrb[94].mxu1  ;;  %5319 = vmatprep.mubr.bf16.mxu0 %v2149_v56 }
 0x6a3   :  { %v2046_v62 = vadd.f32 %v5278_v61, %v6298_v13  ;;  %v2037_v63 = vpop.f32.mrb[95].mxu1  ;;  %5320 = vmatmul.mubr.bf16.gmra.mrb[120].mxu0 %v2150_v55  ;;  %v2127_v1 = vmax.f32 %v2043_v58, 0.0 }
 0x6a4   :  { %v2038_v0 = vadd.f32 %v6298_v13, %v2037_v63  ;;  %v2125_v3 = vmax.f32 %v2035_v60, 0.0 }
 0x6a5   :  { %v2128_v2 = vmax.f32 %v2046_v62, 0.0 }
 0x6a6   :  { %v2126_v4 = vmax.f32 %v2038_v0, 0.0  ;;  %v5824_v0 = vld [vmem:[#allocation8 + $0x1b0] sm:$0xff]  }
 0x6a7   :  { %v2152_v5 = vpack.c.bf16 %v2128_v2, %v2127_v1  ;;  %5355 = vmatprep.subr.bf16.mxu1 %v5824_v0  ;;  %v5825_v1 = vld [vmem:[#allocation8 + $0x1b8] sm:$0xff]   ;;  %v5826_v2 = vld [vmem:[#allocation8 + $0x1c0] sm:$0xff]  }
 0x6a8   :  { %v2151_v6 = vpack.c.bf16 %v2126_v4, %v2125_v3  ;;  %v5281_v7 = vpop.f32.mrb[96].mxu1  ;;  %5356 = vmatpush3.bf16.msra.mxu1 %v5824_v0  ;;  %v5827_v3 = vld [vmem:[#allocation8 + $0x1c8] sm:$0xff]   ;;  %5391 = vmatprep.subr.bf16.mxu0 %v5826_v2  ;;  %v5829_v4 = vld [vmem:[#allocation8 + $0x1d8] sm:$0xff]  }
 0x6a9   :  { %v2059_v8 = vadd.f32 %v5281_v7, %v6298_v13  ;;  %v2050_v9 = vpop.f32.mrb[97].mxu1  ;;  %5357 = vmatprep.subr.bf16.mxu1 %v5825_v1  ;;  %5392 = vmatpush3.bf16.msra.mxu0 %v5826_v2  ;;  %v6335_v7 = vld [vmem:[%s6620_s4 + $0x5] ss:$0 sm:$0xff] }
 0x6aa   :  { %v2051_v18 = vadd.f32 %v6298_v13, %v2050_v9  ;;  %v5282_v10 = vpop.f32.mrb[98].mxu1  ;;  %5323 = vmatprep.mubr.bf16.mxu0 %v2151_v6  ;;  %5393 = vmatprep.subr.bf16.mxu0 %v5827_v3  ;;  %v5831_v6 = vld [vmem:[#allocation8 + $0x1e8] sm:$0xff]  }
 0x6ab   :  { %v2062_v11 = vadd.f32 %v5282_v10, %v6298_v13  ;;  %v2053_v12 = vpop.f32.mrb[99].mxu1  ;;  %5324 = vmatmul.mubr.bf16.gmra.mrb[124].mxu0 %v2152_v5  ;;  %v2131_v15 = vmax.f32 %v2059_v8, 0.0  ;;  %v5830_v5 = vld [vmem:[#allocation8 + $0x1e0] sm:$0xff]  }
 0x6ac   :  { %v2054_v14 = vadd.f32 %v6298_v13, %v2053_v12  ;;  %v2129_v16 = vmax.f32 %v2051_v18, 0.0  ;;  %5358 = vmatpush3.bf16.msra.mxu1 %v5825_v1 }
 0x6ad   :  { %v2132_v19 = vmax.f32 %v2062_v11, 0.0  ;;  %5394 = vmatpush3.bf16.msra.mxu0 %v5827_v3 }
 0x6ae   :  { %v2130_v38 = vmax.f32 %v2054_v14, 0.0 }
 0x6af   :  { %v2154_v17 = vpack.c.bf16 %v2132_v19, %v2131_v15 }
 0x6b0   :  { %v2153_v20 = vpack.c.bf16 %v2130_v38, %v2129_v16  ;;  %v5285_v21 = vpop.f32.mrb[100].mxu1 }
 0x6b1   :  { %v2075_v22 = vadd.f32 %v5285_v21, %v6298_v13  ;;  %v2066_v23 = vpop.f32.mrb[101].mxu1 }
 0x6b2   :  { %v2067_v24 = vadd.f32 %v6298_v13, %v2066_v23  ;;  %v5286_v25 = vpop.f32.mrb[102].mxu1  ;;  %5327 = vmatprep.mubr.bf16.mxu0 %v2153_v20 }
 0x6b3   :  { %v2078_v26 = vadd.f32 %v5286_v25, %v6298_v13  ;;  %v2069_v27 = vpop.f32.mrb[103].mxu1  ;;  %5328 = vmatmul.mubr.bf16.gmra.mrb[128].mxu0 %v2154_v17  ;;  %v2135_v29 = vmax.f32 %v2075_v22, 0.0 }
 0x6b4   :  { %v2070_v28 = vadd.f32 %v6298_v13, %v2069_v27  ;;  %v2133_v31 = vmax.f32 %v2067_v24, 0.0 }
 0x6b5   :  { %v2136_v30 = vmax.f32 %v2078_v26, 0.0 }
 0x6b6   :  { %v2134_v32 = vmax.f32 %v2070_v28, 0.0 }
 0x6b7   :  { %v2156_v33 = vpack.c.bf16 %v2136_v30, %v2135_v29 }
 0x6b8   :  { %v2155_v34 = vpack.c.bf16 %v2134_v32, %v2133_v31  ;;  %v5289_v35 = vpop.f32.mrb[104].mxu1 }
 0x6b9   :  { %v2091_v36 = vadd.f32 %v5289_v35, %v6298_v13  ;;  %v2082_v37 = vpop.f32.mrb[105].mxu1 }
 0x6ba   :  { %v2083_v39 = vadd.f32 %v6298_v13, %v2082_v37  ;;  %v5290_v40 = vpop.f32.mrb[106].mxu1  ;;  %5331 = vmatprep.mubr.bf16.mxu0 %v2155_v34 }
 0x6bb   :  { %v2094_v41 = vadd.f32 %v5290_v40, %v6298_v13  ;;  %v2085_v42 = vpop.f32.mrb[107].mxu1  ;;  %5332 = vmatmul.mubr.bf16.gmra.mrb[132].mxu0 %v2156_v33  ;;  %v2139_v44 = vmax.f32 %v2091_v36, 0.0 }
 0x6bc   :  { %v2086_v43 = vadd.f32 %v6298_v13, %v2085_v42  ;;  %v2137_v46 = vmax.f32 %v2083_v39, 0.0 }
 0x6bd   :  { %v2140_v45 = vmax.f32 %v2094_v41, 0.0 }
 0x6be   :  { %v2138_v47 = vmax.f32 %v2086_v43, 0.0 }
 0x6bf   :  { %v2158_v48 = vpack.c.bf16 %v2140_v45, %v2139_v44 }
 0x6c0   :  { %v2157_v49 = vpack.c.bf16 %v2138_v47, %v2137_v46  ;;  %v5293_v50 = vpop.f32.mrb[108].mxu1 }
 0x6c1   :  { %v2107_v51 = vadd.f32 %v5293_v50, %v6298_v13  ;;  %v2098_v52 = vpop.f32.mrb[109].mxu1 }
 0x6c2   :  { %v2099_v53 = vadd.f32 %v6298_v13, %v2098_v52  ;;  %v5294_v54 = vpop.f32.mrb[110].mxu1  ;;  %5335 = vmatprep.mubr.bf16.mxu0 %v2157_v49 }
 0x6c3   :  { %v2110_v55 = vadd.f32 %v5294_v54, %v6298_v13  ;;  %v2101_v56 = vpop.f32.mrb[111].mxu1  ;;  %5336 = vmatmul.mubr.bf16.gmra.mrb[136].mxu0 %v2158_v48  ;;  %v2143_v58 = vmax.f32 %v2107_v51, 0.0 }
 0x6c4   :  { %v2102_v57 = vadd.f32 %v6298_v13, %v2101_v56  ;;  %v2141_v60 = vmax.f32 %v2099_v53, 0.0  ;;  %v5828_v13 = vld [vmem:[#allocation8 + $0x1d0] sm:$0xff]  }
 0x6c5   :  { %v2144_v59 = vmax.f32 %v2110_v55, 0.0  ;;  %5395 = vmatprep.subr.bf16.mxu0 %v5828_v13 }
 0x6c6   :  { %v2142_v61 = vmax.f32 %v2102_v57, 0.0  ;;  %5396 = vmatpush3.bf16.msra.mxu0 %v5828_v13 }
 0x6c7   :  { %v2160_v62 = vpack.c.bf16 %v2144_v59, %v2143_v58  ;;  %5397 = vmatprep.subr.bf16.mxu0 %v5829_v4 }
 0x6c8   :  { %v2159_v63 = vpack.c.bf16 %v2142_v61, %v2141_v60 }
 0x6ca   :  { %5339 = vmatprep.mubr.bf16.mxu0 %v2159_v63  ;;  %5398 = vmatpush3.bf16.msra.mxu0 %v5829_v4 }
 0x6cb   :  { %5340 = vmatmul.mubr.bf16.gmra.mrb[140].mxu0 %v2160_v62  ;;  %5399 = vmatprep.subr.bf16.mxu0 %v5830_v5 }
 0x6ce   :  { %5400 = vmatpush3.bf16.msra.mxu0 %v5830_v5 }
 0x6cf   :  { %5401 = vmatprep.subr.bf16.mxu0 %v5831_v6 }
 0x6d2   :  { %5402 = vmatpush3.bf16.msra.mxu0 %v5831_v6 }
 0x766   :  { %v5313_v8 = vpop.f32.mrb[112].mxu0 }
 0x767   :  { %v2277_v9 = vadd.f32 %v5313_v8, %v6335_v7  ;;  %v2268_v18 = vpop.f32.mrb[113].mxu0 }
 0x768   :  { %v2269_v10 = vadd.f32 %v6335_v7, %v2268_v18  ;;  %v5314_v11 = vpop.f32.mrb[114].mxu0 }
 0x769   :  { %v2280_v12 = vadd.f32 %v5314_v11, %v6335_v7  ;;  %v2271_v14 = vpop.f32.mrb[115].mxu0  ;;  %v2397_v19 = vmax.f32 %v2277_v9, 0.0 }
 0x76a   :  { %v2272_v15 = vadd.f32 %v6335_v7, %v2271_v14  ;;  %v2395_v38 = vmax.f32 %v2269_v10, 0.0 }
 0x76b   :  { %v2398_v16 = vmax.f32 %v2280_v12, 0.0 }
 0x76c   :  { %v2396_v17 = vmax.f32 %v2272_v15, 0.0 }
 0x76d   :  { %v2428_v20 = vpack.c.bf16 %v2398_v16, %v2397_v19 }
 0x76e   :  { %v2427_v21 = vpack.c.bf16 %v2396_v17, %v2395_v38  ;;  %v5317_v22 = vpop.f32.mrb[116].mxu0 }
 0x76f   :  { %v2293_v23 = vadd.f32 %v5317_v22, %v6335_v7  ;;  %v2284_v24 = vpop.f32.mrb[117].mxu0 }
 0x770   :  { %v2285_v25 = vadd.f32 %v6335_v7, %v2284_v24  ;;  %v5318_v26 = vpop.f32.mrb[118].mxu0  ;;  %5359 = vmatprep.mubr.bf16.mxu1 %v2427_v21 }
 0x771   :  { %v2296_v27 = vadd.f32 %v5318_v26, %v6335_v7  ;;  %v2287_v28 = vpop.f32.mrb[119].mxu0  ;;  %5360 = vmatmul.mubr.bf16.vlgmr.msra.gmra.mrb[112].mxu1 %v2428_v20  ;;  %v2401_v30 = vmax.f32 %v2293_v23, 0.0 }
 0x772   :  { %v2288_v29 = vadd.f32 %v6335_v7, %v2287_v28  ;;  %v2399_v32 = vmax.f32 %v2285_v25, 0.0 }
 0x773   :  { %v2402_v31 = vmax.f32 %v2296_v27, 0.0 }
 0x774   :  { %v2400_v33 = vmax.f32 %v2288_v29, 0.0 }
 0x775   :  { %v2430_v34 = vpack.c.bf16 %v2402_v31, %v2401_v30 }
 0x776   :  { %v2429_v35 = vpack.c.bf16 %v2400_v33, %v2399_v32  ;;  %v5321_v36 = vpop.f32.mrb[120].mxu0 }
 0x777   :  { %v2309_v37 = vadd.f32 %v5321_v36, %v6335_v7  ;;  %v2300_v39 = vpop.f32.mrb[121].mxu0 }
 0x778   :  { %v2301_v40 = vadd.f32 %v6335_v7, %v2300_v39  ;;  %v5322_v41 = vpop.f32.mrb[122].mxu0  ;;  %5363 = vmatprep.mubr.bf16.mxu1 %v2429_v35 }
 0x779   :  { %v2312_v42 = vadd.f32 %v5322_v41, %v6335_v7  ;;  %v2303_v43 = vpop.f32.mrb[123].mxu0  ;;  %5364 = vmatmul.mubr.bf16.gmra.mrb[116].mxu1 %v2430_v34  ;;  %v2405_v45 = vmax.f32 %v2309_v37, 0.0 }
 0x77a   :  { %v2304_v44 = vadd.f32 %v6335_v7, %v2303_v43  ;;  %v2403_v47 = vmax.f32 %v2301_v40, 0.0 }
 0x77b   :  { %v2406_v46 = vmax.f32 %v2312_v42, 0.0 }
 0x77c   :  { %v2404_v48 = vmax.f32 %v2304_v44, 0.0 }
 0x77d   :  { %v2432_v49 = vpack.c.bf16 %v2406_v46, %v2405_v45 }
 0x77e   :  { %v2431_v50 = vpack.c.bf16 %v2404_v48, %v2403_v47  ;;  %v5325_v51 = vpop.f32.mrb[124].mxu0 }
 0x77f   :  { %v2325_v52 = vadd.f32 %v5325_v51, %v6335_v7  ;;  %v2316_v53 = vpop.f32.mrb[125].mxu0 }
 0x780   :  { %v2317_v54 = vadd.f32 %v6335_v7, %v2316_v53  ;;  %v5326_v55 = vpop.f32.mrb[126].mxu0  ;;  %5367 = vmatprep.mubr.bf16.mxu1 %v2431_v50 }
 0x781   :  { %v2328_v56 = vadd.f32 %v5326_v55, %v6335_v7  ;;  %v2319_v57 = vpop.f32.mrb[127].mxu0  ;;  %5368 = vmatmul.mubr.bf16.gmra.mrb[120].mxu1 %v2432_v49  ;;  %v2409_v59 = vmax.f32 %v2325_v52, 0.0 }
 0x782   :  { %v2320_v58 = vadd.f32 %v6335_v7, %v2319_v57  ;;  %v2407_v61 = vmax.f32 %v2317_v54, 0.0 }
 0x783   :  { %v2410_v60 = vmax.f32 %v2328_v56, 0.0 }
 0x784   :  { %v2408_v62 = vmax.f32 %v2320_v58, 0.0  ;;  %v5898_v58 = vld [vmem:[#allocation2] sm:$0xff]  }
 0x785   :  { %v2434_v63 = vpack.c.bf16 %v2410_v60, %v2409_v59  ;;  %v5832_v59 = vld [vmem:[#allocation8 + $0x1f0] sm:$0xff]   ;;  %v5833_v60 = vld [vmem:[#allocation8 + $0x1f8] sm:$0xff]  }
 0x786   :  { %v2433_v0 = vpack.c.bf16 %v2408_v62, %v2407_v61  ;;  %v5329_v1 = vpop.f32.mrb[128].mxu0  ;;  %5403 = vmatprep.subr.bf16.mxu0 %v5832_v59 }
 0x787   :  { %v2341_v2 = vadd.f32 %v5329_v1, %v6335_v7  ;;  %v2332_v3 = vpop.f32.mrb[129].mxu0  ;;  %5404 = vmatpush3.bf16.msra.mxu0 %v5832_v59 }
 0x788   :  { %v2333_v13 = vadd.f32 %v6335_v7, %v2332_v3  ;;  %v5330_v4 = vpop.f32.mrb[130].mxu0  ;;  %5371 = vmatprep.mubr.bf16.mxu1 %v2433_v0  ;;  %5405 = vmatprep.subr.bf16.mxu0 %v5833_v60 }
 0x789   :  { %v2344_v5 = vadd.f32 %v5330_v4, %v6335_v7  ;;  %v2335_v6 = vpop.f32.mrb[131].mxu0  ;;  %5372 = vmatmul.mubr.bf16.gmra.mrb[124].mxu1 %v2434_v63  ;;  %v2413_v9 = vmax.f32 %v2341_v2, 0.0 }
 0x78a   :  { %v2336_v8 = vadd.f32 %v6335_v7, %v2335_v6  ;;  %v2411_v10 = vmax.f32 %v2333_v13, 0.0 }
 0x78b   :  { %v2414_v18 = vmax.f32 %v2344_v5, 0.0  ;;  %5406 = vmatpush3.bf16.msra.mxu0 %v5833_v60 }
 0x78c   :  { %v2412_v11 = vmax.f32 %v2336_v8, 0.0 }
 0x78d   :  { %v2436_v12 = vpack.c.bf16 %v2414_v18, %v2413_v9 }
 0x78e   :  { %v2435_v14 = vpack.c.bf16 %v2412_v11, %v2411_v10  ;;  %v5333_v15 = vpop.f32.mrb[132].mxu0 }
 0x78f   :  { %v2357_v19 = vadd.f32 %v5333_v15, %v6335_v7  ;;  %v2348_v16 = vpop.f32.mrb[133].mxu0 }
 0x790   :  { %v2349_v38 = vadd.f32 %v6335_v7, %v2348_v16  ;;  %v5334_v17 = vpop.f32.mrb[134].mxu0  ;;  %5375 = vmatprep.mubr.bf16.mxu1 %v2435_v14 }
 0x791   :  { %v2360_v20 = vadd.f32 %v5334_v17, %v6335_v7  ;;  %v2351_v21 = vpop.f32.mrb[135].mxu0  ;;  %5376 = vmatmul.mubr.bf16.gmra.mrb[128].mxu1 %v2436_v12  ;;  %v2417_v23 = vmax.f32 %v2357_v19, 0.0 }
 0x792   :  { %v2352_v22 = vadd.f32 %v6335_v7, %v2351_v21  ;;  %v2415_v25 = vmax.f32 %v2349_v38, 0.0 }
 0x793   :  { %v2418_v24 = vmax.f32 %v2360_v20, 0.0 }
 0x794   :  { %v2416_v26 = vmax.f32 %v2352_v22, 0.0 }
 0x795   :  { %v2438_v27 = vpack.c.bf16 %v2418_v24, %v2417_v23 }
 0x796   :  { %v2437_v28 = vpack.c.bf16 %v2416_v26, %v2415_v25  ;;  %v5337_v29 = vpop.f32.mrb[136].mxu0 }
 0x797   :  { %v2373_v30 = vadd.f32 %v5337_v29, %v6335_v7  ;;  %v2364_v31 = vpop.f32.mrb[137].mxu0 }
 0x798   :  { %v2365_v32 = vadd.f32 %v6335_v7, %v2364_v31  ;;  %v5338_v33 = vpop.f32.mrb[138].mxu0  ;;  %5379 = vmatprep.mubr.bf16.mxu1 %v2437_v28 }
 0x799   :  { %v2376_v34 = vadd.f32 %v5338_v33, %v6335_v7  ;;  %v2367_v35 = vpop.f32.mrb[139].mxu0  ;;  %5380 = vmatmul.mubr.bf16.gmra.mrb[132].mxu1 %v2438_v27  ;;  %v2421_v37 = vmax.f32 %v2373_v30, 0.0 }
 0x79a   :  { %v2368_v36 = vadd.f32 %v6335_v7, %v2367_v35  ;;  %v2419_v40 = vmax.f32 %v2365_v32, 0.0 }
 0x79b   :  { %v2422_v39 = vmax.f32 %v2376_v34, 0.0 }
 0x79c   :  { %v2420_v41 = vmax.f32 %v2368_v36, 0.0 }
 0x79d   :  { %v2440_v42 = vpack.c.bf16 %v2422_v39, %v2421_v37 }
 0x79e   :  { %v2439_v43 = vpack.c.bf16 %v2420_v41, %v2419_v40  ;;  %v5341_v44 = vpop.f32.mrb[140].mxu0 }
 0x79f   :  { %v2389_v45 = vadd.f32 %v5341_v44, %v6335_v7  ;;  %v2380_v46 = vpop.f32.mrb[141].mxu0 }
 0x7a0   :  { %v2381_v47 = vadd.f32 %v6335_v7, %v2380_v46  ;;  %v5342_v48 = vpop.f32.mrb[142].mxu0  ;;  %5383 = vmatprep.mubr.bf16.mxu1 %v2439_v43 }
 0x7a1   :  { %v2392_v49 = vadd.f32 %v5342_v48, %v6335_v7  ;;  %v2383_v50 = vpop.f32.mrb[143].mxu0  ;;  %5384 = vmatmul.mubr.bf16.gmra.mrb[136].mxu1 %v2440_v42  ;;  %v2425_v52 = vmax.f32 %v2389_v45, 0.0 }
 0x7a2   :  { %v2384_v51 = vadd.f32 %v6335_v7, %v2383_v50  ;;  %v2423_v54 = vmax.f32 %v2381_v47, 0.0  ;;  %v6372_v7 = vld [vmem:[%s6620_s4 + $0x6] ss:$0 sm:$0xff] }
 0x7a3   :  { %v2426_v53 = vmax.f32 %v2392_v49, 0.0 }
 0x7a4   :  { %v2424_v55 = vmax.f32 %v2384_v51, 0.0 }
 0x7a5   :  { %v2442_v56 = vpack.c.bf16 %v2426_v53, %v2425_v52 }
 0x7a6   :  { %v2441_v57 = vpack.c.bf16 %v2424_v55, %v2423_v54 }
 0x7a8   :  { %5387 = vmatprep.mubr.bf16.mxu1 %v2441_v57 }
 0x7a9   :  { %5388 = vmatmul.mubr.bf16.gmra.mrb[140].mxu1 %v2442_v56 }
 0x7aa   :  { %5455 = vmatprep.mubr.bf16.mxu1 %v5898_v58 }
 0x844   :  { %v5361_v61 = vpop.f32.mrb[112].mxu1 }
 0x845   :  { %v2550_v62 = vpop.f32.mrb[113].mxu1  ;;  %v2559_v0 = vadd.f32 %v5361_v61, %v6372_v7 }
 0x846   :  { %v5362_v63 = vpop.f32.mrb[114].mxu1  ;;  %v2551_v3 = vadd.f32 %v6372_v7, %v2550_v62 }
 0x847   :  { %v2562_v1 = vadd.f32 %v5362_v63, %v6372_v7  ;;  %v2553_v2 = vpop.f32.mrb[115].mxu1 }
 0x848   :  { %v2554_v13 = vadd.f32 %v6372_v7, %v2553_v2 }
 0x849   :  { %v2678_v4 = vpack.c.bf16 %v2562_v1, %v2559_v0 }
 0x84a   :  { %v2677_v5 = vpack.c.bf16 %v2554_v13, %v2551_v3 }
 0x84c   :  { %v5365_v6 = vpop.f32.mrb[116].mxu1  ;;  %5407 = vmatprep.mubr.bf16.mxu0 %v2677_v5 }
 0x84d   :  { %v2566_v8 = vpop.f32.mrb[117].mxu1  ;;  %5408 = vmatmul.mubr.bf16.vlgmr.msra.gmra.mrb[144].mxu0 %v2678_v4  ;;  %v2575_v18 = vadd.f32 %v5365_v6, %v6372_v7 }
 0x84e   :  { %v5366_v9 = vpop.f32.mrb[118].mxu1  ;;  %v2567_v12 = vadd.f32 %v6372_v7, %v2566_v8 }
 0x84f   :  { %v2578_v10 = vadd.f32 %v5366_v9, %v6372_v7  ;;  %v2569_v11 = vpop.f32.mrb[119].mxu1 }
 0x850   :  { %v2570_v14 = vadd.f32 %v6372_v7, %v2569_v11 }
 0x851   :  { %v2680_v15 = vpack.c.bf16 %v2578_v10, %v2575_v18 }
 0x852   :  { %v2679_v19 = vpack.c.bf16 %v2570_v14, %v2567_v12  ;;  %v5834_v14 = vld [vmem:[#allocation8 + $0x200] sm:$0xff]  }
 0x853   :  { %5503 = vmatprep.subr.bf16.mxu0 %v5834_v14 }
 0x854   :  { %v5369_v16 = vpop.f32.mrb[120].mxu1  ;;  %5411 = vmatprep.mubr.bf16.mxu0 %v2679_v19  ;;  %5504 = vmatpush3.bf16.msra.mxu0 %v5834_v14  ;;  %v5836_v19 = vld [vmem:[#allocation8 + $0x210] sm:$0xff]  }
 0x855   :  { %v2582_v38 = vpop.f32.mrb[121].mxu1  ;;  %5412 = vmatmul.mubr.bf16.gmra.mrb[148].mxu0 %v2680_v15  ;;  %v2591_v20 = vadd.f32 %v5369_v16, %v6372_v7  ;;  %v5835_v15 = vld [vmem:[#allocation8 + $0x208] sm:$0xff]   ;;  %v5837_v16 = vld [vmem:[#allocation8 + $0x218] sm:$0xff]  }
 0x856   :  { %v5370_v17 = vpop.f32.mrb[122].mxu1  ;;  %v2583_v23 = vadd.f32 %v6372_v7, %v2582_v38  ;;  %5505 = vmatprep.subr.bf16.mxu0 %v5835_v15  ;;  %v5838_v38 = vld [vmem:[#allocation8 + $0x220] sm:$0xff]  }
 0x857   :  { %v2594_v21 = vadd.f32 %v5370_v17, %v6372_v7  ;;  %v2585_v22 = vpop.f32.mrb[123].mxu1  ;;  %v5839_v17 = vld [vmem:[#allocation8 + $0x228] sm:$0xff]  }
 0x858   :  { %v2586_v24 = vadd.f32 %v6372_v7, %v2585_v22  ;;  %5506 = vmatpush3.bf16.msra.mxu0 %v5835_v15 }
 0x859   :  { %v2682_v25 = vpack.c.bf16 %v2594_v21, %v2591_v20  ;;  %5507 = vmatprep.subr.bf16.mxu0 %v5836_v19  ;;  %v6409_v20 = vld [vmem:[%s6620_s4 + $0x7] ss:$0 sm:$0xff] }
 0x85a   :  { %v2681_v26 = vpack.c.bf16 %v2586_v24, %v2583_v23 }
 0x85c   :  { %v5373_v27 = vpop.f32.mrb[124].mxu1  ;;  %5415 = vmatprep.mubr.bf16.mxu0 %v2681_v26  ;;  %5508 = vmatpush3.bf16.msra.mxu0 %v5836_v19 }
 0x85d   :  { %v2598_v28 = vpop.f32.mrb[125].mxu1  ;;  %5416 = vmatmul.mubr.bf16.gmra.mrb[152].mxu0 %v2682_v25  ;;  %v2607_v30 = vadd.f32 %v5373_v27, %v6372_v7  ;;  %5509 = vmatprep.subr.bf16.mxu0 %v5837_v16 }
 0x85e   :  { %v5374_v29 = vpop.f32.mrb[126].mxu1  ;;  %v2599_v33 = vadd.f32 %v6372_v7, %v2598_v28 }
 0x85f   :  { %v2610_v31 = vadd.f32 %v5374_v29, %v6372_v7  ;;  %v2601_v32 = vpop.f32.mrb[127].mxu1 }
 0x860   :  { %v2602_v34 = vadd.f32 %v6372_v7, %v2601_v32  ;;  %5510 = vmatpush3.bf16.msra.mxu0 %v5837_v16 }
 0x861   :  { %v2684_v35 = vpack.c.bf16 %v2610_v31, %v2607_v30  ;;  %5511 = vmatprep.subr.bf16.mxu0 %v5838_v38 }
 0x862   :  { %v2683_v36 = vpack.c.bf16 %v2602_v34, %v2599_v33 }
 0x864   :  { %v5377_v37 = vpop.f32.mrb[128].mxu1  ;;  %5419 = vmatprep.mubr.bf16.mxu0 %v2683_v36  ;;  %5512 = vmatpush3.bf16.msra.mxu0 %v5838_v38 }
 0x865   :  { %v2614_v39 = vpop.f32.mrb[129].mxu1  ;;  %5420 = vmatmul.mubr.bf16.gmra.mrb[156].mxu0 %v2684_v35  ;;  %v2623_v41 = vadd.f32 %v5377_v37, %v6372_v7  ;;  %5513 = vmatprep.subr.bf16.mxu0 %v5839_v17 }
 0x866   :  { %v5378_v40 = vpop.f32.mrb[130].mxu1  ;;  %v2615_v44 = vadd.f32 %v6372_v7, %v2614_v39 }
 0x867   :  { %v2626_v42 = vadd.f32 %v5378_v40, %v6372_v7  ;;  %v2617_v43 = vpop.f32.mrb[131].mxu1 }
 0x868   :  { %v2618_v45 = vadd.f32 %v6372_v7, %v2617_v43  ;;  %5514 = vmatpush3.bf16.msra.mxu0 %v5839_v17 }
 0x869   :  { %v2686_v46 = vpack.c.bf16 %v2626_v42, %v2623_v41 }
 0x86a   :  { %v2685_v47 = vpack.c.bf16 %v2618_v45, %v2615_v44 }
 0x86c   :  { %v5381_v48 = vpop.f32.mrb[132].mxu1  ;;  %5423 = vmatprep.mubr.bf16.mxu0 %v2685_v47 }
 0x86d   :  { %v2630_v49 = vpop.f32.mrb[133].mxu1  ;;  %5424 = vmatmul.mubr.bf16.gmra.mrb[160].mxu0 %v2686_v46  ;;  %v2639_v51 = vadd.f32 %v5381_v48, %v6372_v7 }
 0x86e   :  { %v5382_v50 = vpop.f32.mrb[134].mxu1  ;;  %v2631_v54 = vadd.f32 %v6372_v7, %v2630_v49 }
 0x86f   :  { %v2642_v52 = vadd.f32 %v5382_v50, %v6372_v7  ;;  %v2633_v53 = vpop.f32.mrb[135].mxu1 }
 0x870   :  { %v2634_v55 = vadd.f32 %v6372_v7, %v2633_v53 }
 0x871   :  { %v2688_v56 = vpack.c.bf16 %v2642_v52, %v2639_v51 }
 0x872   :  { %v2687_v57 = vpack.c.bf16 %v2634_v55, %v2631_v54 }
 0x874   :  { %v5385_v58 = vpop.f32.mrb[136].mxu1  ;;  %5427 = vmatprep.mubr.bf16.mxu0 %v2687_v57 }
 0x875   :  { %v2646_v59 = vpop.f32.mrb[137].mxu1  ;;  %5428 = vmatmul.mubr.bf16.gmra.mrb[164].mxu0 %v2688_v56  ;;  %v2655_v61 = vadd.f32 %v5385_v58, %v6372_v7 }
 0x876   :  { %v5386_v60 = vpop.f32.mrb[138].mxu1  ;;  %v2647_v0 = vadd.f32 %v6372_v7, %v2646_v59 }
 0x877   :  { %v2658_v62 = vadd.f32 %v5386_v60, %v6372_v7  ;;  %v2649_v63 = vpop.f32.mrb[139].mxu1 }
 0x878   :  { %v2650_v1 = vadd.f32 %v6372_v7, %v2649_v63 }
 0x879   :  { %v2690_v2 = vpack.c.bf16 %v2658_v62, %v2655_v61 }
 0x87a   :  { %v2689_v3 = vpack.c.bf16 %v2650_v1, %v2647_v0 }
 0x87c   :  { %v5389_v13 = vpop.f32.mrb[140].mxu1  ;;  %5431 = vmatprep.mubr.bf16.mxu0 %v2689_v3 }
 0x87d   :  { %v2662_v4 = vpop.f32.mrb[141].mxu1  ;;  %5432 = vmatmul.mubr.bf16.gmra.mrb[168].mxu0 %v2690_v2  ;;  %v2671_v6 = vadd.f32 %v5389_v13, %v6372_v7 }
 0x87e   :  { %v5390_v5 = vpop.f32.mrb[142].mxu1  ;;  %v2663_v18 = vadd.f32 %v6372_v7, %v2662_v4 }
 0x87f   :  { %v2674_v8 = vadd.f32 %v5390_v5, %v6372_v7  ;;  %v2665_v9 = vpop.f32.mrb[143].mxu1 }
 0x880   :  { %v2666_v10 = vadd.f32 %v6372_v7, %v2665_v9  ;;  %v5840_v7 = vld [vmem:[#allocation8 + $0x230] sm:$0xff]  }
 0x881   :  { %v2692_v11 = vpack.c.bf16 %v2674_v8, %v2671_v6  ;;  %5515 = vmatprep.subr.bf16.mxu0 %v5840_v7 }
 0x882   :  { %v2691_v12 = vpack.c.bf16 %v2666_v10, %v2663_v18  ;;  %5516 = vmatpush3.bf16.msra.mxu0 %v5840_v7 }
 0x884   :  { %5435 = vmatprep.mubr.bf16.mxu0 %v2691_v12 }
 0x885   :  { %5436 = vmatmul.mubr.bf16.gmra.mrb[172].mxu0 %v2692_v11 }
 0x920   :  { %v5409_v21 = vpop.f32.mrb[144].mxu0 }
 0x921   :  { %v2809_v22 = vadd.f32 %v5409_v21, %v6409_v20  ;;  %v2800_v23 = vpop.f32.mrb[145].mxu0 }
 0x922   :  { %v2801_v24 = vadd.f32 %v6409_v20, %v2800_v23  ;;  %v5410_v25 = vpop.f32.mrb[146].mxu0 }
 0x923   :  { %v2812_v26 = vadd.f32 %v5410_v25, %v6409_v20  ;;  %v2803_v27 = vpop.f32.mrb[147].mxu0  ;;  %v2929_v29 = vmax.f32 %v2809_v22, 0.0 }
 0x924   :  { %v2804_v28 = vadd.f32 %v6409_v20, %v2803_v27  ;;  %v2927_v31 = vmax.f32 %v2801_v24, 0.0 }
 0x925   :  { %v2930_v30 = vmax.f32 %v2812_v26, 0.0 }
 0x926   :  { %v2928_v32 = vmax.f32 %v2804_v28, 0.0 }
 0x927   :  { %v2960_v33 = vpack.c.bf16 %v2930_v30, %v2929_v29 }
 0x928   :  { %v2959_v34 = vpack.c.bf16 %v2928_v32, %v2927_v31  ;;  %v5413_v35 = vpop.f32.mrb[148].mxu0 }
 0x929   :  { %v2825_v36 = vadd.f32 %v5413_v35, %v6409_v20  ;;  %v2816_v37 = vpop.f32.mrb[149].mxu0 }
 0x92a   :  { %v2817_v39 = vadd.f32 %v6409_v20, %v2816_v37  ;;  %v5414_v40 = vpop.f32.mrb[150].mxu0  ;;  %5439 = vmatprep.subr.bf16.mxu1 %v2959_v34 }
 0x92b   :  { %v2828_v41 = vadd.f32 %v5414_v40, %v6409_v20  ;;  %v2819_v42 = vpop.f32.mrb[151].mxu0  ;;  %5440 = vmatpush3.bf16.msra.mxu1 %v2959_v34  ;;  %v2933_v44 = vmax.f32 %v2825_v36, 0.0  ;;  %v5900_v36 = vld [vmem:[#allocation2 + $0x10] sm:$0xff]  }
 0x92c   :  { %v2820_v43 = vadd.f32 %v6409_v20, %v2819_v42  ;;  %5441 = vmatprep.subr.bf16.mxu1 %v2960_v33  ;;  %v2931_v46 = vmax.f32 %v2817_v39, 0.0 }
 0x92d   :  { %v2934_v45 = vmax.f32 %v2828_v41, 0.0 }
 0x92e   :  { %v2932_v47 = vmax.f32 %v2820_v43, 0.0 }
 0x92f   :  { %v2962_v48 = vpack.c.bf16 %v2934_v45, %v2933_v44  ;;  %5442 = vmatpush3.bf16.msra.mxu1 %v2960_v33  ;;  %v5899_v33 = vld [vmem:[#allocation2 + $0x8] sm:$0xff]  }
 0x930   :  { %v2961_v49 = vpack.c.bf16 %v2932_v47, %v2931_v46  ;;  %v5417_v50 = vpop.f32.mrb[152].mxu0 }
 0x931   :  { %v2841_v51 = vadd.f32 %v5417_v50, %v6409_v20  ;;  %v2832_v52 = vpop.f32.mrb[153].mxu0  ;;  %v5901_v50 = vld [vmem:[#allocation2 + $0x18] sm:$0xff]  }
 0x932   :  { %v2833_v53 = vadd.f32 %v6409_v20, %v2832_v52  ;;  %v5418_v54 = vpop.f32.mrb[154].mxu0  ;;  %5443 = vmatprep.subr.bf16.mxu1 %v2961_v49 }
 0x933   :  { %v2844_v55 = vadd.f32 %v5418_v54, %v6409_v20  ;;  %v2835_v56 = vpop.f32.mrb[155].mxu0  ;;  %5444 = vmatpush3.bf16.msra.mxu1 %v2961_v49  ;;  %v2937_v58 = vmax.f32 %v2841_v51, 0.0 }
 0x934   :  { %v2836_v57 = vadd.f32 %v6409_v20, %v2835_v56  ;;  %5445 = vmatprep.subr.bf16.mxu1 %v2962_v48  ;;  %v2935_v60 = vmax.f32 %v2833_v53, 0.0  ;;  %v5902_v53 = vld [vmem:[#allocation2 + $0x20] sm:$0xff]  }
 0x935   :  { %v2938_v59 = vmax.f32 %v2844_v55, 0.0 }
 0x936   :  { %v2936_v61 = vmax.f32 %v2836_v57, 0.0 }
 0x937   :  { %v2964_v62 = vpack.c.bf16 %v2938_v59, %v2937_v58  ;;  %5446 = vmatpush3.bf16.msra.mxu1 %v2962_v48 }
 0x938   :  { %v2963_v63 = vpack.c.bf16 %v2936_v61, %v2935_v60  ;;  %v5421_v0 = vpop.f32.mrb[156].mxu0 }
 0x939   :  { %v2857_v1 = vadd.f32 %v5421_v0, %v6409_v20  ;;  %v2848_v2 = vpop.f32.mrb[157].mxu0 }
 0x93a   :  { %v2849_v3 = vadd.f32 %v6409_v20, %v2848_v2  ;;  %v5422_v13 = vpop.f32.mrb[158].mxu0  ;;  %5447 = vmatprep.subr.bf16.mxu1 %v2963_v63  ;;  %v5903_v2 = vld [vmem:[#allocation2 + $0x28] sm:$0xff]  }
 0x93b   :  { %v2860_v4 = vadd.f32 %v5422_v13, %v6409_v20  ;;  %v2851_v5 = vpop.f32.mrb[159].mxu0  ;;  %5448 = vmatpush3.bf16.msra.mxu1 %v2963_v63  ;;  %v2941_v8 = vmax.f32 %v2857_v1, 0.0 }
 0x93c   :  { %v2852_v6 = vadd.f32 %v6409_v20, %v2851_v5  ;;  %5449 = vmatprep.subr.bf16.mxu1 %v2964_v62  ;;  %v2939_v18 = vmax.f32 %v2849_v3, 0.0 }
 0x93d   :  { %v2942_v9 = vmax.f32 %v2860_v4, 0.0  ;;  %v5904_v4 = vld [vmem:[#allocation2 + $0x30] sm:$0xff]  }
 0x93e   :  { %v2940_v10 = vmax.f32 %v2852_v6, 0.0 }
 0x93f   :  { %v2966_v11 = vpack.c.bf16 %v2942_v9, %v2941_v8  ;;  %5450 = vmatpush3.bf16.msra.mxu1 %v2964_v62 }
 0x940   :  { %v2965_v12 = vpack.c.bf16 %v2940_v10, %v2939_v18  ;;  %v5425_v14 = vpop.f32.mrb[160].mxu0 }
 0x941   :  { %v2873_v15 = vadd.f32 %v5425_v14, %v6409_v20  ;;  %v2864_v19 = vpop.f32.mrb[161].mxu0  ;;  %v5906_v14 = vld [vmem:[#allocation2 + $0x40] sm:$0xff]  }
 0x942   :  { %v2865_v16 = vadd.f32 %v6409_v20, %v2864_v19  ;;  %v5426_v38 = vpop.f32.mrb[162].mxu0  ;;  %5451 = vmatprep.subr.bf16.mxu1 %v2965_v12  ;;  %v5908_v19 = vld [vmem:[#allocation2 + $0x50] sm:$0xff]  }
 0x943   :  { %v2876_v17 = vadd.f32 %v5426_v38, %v6409_v20  ;;  %v2867_v7 = vpop.f32.mrb[163].mxu0  ;;  %5452 = vmatpush3.bf16.msra.mxu1 %v2965_v12  ;;  %v2945_v22 = vmax.f32 %v2873_v15, 0.0  ;;  %v5905_v12 = vld [vmem:[#allocation2 + $0x38] sm:$0xff]   ;;  %v5907_v15 = vld [vmem:[#allocation2 + $0x48] sm:$0xff]  }
 0x944   :  { %v2868_v21 = vadd.f32 %v6409_v20, %v2867_v7  ;;  %5453 = vmatprep.subr.bf16.mxu1 %v2966_v11  ;;  %v2943_v24 = vmax.f32 %v2865_v16, 0.0  ;;  %v5910_v16 = vld [vmem:[#allocation2 + $0x60] sm:$0xff]   ;;  %v5911_v38 = vld [vmem:[#allocation2 + $0x68] sm:$0xff]   ;;  %v5913_v7 = vld [vmem:[#allocation2 + $0x78] sm:$0xff]  }
 0x945   :  { %v2946_v23 = vmax.f32 %v2876_v17, 0.0  ;;  %v5912_v17 = vld [vmem:[#allocation2 + $0x70] sm:$0xff]  }
 0x946   :  { %v2944_v25 = vmax.f32 %v2868_v21, 0.0  ;;  %v5841_v21 = vld [vmem:[#allocation8 + $0x238] sm:$0xff]  }
 0x947   :  { %v2968_v26 = vpack.c.bf16 %v2946_v23, %v2945_v22  ;;  %5454 = vmatpush3.bf16.msra.mxu1 %v2966_v11  ;;  %5517 = vmatprep.subr.bf16.mxu0 %v5841_v21  ;;  %v5842_v22 = vld [vmem:[#allocation8 + $0x240] sm:$0xff]   ;;  %v5843_v23 = vld [vmem:[#allocation8 + $0x248] sm:$0xff]  }
 0x948   :  { %v2967_v27 = vpack.c.bf16 %v2944_v25, %v2943_v24  ;;  %v5429_v28 = vpop.f32.mrb[164].mxu0  ;;  %5518 = vmatpush3.bf16.msra.mxu0 %v5841_v21  ;;  %v5844_v24 = vld [vmem:[#allocation8 + $0x250] sm:$0xff]   ;;  %v5845_v25 = vld [vmem:[#allocation8 + $0x258] sm:$0xff]  }
 0x949   :  { %v2889_v29 = vadd.f32 %v5429_v28, %v6409_v20  ;;  %v2880_v30 = vpop.f32.mrb[165].mxu0 }
 0x94a   :  { %v2881_v31 = vadd.f32 %v6409_v20, %v2880_v30  ;;  %v5430_v32 = vpop.f32.mrb[166].mxu0  ;;  %5456 = vmatmul.mubr.bf16.vlgmr.msra.gmra.mrb[144].mxu1 %v5899_v33  ;;  %5471 = vmatprep.subr.bf16.mxu1 %v2967_v27 }
 0x94b   :  { %v2892_v34 = vadd.f32 %v5430_v32, %v6409_v20  ;;  %v2883_v35 = vpop.f32.mrb[167].mxu0  ;;  %5472 = vmatpush3.bf16.msra.mxu1 %v2967_v27  ;;  %5459 = vmatprep.mubr.bf16.mxu1 %v5900_v36  ;;  %v2949_v39 = vmax.f32 %v2889_v29, 0.0  ;;  %v5847_v27 = vld [vmem:[#allocation8 + $0x268] sm:$0xff]  }
 0x94c   :  { %v2884_v37 = vadd.f32 %v6409_v20, %v2883_v35  ;;  %5473 = vmatprep.subr.bf16.mxu1 %v2968_v26  ;;  %v2947_v41 = vmax.f32 %v2881_v31, 0.0 }
 0x94d   :  { %v2950_v40 = vmax.f32 %v2892_v34, 0.0 }
 0x94e   :  { %v2948_v42 = vmax.f32 %v2884_v37, 0.0 }
 0x94f   :  { %v2970_v43 = vpack.c.bf16 %v2950_v40, %v2949_v39  ;;  %5474 = vmatpush3.bf16.msra.mxu1 %v2968_v26  ;;  %v5846_v26 = vld [vmem:[#allocation8 + $0x260] sm:$0xff]  }
 0x950   :  { %v2969_v44 = vpack.c.bf16 %v2948_v42, %v2947_v41  ;;  %v5433_v45 = vpop.f32.mrb[168].mxu0 }
 0x951   :  { %v2905_v46 = vadd.f32 %v5433_v45, %v6409_v20  ;;  %v2896_v47 = vpop.f32.mrb[169].mxu0 }
 0x952   :  { %v2897_v48 = vadd.f32 %v6409_v20, %v2896_v47  ;;  %v5434_v49 = vpop.f32.mrb[170].mxu0  ;;  %5460 = vmatmul.mubr.bf16.gmra.mrb[148].mxu1 %v5901_v50  ;;  %5475 = vmatprep.subr.bf16.mxu1 %v2969_v44 }
 0x953   :  { %v2908_v51 = vadd.f32 %v5434_v49, %v6409_v20  ;;  %v2899_v52 = vpop.f32.mrb[171].mxu0  ;;  %5476 = vmatpush3.bf16.msra.mxu1 %v2969_v44  ;;  %5463 = vmatprep.mubr.bf16.mxu1 %v5902_v53  ;;  %v2953_v55 = vmax.f32 %v2905_v46, 0.0 }
 0x954   :  { %v2900_v54 = vadd.f32 %v6409_v20, %v2899_v52  ;;  %5477 = vmatprep.subr.bf16.mxu1 %v2970_v43  ;;  %v2951_v57 = vmax.f32 %v2897_v48, 0.0 }
 0x955   :  { %v2954_v56 = vmax.f32 %v2908_v51, 0.0 }
 0x956   :  { %v2952_v58 = vmax.f32 %v2900_v54, 0.0 }
 0x957   :  { %v2972_v59 = vpack.c.bf16 %v2954_v56, %v2953_v55  ;;  %5478 = vmatpush3.bf16.msra.mxu1 %v2970_v43 }
 0x958   :  { %v2971_v60 = vpack.c.bf16 %v2952_v58, %v2951_v57  ;;  %v5437_v61 = vpop.f32.mrb[172].mxu0 }
 0x959   :  { %v2921_v62 = vadd.f32 %v5437_v61, %v6409_v20  ;;  %v2912_v63 = vpop.f32.mrb[173].mxu0 }
 0x95a   :  { %v2913_v0 = vadd.f32 %v6409_v20, %v2912_v63  ;;  %v5438_v1 = vpop.f32.mrb[174].mxu0  ;;  %5464 = vmatmul.mubr.bf16.gmra.mrb[152].mxu1 %v5903_v2  ;;  %5479 = vmatprep.subr.bf16.mxu1 %v2971_v60 }
 0x95b   :  { %v2924_v3 = vadd.f32 %v5438_v1, %v6409_v20  ;;  %v2915_v13 = vpop.f32.mrb[175].mxu0  ;;  %5480 = vmatpush3.bf16.msra.mxu1 %v2971_v60  ;;  %5467 = vmatprep.mubr.bf16.mxu1 %v5904_v4  ;;  %v2957_v6 = vmax.f32 %v2921_v62, 0.0 }
 0x95c   :  { %v2916_v5 = vadd.f32 %v6409_v20, %v2915_v13  ;;  %5481 = vmatprep.subr.bf16.mxu1 %v2972_v59  ;;  %v2955_v9 = vmax.f32 %v2913_v0, 0.0  ;;  %v5909_v20 = vld [vmem:[#allocation2 + $0x58] sm:$0xff]  }
 0x95d   :  { %v2958_v8 = vmax.f32 %v2924_v3, 0.0 }
 0x95e   :  { %v2956_v18 = vmax.f32 %v2916_v5, 0.0 }
 0x95f   :  { %v2974_v10 = vpack.c.bf16 %v2958_v8, %v2957_v6  ;;  %5482 = vmatpush3.bf16.msra.mxu1 %v2972_v59 }
 0x960   :  { %v2973_v11 = vpack.c.bf16 %v2956_v18, %v2955_v9 }
 0x962   :  { %5468 = vmatmul.mubr.bf16.gmra.mrb[156].mxu1 %v5905_v12  ;;  %5483 = vmatprep.subr.bf16.mxu1 %v2973_v11  ;;  %v5848_v12 = vld [vmem:[#allocation8 + $0x270] sm:$0xff]  }
 0x963   :  { %5484 = vmatpush3.bf16.msra.mxu1 %v2973_v11  ;;  %5487 = vmatprep.mubr.bf16.mxu1 %v5906_v14  ;;  %v5849_v14 = vld [vmem:[#allocation8 + $0x278] sm:$0xff]  }
 0x964   :  { %5485 = vmatprep.subr.bf16.mxu1 %v2974_v10 }
 0x967   :  { %5486 = vmatpush3.bf16.msra.mxu1 %v2974_v10 }
 0x968   :  { %5551 = vmatprep.subr.bf16.mxu1 %v5842_v22 }
 0x96a   :  { %5488 = vmatmul.mubr.bf16.vlgmr.msra.gmra.mrb[160].mxu1 %v5907_v15  ;;  %v5850_v15 = vld [vmem:[#allocation8 + $0x280] sm:$0xff]  }
 0x96b   :  { %5491 = vmatprep.mubr.bf16.mxu1 %v5908_v19  ;;  %5552 = vmatpush3.bf16.msra.mxu1 %v5842_v22  ;;  %v5851_v19 = vld [vmem:[#allocation8 + $0x288] sm:$0xff]  }
 0x96c   :  { %5553 = vmatprep.subr.bf16.mxu1 %v5843_v23  ;;  %5599 = vmatprep.subr.bf16.mxu0 %v5850_v15 }
 0x96f   :  { %5554 = vmatpush3.bf16.msra.mxu1 %v5843_v23 }
 0x970   :  { %5555 = vmatprep.subr.bf16.mxu1 %v5844_v24 }
 0x972   :  { %5492 = vmatmul.mubr.bf16.gmra.mrb[164].mxu1 %v5909_v20  ;;  %v5852_v20 = vld [vmem:[#allocation8 + $0x290] sm:$0xff]  }
 0x973   :  { %5495 = vmatprep.mubr.bf16.mxu1 %v5910_v16  ;;  %5556 = vmatpush3.bf16.msra.mxu1 %v5844_v24  ;;  %v5853_v16 = vld [vmem:[#allocation8 + $0x298] sm:$0xff]  }
 0x974   :  { %5557 = vmatprep.subr.bf16.mxu1 %v5845_v25 }
 0x977   :  { %5558 = vmatpush3.bf16.msra.mxu1 %v5845_v25 }
 0x978   :  { %5559 = vmatprep.subr.bf16.mxu1 %v5846_v26 }
 0x97a   :  { %5496 = vmatmul.mubr.bf16.gmra.mrb[168].mxu1 %v5911_v38  ;;  %v5854_v38 = vld [vmem:[#allocation8 + $0x2a0] sm:$0xff]  }
 0x97b   :  { %5499 = vmatprep.mubr.bf16.mxu1 %v5912_v17  ;;  %5560 = vmatpush3.bf16.msra.mxu1 %v5846_v26  ;;  %v5855_v17 = vld [vmem:[#allocation8 + $0x2a8] sm:$0xff]  }
 0x97c   :  { %5561 = vmatprep.subr.bf16.mxu1 %v5847_v27 }
 0x97f   :  { %5562 = vmatpush3.bf16.msra.mxu1 %v5847_v27 }
 0x980   :  { %5563 = vmatprep.subr.bf16.mxu1 %v5848_v12 }
 0x982   :  { %5500 = vmatmul.mubr.bf16.gmra.mrb[172].mxu1 %v5913_v7  ;;  %v6446_v7 = vld [vmem:[%s6620_s4 + $0x8] ss:$0 sm:$0xff] }
 0x983   :  { %5564 = vmatpush3.bf16.msra.mxu1 %v5848_v12 }
 0x984   :  { %5565 = vmatprep.subr.bf16.mxu1 %v5849_v14 }
 0x987   :  { %5566 = vmatpush3.bf16.msra.mxu1 %v5849_v14 }
 0xa1d   :  { %v5457_v28 = vpop.f32.mrb[144].mxu1 }
 0xa1e   :  { %v3009_v29 = vpop.f32.mrb[145].mxu1 }
 0xa1f   :  { %v5458_v30 = vpop.f32.mrb[146].mxu1 }
 0xa20   :  { %v3170_v31 = vpack.c.bf16 %v5458_v30, %v5457_v28  ;;  %v3012_v32 = vpop.f32.mrb[147].mxu1 }
 0xa21   :  { %v3169_v33 = vpack.c.bf16 %v3012_v32, %v3009_v29 }
 0xa23   :  { %5519 = vmatprep.mubr.bf16.mxu0 %v3169_v33 }
 0xa24   :  { %5520 = vmatmul.mubr.bf16.vlgmr.msra.gmra.mrb[176].mxu0 %v3170_v31 }
 0xa25   :  { %v5461_v34 = vpop.f32.mrb[148].mxu1  ;;  %5600 = vmatpush3.bf16.msra.mxu0 %v5850_v15 }
 0xa26   :  { %v3025_v35 = vpop.f32.mrb[149].mxu1  ;;  %5601 = vmatprep.subr.bf16.mxu0 %v5851_v19 }
 0xa27   :  { %v5462_v36 = vpop.f32.mrb[150].mxu1 }
 0xa28   :  { %v3172_v37 = vpack.c.bf16 %v5462_v36, %v5461_v34  ;;  %v3028_v39 = vpop.f32.mrb[151].mxu1 }
 0xa29   :  { %v3171_v40 = vpack.c.bf16 %v3028_v39, %v3025_v35  ;;  %5602 = vmatpush3.bf16.msra.mxu0 %v5851_v19 }
 0xa2a   :  { %5603 = vmatprep.subr.bf16.mxu0 %v5852_v20 }
 0xa2b   :  { %5523 = vmatprep.mubr.bf16.mxu0 %v3171_v40 }
 0xa2c   :  { %5524 = vmatmul.mubr.bf16.gmra.mrb[180].mxu0 %v3172_v37 }
 0xa2d   :  { %v5465_v41 = vpop.f32.mrb[152].mxu1  ;;  %5604 = vmatpush3.bf16.msra.mxu0 %v5852_v20 }
 0xa2e   :  { %v3041_v42 = vpop.f32.mrb[153].mxu1  ;;  %5605 = vmatprep.subr.bf16.mxu0 %v5853_v16 }
 0xa2f   :  { %v5466_v43 = vpop.f32.mrb[154].mxu1 }
 0xa30   :  { %v3174_v44 = vpack.c.bf16 %v5466_v43, %v5465_v41  ;;  %v3044_v45 = vpop.f32.mrb[155].mxu1 }
 0xa31   :  { %v3173_v46 = vpack.c.bf16 %v3044_v45, %v3041_v42  ;;  %5606 = vmatpush3.bf16.msra.mxu0 %v5853_v16 }
 0xa32   :  { %5607 = vmatprep.subr.bf16.mxu0 %v5854_v38 }
 0xa33   :  { %5527 = vmatprep.mubr.bf16.mxu0 %v3173_v46 }
 0xa34   :  { %5528 = vmatmul.mubr.bf16.gmra.mrb[184].mxu0 %v3174_v44 }
 0xa35   :  { %v5469_v47 = vpop.f32.mrb[156].mxu1  ;;  %5608 = vmatpush3.bf16.msra.mxu0 %v5854_v38 }
 0xa36   :  { %v3057_v48 = vpop.f32.mrb[157].mxu1  ;;  %5609 = vmatprep.subr.bf16.mxu0 %v5855_v17 }
 0xa37   :  { %v5470_v49 = vpop.f32.mrb[158].mxu1 }
 0xa38   :  { %v3176_v50 = vpack.c.bf16 %v5470_v49, %v5469_v47  ;;  %v3060_v51 = vpop.f32.mrb[159].mxu1 }
 0xa39   :  { %v3175_v52 = vpack.c.bf16 %v3060_v51, %v3057_v48  ;;  %5610 = vmatpush3.bf16.msra.mxu0 %v5855_v17 }
 0xa3b   :  { %5531 = vmatprep.mubr.bf16.mxu0 %v3175_v52 }
 0xa3c   :  { %5532 = vmatmul.mubr.bf16.gmra.mrb[188].mxu0 %v3176_v50 }
 0xa3d   :  { %v5489_v53 = vpop.f32.mrb[160].mxu1 }
 0xa3e   :  { %v3106_v54 = vpop.f32.mrb[161].mxu1 }
 0xa3f   :  { %v5490_v55 = vpop.f32.mrb[162].mxu1 }
 0xa40   :  { %v3178_v56 = vpack.c.bf16 %v5490_v55, %v5489_v53  ;;  %v3109_v57 = vpop.f32.mrb[163].mxu1 }
 0xa41   :  { %v3177_v58 = vpack.c.bf16 %v3109_v57, %v3106_v54 }
 0xa43   :  { %5535 = vmatprep.mubr.bf16.mxu0 %v3177_v58 }
 0xa44   :  { %5536 = vmatmul.mubr.bf16.gmra.mrb[192].mxu0 %v3178_v56 }
 0xa45   :  { %v5493_v59 = vpop.f32.mrb[164].mxu1 }
 0xa46   :  { %v3122_v60 = vpop.f32.mrb[165].mxu1 }
 0xa47   :  { %v5494_v61 = vpop.f32.mrb[166].mxu1 }
 0xa48   :  { %v3180_v62 = vpack.c.bf16 %v5494_v61, %v5493_v59  ;;  %v3125_v63 = vpop.f32.mrb[167].mxu1 }
 0xa49   :  { %v3179_v0 = vpack.c.bf16 %v3125_v63, %v3122_v60 }
 0xa4b   :  { %5539 = vmatprep.mubr.bf16.mxu0 %v3179_v0 }
 0xa4c   :  { %5540 = vmatmul.mubr.bf16.gmra.mrb[196].mxu0 %v3180_v62 }
 0xa4d   :  { %v5497_v1 = vpop.f32.mrb[168].mxu1 }
 0xa4e   :  { %v3138_v2 = vpop.f32.mrb[169].mxu1 }
 0xa4f   :  { %v5498_v3 = vpop.f32.mrb[170].mxu1 }
 0xa50   :  { %v3182_v13 = vpack.c.bf16 %v5498_v3, %v5497_v1  ;;  %v3141_v4 = vpop.f32.mrb[171].mxu1 }
 0xa51   :  { %v3181_v5 = vpack.c.bf16 %v3141_v4, %v3138_v2 }
 0xa53   :  { %5543 = vmatprep.mubr.bf16.mxu0 %v3181_v5 }
 0xa54   :  { %5544 = vmatmul.mubr.bf16.gmra.mrb[200].mxu0 %v3182_v13 }
 0xa55   :  { %v5501_v6 = vpop.f32.mrb[172].mxu1 }
 0xa56   :  { %v3154_v8 = vpop.f32.mrb[173].mxu1 }
 0xa57   :  { %v5502_v9 = vpop.f32.mrb[174].mxu1 }
 0xa58   :  { %v3184_v18 = vpack.c.bf16 %v5502_v9, %v5501_v6  ;;  %v3157_v10 = vpop.f32.mrb[175].mxu1 }
 0xa59   :  { %v3183_v11 = vpack.c.bf16 %v3157_v10, %v3154_v8 }
 0xa5b   :  { %5547 = vmatprep.mubr.bf16.mxu0 %v3183_v11 }
 0xa5c   :  { %5548 = vmatmul.mubr.bf16.gmra.mrb[204].mxu0 %v3184_v18 }
 0xaf7   :  { %v5521_v21 = vpop.f32.mrb[176].mxu0 }
 0xaf8   :  { %v3301_v22 = vadd.f32 %v5521_v21, %v6446_v7  ;;  %v3292_v23 = vpop.f32.mrb[177].mxu0 }
 0xaf9   :  { %v3293_v24 = vadd.f32 %v6446_v7, %v3292_v23  ;;  %v5522_v25 = vpop.f32.mrb[178].mxu0 }
 0xafa   :  { %v3304_v26 = vadd.f32 %v5522_v25, %v6446_v7  ;;  %v3295_v27 = vpop.f32.mrb[179].mxu0  ;;  %v3421_v29 = vmax.f32 %v3301_v22, 0.0 }
 0xafb   :  { %v3296_v28 = vadd.f32 %v6446_v7, %v3295_v27  ;;  %v3419_v31 = vmax.f32 %v3293_v24, 0.0 }
 0xafc   :  { %v3422_v30 = vmax.f32 %v3304_v26, 0.0 }
 0xafd   :  { %v3420_v32 = vmax.f32 %v3296_v28, 0.0 }
 0xafe   :  { %v3452_v33 = vpack.c.bf16 %v3422_v30, %v3421_v29 }
 0xaff   :  { %v3451_v34 = vpack.c.bf16 %v3420_v32, %v3419_v31  ;;  %v5525_v35 = vpop.f32.mrb[180].mxu0 }
 0xb00   :  { %v3317_v36 = vadd.f32 %v5525_v35, %v6446_v7  ;;  %v3308_v37 = vpop.f32.mrb[181].mxu0 }
 0xb01   :  { %v3309_v39 = vadd.f32 %v6446_v7, %v3308_v37  ;;  %v5526_v40 = vpop.f32.mrb[182].mxu0  ;;  %5567 = vmatprep.mubr.bf16.mxu1 %v3451_v34 }
 0xb02   :  { %v3320_v41 = vadd.f32 %v5526_v40, %v6446_v7  ;;  %v3311_v42 = vpop.f32.mrb[183].mxu0  ;;  %5568 = vmatmul.mubr.bf16.vlgmr.msra.gmra.mrb[176].mxu1 %v3452_v33  ;;  %v3425_v44 = vmax.f32 %v3317_v36, 0.0 }
 0xb03   :  { %v3312_v43 = vadd.f32 %v6446_v7, %v3311_v42  ;;  %v3423_v46 = vmax.f32 %v3309_v39, 0.0 }
 0xb04   :  { %v3426_v45 = vmax.f32 %v3320_v41, 0.0 }
 0xb05   :  { %v3424_v47 = vmax.f32 %v3312_v43, 0.0 }
 0xb06   :  { %v3454_v48 = vpack.c.bf16 %v3426_v45, %v3425_v44 }
 0xb07   :  { %v3453_v49 = vpack.c.bf16 %v3424_v47, %v3423_v46  ;;  %v5529_v50 = vpop.f32.mrb[184].mxu0 }
 0xb08   :  { %v3333_v51 = vadd.f32 %v5529_v50, %v6446_v7  ;;  %v3324_v52 = vpop.f32.mrb[185].mxu0 }
 0xb09   :  { %v3325_v53 = vadd.f32 %v6446_v7, %v3324_v52  ;;  %v5530_v54 = vpop.f32.mrb[186].mxu0  ;;  %5571 = vmatprep.mubr.bf16.mxu1 %v3453_v49 }
 0xb0a   :  { %v3336_v55 = vadd.f32 %v5530_v54, %v6446_v7  ;;  %v3327_v56 = vpop.f32.mrb[187].mxu0  ;;  %5572 = vmatmul.mubr.bf16.gmra.mrb[180].mxu1 %v3454_v48  ;;  %v3429_v58 = vmax.f32 %v3333_v51, 0.0 }
 0xb0b   :  { %v3328_v57 = vadd.f32 %v6446_v7, %v3327_v56  ;;  %v3427_v60 = vmax.f32 %v3325_v53, 0.0 }
 0xb0c   :  { %v3430_v59 = vmax.f32 %v3336_v55, 0.0 }
 0xb0d   :  { %v3428_v61 = vmax.f32 %v3328_v57, 0.0 }
 0xb0e   :  { %v3456_v62 = vpack.c.bf16 %v3430_v59, %v3429_v58 }
 0xb0f   :  { %v3455_v63 = vpack.c.bf16 %v3428_v61, %v3427_v60  ;;  %v5533_v0 = vpop.f32.mrb[188].mxu0 }
 0xb10   :  { %v3349_v1 = vadd.f32 %v5533_v0, %v6446_v7  ;;  %v3340_v2 = vpop.f32.mrb[189].mxu0 }
 0xb11   :  { %v3341_v3 = vadd.f32 %v6446_v7, %v3340_v2  ;;  %v5534_v13 = vpop.f32.mrb[190].mxu0  ;;  %5575 = vmatprep.mubr.bf16.mxu1 %v3455_v63 }
 0xb12   :  { %v3352_v4 = vadd.f32 %v5534_v13, %v6446_v7  ;;  %v3343_v5 = vpop.f32.mrb[191].mxu0  ;;  %5576 = vmatmul.mubr.bf16.gmra.mrb[184].mxu1 %v3456_v62  ;;  %v3433_v8 = vmax.f32 %v3349_v1, 0.0 }
 0xb13   :  { %v3344_v6 = vadd.f32 %v6446_v7, %v3343_v5  ;;  %v3431_v18 = vmax.f32 %v3341_v3, 0.0 }
 0xb14   :  { %v3434_v9 = vmax.f32 %v3352_v4, 0.0 }
 0xb15   :  { %v3432_v10 = vmax.f32 %v3344_v6, 0.0  ;;  %v5856_v6 = vld [vmem:[#allocation8 + $0x2b0] sm:$0xff]  }
 0xb16   :  { %v3458_v11 = vpack.c.bf16 %v3434_v9, %v3433_v8  ;;  %5611 = vmatprep.subr.bf16.mxu0 %v5856_v6  ;;  %v5857_v8 = vld [vmem:[#allocation8 + $0x2b8] sm:$0xff]   ;;  %v6483_v9 = vld [vmem:[%s6620_s4 + $0x9] ss:$0 sm:$0xff] }
 0xb17   :  { %v3457_v12 = vpack.c.bf16 %v3432_v10, %v3431_v18  ;;  %v5537_v14 = vpop.f32.mrb[192].mxu0  ;;  %5612 = vmatpush3.bf16.msra.mxu0 %v5856_v6 }
 0xb18   :  { %v3365_v15 = vadd.f32 %v5537_v14, %v6446_v7  ;;  %v3356_v19 = vpop.f32.mrb[193].mxu0  ;;  %5613 = vmatprep.subr.bf16.mxu0 %v5857_v8 }
 0xb19   :  { %v3357_v20 = vadd.f32 %v6446_v7, %v3356_v19  ;;  %v5538_v16 = vpop.f32.mrb[194].mxu0  ;;  %5579 = vmatprep.mubr.bf16.mxu1 %v3457_v12 }
 0xb1a   :  { %v3368_v38 = vadd.f32 %v5538_v16, %v6446_v7  ;;  %v3359_v17 = vpop.f32.mrb[195].mxu0  ;;  %5580 = vmatmul.mubr.bf16.gmra.mrb[188].mxu1 %v3458_v11  ;;  %v3437_v22 = vmax.f32 %v3365_v15, 0.0 }
 0xb1b   :  { %v3360_v21 = vadd.f32 %v6446_v7, %v3359_v17  ;;  %v3435_v24 = vmax.f32 %v3357_v20, 0.0  ;;  %5614 = vmatpush3.bf16.msra.mxu0 %v5857_v8 }
 0xb1c   :  { %v3438_v23 = vmax.f32 %v3368_v38, 0.0 }
 0xb1d   :  { %v3436_v25 = vmax.f32 %v3360_v21, 0.0 }
 0xb1e   :  { %v3460_v26 = vpack.c.bf16 %v3438_v23, %v3437_v22 }
 0xb1f   :  { %v3459_v27 = vpack.c.bf16 %v3436_v25, %v3435_v24  ;;  %v5541_v28 = vpop.f32.mrb[196].mxu0 }
 0xb20   :  { %v3381_v29 = vadd.f32 %v5541_v28, %v6446_v7  ;;  %v3372_v30 = vpop.f32.mrb[197].mxu0 }
 0xb21   :  { %v3373_v31 = vadd.f32 %v6446_v7, %v3372_v30  ;;  %v5542_v32 = vpop.f32.mrb[198].mxu0  ;;  %5583 = vmatprep.mubr.bf16.mxu1 %v3459_v27 }
 0xb22   :  { %v3384_v33 = vadd.f32 %v5542_v32, %v6446_v7  ;;  %v3375_v34 = vpop.f32.mrb[199].mxu0  ;;  %5584 = vmatmul.mubr.bf16.gmra.mrb[192].mxu1 %v3460_v26  ;;  %v3441_v36 = vmax.f32 %v3381_v29, 0.0 }
 0xb23   :  { %v3376_v35 = vadd.f32 %v6446_v7, %v3375_v34  ;;  %v3439_v39 = vmax.f32 %v3373_v31, 0.0 }
 0xb24   :  { %v3442_v37 = vmax.f32 %v3384_v33, 0.0 }
 0xb25   :  { %v3440_v40 = vmax.f32 %v3376_v35, 0.0 }
 0xb26   :  { %v3462_v41 = vpack.c.bf16 %v3442_v37, %v3441_v36 }
 0xb27   :  { %v3461_v42 = vpack.c.bf16 %v3440_v40, %v3439_v39  ;;  %v5545_v43 = vpop.f32.mrb[200].mxu0 }
 0xb28   :  { %v3397_v44 = vadd.f32 %v5545_v43, %v6446_v7  ;;  %v3388_v45 = vpop.f32.mrb[201].mxu0 }
 0xb29   :  { %v3389_v46 = vadd.f32 %v6446_v7, %v3388_v45  ;;  %v5546_v47 = vpop.f32.mrb[202].mxu0  ;;  %5587 = vmatprep.mubr.bf16.mxu1 %v3461_v42 }
 0xb2a   :  { %v3400_v48 = vadd.f32 %v5546_v47, %v6446_v7  ;;  %v3391_v49 = vpop.f32.mrb[203].mxu0  ;;  %5588 = vmatmul.mubr.bf16.gmra.mrb[196].mxu1 %v3462_v41  ;;  %v3445_v51 = vmax.f32 %v3397_v44, 0.0 }
 0xb2b   :  { %v3392_v50 = vadd.f32 %v6446_v7, %v3391_v49  ;;  %v3443_v53 = vmax.f32 %v3389_v46, 0.0 }
 0xb2c   :  { %v3446_v52 = vmax.f32 %v3400_v48, 0.0 }
 0xb2d   :  { %v3444_v54 = vmax.f32 %v3392_v50, 0.0 }
 0xb2e   :  { %v3464_v55 = vpack.c.bf16 %v3446_v52, %v3445_v51 }
 0xb2f   :  { %v3463_v56 = vpack.c.bf16 %v3444_v54, %v3443_v53  ;;  %v5549_v57 = vpop.f32.mrb[204].mxu0 }
 0xb30   :  { %v3413_v58 = vadd.f32 %v5549_v57, %v6446_v7  ;;  %v3404_v59 = vpop.f32.mrb[205].mxu0 }
 0xb31   :  { %v3405_v60 = vadd.f32 %v6446_v7, %v3404_v59  ;;  %v5550_v61 = vpop.f32.mrb[206].mxu0  ;;  %5591 = vmatprep.mubr.bf16.mxu1 %v3463_v56 }
 0xb32   :  { %v3416_v62 = vadd.f32 %v5550_v61, %v6446_v7  ;;  %v3407_v63 = vpop.f32.mrb[207].mxu0  ;;  %5592 = vmatmul.mubr.bf16.gmra.mrb[200].mxu1 %v3464_v55  ;;  %v3449_v1 = vmax.f32 %v3413_v58, 0.0 }
 0xb33   :  { %v3408_v0 = vadd.f32 %v6446_v7, %v3407_v63  ;;  %v3447_v3 = vmax.f32 %v3405_v60, 0.0 }
 0xb34   :  { %v3450_v2 = vmax.f32 %v3416_v62, 0.0 }
 0xb35   :  { %v3448_v13 = vmax.f32 %v3408_v0, 0.0 }
 0xb36   :  { %v3466_v4 = vpack.c.bf16 %v3450_v2, %v3449_v1 }
 0xb37   :  { %v3465_v5 = vpack.c.bf16 %v3448_v13, %v3447_v3 }
 0xb39   :  { %5595 = vmatprep.mubr.bf16.mxu1 %v3465_v5 }
 0xb3a   :  { %5596 = vmatmul.mubr.bf16.gmra.mrb[204].mxu1 %v3466_v4 }
 0xbd5   :  { %v5569_v7 = vpop.f32.mrb[176].mxu1 }
 0xbd6   :  { %v3583_v18 = vadd.f32 %v5569_v7, %v6483_v9  ;;  %v3574_v10 = vpop.f32.mrb[177].mxu1 }
 0xbd7   :  { %v3575_v11 = vadd.f32 %v6483_v9, %v3574_v10  ;;  %v5570_v12 = vpop.f32.mrb[178].mxu1 }
 0xbd8   :  { %v3586_v14 = vadd.f32 %v5570_v12, %v6483_v9  ;;  %v3577_v15 = vpop.f32.mrb[179].mxu1  ;;  %v3703_v20 = vmax.f32 %v3583_v18, 0.0 }
 0xbd9   :  { %v3578_v19 = vadd.f32 %v6483_v9, %v3577_v15  ;;  %v3701_v38 = vmax.f32 %v3575_v11, 0.0 }
 0xbda   :  { %v3704_v16 = vmax.f32 %v3586_v14, 0.0 }
 0xbdb   :  { %v3702_v17 = vmax.f32 %v3578_v19, 0.0 }
 0xbdc   :  { %v3734_v21 = vpack.c.bf16 %v3704_v16, %v3703_v20 }
 0xbdd   :  { %v3733_v22 = vpack.c.bf16 %v3702_v17, %v3701_v38  ;;  %v5573_v23 = vpop.f32.mrb[180].mxu1 }
 0xbde   :  { %v3599_v24 = vadd.f32 %v5573_v23, %v6483_v9  ;;  %v3590_v25 = vpop.f32.mrb[181].mxu1 }
 0xbdf   :  { %v3591_v26 = vadd.f32 %v6483_v9, %v3590_v25  ;;  %v5574_v27 = vpop.f32.mrb[182].mxu1  ;;  %5615 = vmatprep.mubr.bf16.mxu0 %v3733_v22 }
 0xbe0   :  { %v3602_v28 = vadd.f32 %v5574_v27, %v6483_v9  ;;  %v3593_v29 = vpop.f32.mrb[183].mxu1  ;;  %5616 = vmatmul.mubr.bf16.vlgmr.msra.gmra.mrb[208].mxu0 %v3734_v21  ;;  %v3707_v31 = vmax.f32 %v3599_v24, 0.0 }
 0xbe1   :  { %v3594_v30 = vadd.f32 %v6483_v9, %v3593_v29  ;;  %v3705_v33 = vmax.f32 %v3591_v26, 0.0 }
 0xbe2   :  { %v3708_v32 = vmax.f32 %v3602_v28, 0.0 }
 0xbe3   :  { %v3706_v34 = vmax.f32 %v3594_v30, 0.0 }
 0xbe4   :  { %v3736_v35 = vpack.c.bf16 %v3708_v32, %v3707_v31 }
 0xbe5   :  { %v3735_v36 = vpack.c.bf16 %v3706_v34, %v3705_v33  ;;  %v5577_v37 = vpop.f32.mrb[184].mxu1 }
 0xbe6   :  { %v3615_v39 = vadd.f32 %v5577_v37, %v6483_v9  ;;  %v3606_v40 = vpop.f32.mrb[185].mxu1 }
 0xbe7   :  { %v3607_v41 = vadd.f32 %v6483_v9, %v3606_v40  ;;  %v5578_v42 = vpop.f32.mrb[186].mxu1  ;;  %5619 = vmatprep.mubr.bf16.mxu0 %v3735_v36 }
 0xbe8   :  { %v3618_v43 = vadd.f32 %v5578_v42, %v6483_v9  ;;  %v3609_v44 = vpop.f32.mrb[187].mxu1  ;;  %5620 = vmatmul.mubr.bf16.gmra.mrb[212].mxu0 %v3736_v35  ;;  %v3711_v46 = vmax.f32 %v3615_v39, 0.0 }
 0xbe9   :  { %v3610_v45 = vadd.f32 %v6483_v9, %v3609_v44  ;;  %v3709_v48 = vmax.f32 %v3607_v41, 0.0 }
 0xbea   :  { %v3712_v47 = vmax.f32 %v3618_v43, 0.0 }
 0xbeb   :  { %v3710_v49 = vmax.f32 %v3610_v45, 0.0 }
 0xbec   :  { %v3738_v50 = vpack.c.bf16 %v3712_v47, %v3711_v46 }
 0xbed   :  { %v3737_v51 = vpack.c.bf16 %v3710_v49, %v3709_v48  ;;  %v5581_v52 = vpop.f32.mrb[188].mxu1 }
 0xbee   :  { %v3631_v53 = vadd.f32 %v5581_v52, %v6483_v9  ;;  %v3622_v54 = vpop.f32.mrb[189].mxu1 }
 0xbef   :  { %v3623_v55 = vadd.f32 %v6483_v9, %v3622_v54  ;;  %v5582_v56 = vpop.f32.mrb[190].mxu1  ;;  %5623 = vmatprep.mubr.bf16.mxu0 %v3737_v51 }
 0xbf0   :  { %v3634_v57 = vadd.f32 %v5582_v56, %v6483_v9  ;;  %v3625_v58 = vpop.f32.mrb[191].mxu1  ;;  %5624 = vmatmul.mubr.bf16.gmra.mrb[216].mxu0 %v3738_v50  ;;  %v3715_v60 = vmax.f32 %v3631_v53, 0.0 }
 0xbf1   :  { %v3626_v59 = vadd.f32 %v6483_v9, %v3625_v58  ;;  %v3713_v62 = vmax.f32 %v3623_v55, 0.0 }
 0xbf2   :  { %v3716_v61 = vmax.f32 %v3634_v57, 0.0 }
 0xbf3   :  { %v3714_v63 = vmax.f32 %v3626_v59, 0.0  ;;  %v6038_v59 = vmov 0.0  }
 0xbf4   :  { %v3740_v0 = vpack.c.bf16 %v3716_v61, %v3715_v60  ;;  %5647 = vmatprep.subr.bf16.mxu1 %v6038_v59  ;;  %5687 = vmatprep.subr.bf16.mxu0 %v6038_v59  ;;  %v5859_v60 = vld [vmem:[#allocation8 + $0x2c8] sm:$0xff]   ;;  %v5860_v61 = vld [vmem:[#allocation8 + $0x2d0] sm:$0xff]  }
 0xbf5   :  { %v3739_v1 = vpack.c.bf16 %v3714_v63, %v3713_v62  ;;  %v5585_v2 = vpop.f32.mrb[192].mxu1  ;;  %5663 = vmatprep.mubr.msk.bf16.mxu1 %vm6039_vm0, %v6038_v59  ;;  %v5861_v62 = vld [vmem:[#allocation8 + $0x2d8] sm:$0xff]   ;;  %v5862_v63 = vld [vmem:[#allocation8 + $0x2e0] sm:$0xff]  }
 0xbf6   :  { %v3647_v3 = vadd.f32 %v5585_v2, %v6483_v9  ;;  %v3638_v13 = vpop.f32.mrb[193].mxu1  ;;  %v6532_v2 = vld [vmem:[%s6620_s4 + $0xa] ss:$0 sm:$0xff] }
 0xbf7   :  { %v3639_v4 = vadd.f32 %v6483_v9, %v3638_v13  ;;  %v5586_v5 = vpop.f32.mrb[194].mxu1  ;;  %5627 = vmatprep.mubr.bf16.mxu0 %v3739_v1 }
 0xbf8   :  { %v3650_v6 = vadd.f32 %v5586_v5, %v6483_v9  ;;  %v3641_v8 = vpop.f32.mrb[195].mxu1  ;;  %5628 = vmatmul.mubr.bf16.gmra.mrb[220].mxu0 %v3740_v0  ;;  %v3719_v18 = vmax.f32 %v3647_v3, 0.0  ;;  %v5863_v0 = vld [vmem:[#allocation8 + $0x2e8] sm:$0xff]  }
 0xbf9   :  { %v3642_v7 = vadd.f32 %v6483_v9, %v3641_v8  ;;  %v3717_v11 = vmax.f32 %v3639_v4, 0.0 }
 0xbfa   :  { %v3720_v10 = vmax.f32 %v3650_v6, 0.0 }
 0xbfb   :  { %v3718_v12 = vmax.f32 %v3642_v7, 0.0 }
 0xbfc   :  { %v3742_v14 = vpack.c.bf16 %v3720_v10, %v3719_v18 }
 0xbfd   :  { %v3741_v15 = vpack.c.bf16 %v3718_v12, %v3717_v11  ;;  %v5589_v19 = vpop.f32.mrb[196].mxu1 }
 0xbfe   :  { %v3663_v20 = vadd.f32 %v5589_v19, %v6483_v9  ;;  %v3654_v16 = vpop.f32.mrb[197].mxu1 }
 0xbff   :  { %v3655_v38 = vadd.f32 %v6483_v9, %v3654_v16  ;;  %v5590_v17 = vpop.f32.mrb[198].mxu1  ;;  %5631 = vmatprep.mubr.bf16.mxu0 %v3741_v15 }
 0xc00   :  { %v3666_v21 = vadd.f32 %v5590_v17, %v6483_v9  ;;  %v3657_v22 = vpop.f32.mrb[199].mxu1  ;;  %5632 = vmatmul.mubr.bf16.gmra.mrb[224].mxu0 %v3742_v14  ;;  %v3723_v24 = vmax.f32 %v3663_v20, 0.0 }
 0xc01   :  { %v3658_v23 = vadd.f32 %v6483_v9, %v3657_v22  ;;  %v3721_v26 = vmax.f32 %v3655_v38, 0.0 }
 0xc02   :  { %v3724_v25 = vmax.f32 %v3666_v21, 0.0 }
 0xc03   :  { %v3722_v27 = vmax.f32 %v3658_v23, 0.0 }
 0xc04   :  { %v3744_v28 = vpack.c.bf16 %v3724_v25, %v3723_v24 }
 0xc05   :  { %v3743_v29 = vpack.c.bf16 %v3722_v27, %v3721_v26  ;;  %v5593_v30 = vpop.f32.mrb[200].mxu1 }
 0xc06   :  { %v3679_v31 = vadd.f32 %v5593_v30, %v6483_v9  ;;  %v3670_v32 = vpop.f32.mrb[201].mxu1 }
 0xc07   :  { %v3671_v33 = vadd.f32 %v6483_v9, %v3670_v32  ;;  %v5594_v34 = vpop.f32.mrb[202].mxu1  ;;  %5635 = vmatprep.mubr.bf16.mxu0 %v3743_v29 }
 0xc08   :  { %v3682_v35 = vadd.f32 %v5594_v34, %v6483_v9  ;;  %v3673_v36 = vpop.f32.mrb[203].mxu1  ;;  %5636 = vmatmul.mubr.bf16.gmra.mrb[228].mxu0 %v3744_v28  ;;  %v3727_v39 = vmax.f32 %v3679_v31, 0.0 }
 0xc09   :  { %v3674_v37 = vadd.f32 %v6483_v9, %v3673_v36  ;;  %v3725_v41 = vmax.f32 %v3671_v33, 0.0 }
 0xc0a   :  { %v3728_v40 = vmax.f32 %v3682_v35, 0.0 }
 0xc0b   :  { %v3726_v42 = vmax.f32 %v3674_v37, 0.0 }
 0xc0c   :  { %v3746_v43 = vpack.c.bf16 %v3728_v40, %v3727_v39 }
 0xc0d   :  { %v3745_v44 = vpack.c.bf16 %v3726_v42, %v3725_v41  ;;  %v5597_v45 = vpop.f32.mrb[204].mxu1 }
 0xc0e   :  { %v3695_v46 = vadd.f32 %v5597_v45, %v6483_v9  ;;  %v3686_v47 = vpop.f32.mrb[205].mxu1 }
 0xc0f   :  { %v3687_v48 = vadd.f32 %v6483_v9, %v3686_v47  ;;  %v5598_v49 = vpop.f32.mrb[206].mxu1  ;;  %5639 = vmatprep.mubr.bf16.mxu0 %v3745_v44 }
 0xc10   :  { %v3698_v50 = vadd.f32 %v5598_v49, %v6483_v9  ;;  %v3689_v51 = vpop.f32.mrb[207].mxu1  ;;  %5640 = vmatmul.mubr.bf16.gmra.mrb[232].mxu0 %v3746_v43  ;;  %v3731_v53 = vmax.f32 %v3695_v46, 0.0 }
 0xc11   :  { %v3690_v52 = vadd.f32 %v6483_v9, %v3689_v51  ;;  %v3729_v55 = vmax.f32 %v3687_v48, 0.0  ;;  %v5858_v9 = vld [vmem:[#allocation8 + $0x2c0] sm:$0xff]   ;;  %v3999_v51 = vld [vmem:[#allocation5] sm:$0xf] }
 0xc12   :  { %v3732_v54 = vmax.f32 %v3698_v50, 0.0  ;;  %5688 = vmatpush3.bf16.msra.mxu0 %v5858_v9 }
 0xc13   :  { %v3730_v56 = vmax.f32 %v3690_v52, 0.0  ;;  %5689 = vmatprep.subr.bf16.mxu0 %v6038_v59 }
 0xc14   :  { %v3748_v57 = vpack.c.bf16 %v3732_v54, %v3731_v53 }
 0xc15   :  { %v3747_v58 = vpack.c.bf16 %v3730_v56, %v3729_v55 }
 0xc16   :  { %5690 = vmatpush3.bf16.msra.mxu0 %v5859_v60 }
 0xc17   :  { %5643 = vmatprep.mubr.bf16.mxu0 %v3747_v58  ;;  %5691 = vmatprep.subr.bf16.mxu0 %v6038_v59 }
 0xc18   :  { %5644 = vmatmul.mubr.bf16.gmra.mrb[236].mxu0 %v3748_v57 }
 0xc19   :  { %5703 = vmatprep.mubr.msk.bf16.mxu0 %vm6039_vm0, %v6038_v59 }
 0xc1a   :  { %5692 = vmatpush3.bf16.msra.mxu0 %v5860_v61 }
 0xc1b   :  { %5693 = vmatprep.subr.bf16.mxu0 %v6038_v59 }
 0xc1e   :  { %5694 = vmatpush3.bf16.msra.mxu0 %v5861_v62 }
 0xc1f   :  { %5695 = vmatprep.subr.bf16.mxu0 %v6038_v59 }
 0xc22   :  { %5696 = vmatpush3.bf16.msra.mxu0 %v5862_v63 }
 0xc23   :  { %5697 = vmatprep.subr.bf16.mxu0 %v6038_v59 }
 0xc26   :  { %5698 = vmatpush3.bf16.msra.mxu0 %v5863_v0 }
 0xc27   :  { %5699 = vmatprep.subr.bf16.mxu0 %v6038_v59 }
 0xcb3   :  { %v5617_v1 = vpop.f32.mrb[208].mxu0 }
 0xcb4   :  { %v3856_v3 = vpop.f32.mrb[209].mxu0  ;;  %v3865_v4 = vadd.f32 %v5617_v1, %v6532_v2 }
 0xcb5   :  { %v5618_v13 = vpop.f32.mrb[210].mxu0  ;;  %v3857_v8 = vadd.f32 %v6532_v2, %v3856_v3 }
 0xcb6   :  { %v3868_v5 = vadd.f32 %v5618_v13, %v6532_v2  ;;  %v3859_v6 = vpop.f32.mrb[211].mxu0 }
 0xcb7   :  { %v3860_v7 = vadd.f32 %v6532_v2, %v3859_v6 }
 0xcb8   :  { %v3984_v18 = vpack.c.bf16 %v3868_v5, %v3865_v4 }
 0xcb9   :  { %v3983_v10 = vpack.c.bf16 %v3860_v7, %v3857_v8 }
 0xcbb   :  { %v5621_v11 = vpop.f32.mrb[212].mxu0  ;;  %5648 = vmatpush3.bf16.msra.mxu1 %v3983_v10 }
 0xcbc   :  { %v3872_v12 = vpop.f32.mrb[213].mxu0  ;;  %5649 = vmatprep.subr.bf16.mxu1 %v6038_v59  ;;  %v3881_v15 = vadd.f32 %v5621_v11, %v6532_v2 }
 0xcbd   :  { %v5622_v14 = vpop.f32.mrb[214].mxu0  ;;  %v3873_v16 = vadd.f32 %v6532_v2, %v3872_v12 }
 0xcbe   :  { %v3884_v19 = vadd.f32 %v5622_v14, %v6532_v2  ;;  %v3875_v20 = vpop.f32.mrb[215].mxu0 }
 0xcbf   :  { %v3876_v38 = vadd.f32 %v6532_v2, %v3875_v20  ;;  %5650 = vmatpush3.bf16.msra.mxu1 %v3984_v18 }
 0xcc0   :  { %v3986_v17 = vpack.c.bf16 %v3884_v19, %v3881_v15  ;;  %5651 = vmatprep.subr.bf16.mxu1 %v6038_v59 }
 0xcc1   :  { %v3985_v21 = vpack.c.bf16 %v3876_v38, %v3873_v16 }
 0xcc3   :  { %v5625_v22 = vpop.f32.mrb[216].mxu0  ;;  %5652 = vmatpush3.bf16.msra.mxu1 %v3985_v21  ;;  %v4000_v21 = vld [vmem:[#allocation5 + $0x4] sm:$0xf] }
 0xcc4   :  { %v3888_v23 = vpop.f32.mrb[217].mxu0  ;;  %5653 = vmatprep.subr.bf16.mxu1 %v6038_v59  ;;  %v3897_v25 = vadd.f32 %v5625_v22, %v6532_v2  ;;  %v5864_v22 = vld [vmem:[#allocation8 + $0x2f0] sm:$0xff]  }
 0xcc5   :  { %v5626_v24 = vpop.f32.mrb[218].mxu0  ;;  %v3889_v28 = vadd.f32 %v6532_v2, %v3888_v23  ;;  %5700 = vmatpush3.bf16.msra.mxu0 %v5864_v22  ;;  %v5866_v23 = vld [vmem:[#allocation8 + $0x300] sm:$0xff]  }
 0xcc6   :  { %v3900_v26 = vadd.f32 %v5626_v24, %v6532_v2  ;;  %v3891_v27 = vpop.f32.mrb[219].mxu0  ;;  %5701 = vmatprep.subr.bf16.mxu0 %v6038_v59  ;;  %v5867_v24 = vld [vmem:[#allocation8 + $0x308] sm:$0xff]  }
 0xcc7   :  { %v3892_v29 = vadd.f32 %v6532_v2, %v3891_v27  ;;  %5654 = vmatpush3.bf16.msra.mxu1 %v3986_v17  ;;  %v5870_v27 = vld [vmem:[#allocation8 + $0x320] sm:$0xff]  }
 0xcc8   :  { %v3988_v30 = vpack.c.bf16 %v3900_v26, %v3897_v25  ;;  %5655 = vmatprep.subr.bf16.mxu1 %v6038_v59  ;;  %v5868_v25 = vld [vmem:[#allocation8 + $0x310] sm:$0xff]   ;;  %v5869_v26 = vld [vmem:[#allocation8 + $0x318] sm:$0xff]  }
 0xcc9   :  { %v3987_v31 = vpack.c.bf16 %v3892_v29, %v3889_v28  ;;  %v5871_v28 = vld [vmem:[#allocation8 + $0x328] sm:$0xff]  }
 0xccb   :  { %v5629_v32 = vpop.f32.mrb[220].mxu0  ;;  %5656 = vmatpush3.bf16.msra.mxu1 %v3987_v31 }
 0xccc   :  { %v3904_v33 = vpop.f32.mrb[221].mxu0  ;;  %5657 = vmatprep.subr.bf16.mxu1 %v6038_v59  ;;  %v3913_v35 = vadd.f32 %v5629_v32, %v6532_v2 }
 0xccd   :  { %v5630_v34 = vpop.f32.mrb[222].mxu0  ;;  %v3905_v39 = vadd.f32 %v6532_v2, %v3904_v33 }
 0xcce   :  { %v3916_v36 = vadd.f32 %v5630_v34, %v6532_v2  ;;  %v3907_v37 = vpop.f32.mrb[223].mxu0 }
 0xccf   :  { %v3908_v40 = vadd.f32 %v6532_v2, %v3907_v37  ;;  %5658 = vmatpush3.bf16.msra.mxu1 %v3988_v30 }
 0xcd0   :  { %v3990_v41 = vpack.c.bf16 %v3916_v36, %v3913_v35  ;;  %5659 = vmatprep.subr.bf16.mxu1 %v6038_v59 }
 0xcd1   :  { %v3989_v42 = vpack.c.bf16 %v3908_v40, %v3905_v39  ;;  %v5872_v39 = vld [vmem:[#allocation8 + $0x330] sm:$0xff]   ;;  %v5873_v40 = vld [vmem:[#allocation8 + $0x338] sm:$0xff]  }
 0xcd3   :  { %v5633_v43 = vpop.f32.mrb[224].mxu0  ;;  %5660 = vmatpush3.bf16.msra.mxu1 %v3989_v42 }
 0xcd4   :  { %v3920_v44 = vpop.f32.mrb[225].mxu0  ;;  %5661 = vmatprep.subr.bf16.mxu1 %v6038_v59  ;;  %v3929_v46 = vadd.f32 %v5633_v43, %v6532_v2 }
 0xcd5   :  { %v5634_v45 = vpop.f32.mrb[226].mxu0  ;;  %v3921_v49 = vadd.f32 %v6532_v2, %v3920_v44 }
 0xcd6   :  { %v3932_v47 = vadd.f32 %v5634_v45, %v6532_v2  ;;  %v3923_v48 = vpop.f32.mrb[227].mxu0 }
 0xcd7   :  { %v3924_v50 = vadd.f32 %v6532_v2, %v3923_v48  ;;  %5662 = vmatpush3.bf16.msra.mxu1 %v3990_v41  ;;  %v4510_v41 = vld [vmem:[%s6620_s4 + $0xb] ss:$0 sm:$0xff] }
 0xcd8   :  { %v3992_v52 = vpack.c.bf16 %v3932_v47, %v3929_v46  ;;  %5667 = vmatprep.subr.bf16.mxu1 %v6038_v59 }
 0xcd9   :  { %v3991_v53 = vpack.c.bf16 %v3924_v50, %v3921_v49 }
 0xcda   :  { %5664 = vmatmul.mubr.bf16.vlgmr.msra.gmra.mrb[208].mxu1 %v3999_v51  ;;  %v4320_v51 = vlaneseq }
 0xcdb   :  { %v5637_v54 = vpop.f32.mrb[228].mxu0  ;;  %5668 = vmatpush3.bf16.msra.mxu1 %v3991_v53  ;;  %5683 = vmatprep.mubr.msk.bf16.mxu1 %vm6039_vm0, %v6038_v59 }
 0xcdc   :  { %v3936_v55 = vpop.f32.mrb[229].mxu0  ;;  %5669 = vmatprep.subr.bf16.mxu1 %v6038_v59  ;;  %v3945_v57 = vadd.f32 %v5637_v54, %v6532_v2 }
 0xcdd   :  { %v5638_v56 = vpop.f32.mrb[230].mxu0  ;;  %v3937_v60 = vadd.f32 %v6532_v2, %v3936_v55 }
 0xcde   :  { %v3948_v58 = vadd.f32 %v5638_v56, %v6532_v2  ;;  %v3939_v9 = vpop.f32.mrb[231].mxu0 }
 0xcdf   :  { %v3940_v61 = vadd.f32 %v6532_v2, %v3939_v9  ;;  %5670 = vmatpush3.bf16.msra.mxu1 %v3992_v52  ;;  %v4321_v52 = vand.u32 127, %v4320_v51 }
 0xce0   :  { %v3994_v62 = vpack.c.bf16 %v3948_v58, %v3945_v57  ;;  %5671 = vmatprep.subr.bf16.mxu1 %v6038_v59 }
 0xce1   :  { %v3993_v63 = vpack.c.bf16 %v3940_v61, %v3937_v60  ;;  %vm4322_vm1 = vcmp.lt.s32.totalorder %v4321_v52, 4 }
 0xce3   :  { %v5641_v0 = vpop.f32.mrb[232].mxu0  ;;  %5672 = vmatpush3.bf16.msra.mxu1 %v3993_v63 }
 0xce4   :  { %v3952_v1 = vpop.f32.mrb[233].mxu0  ;;  %5673 = vmatprep.subr.bf16.mxu1 %v6038_v59  ;;  %v3961_v13 = vadd.f32 %v5641_v0, %v6532_v2 }
 0xce5   :  { %v5642_v3 = vpop.f32.mrb[234].mxu0  ;;  %v3953_v6 = vadd.f32 %v6532_v2, %v3952_v1 }
 0xce6   :  { %v3964_v4 = vadd.f32 %v5642_v3, %v6532_v2  ;;  %v3955_v5 = vpop.f32.mrb[235].mxu0 }
 0xce7   :  { %v3956_v8 = vadd.f32 %v6532_v2, %v3955_v5  ;;  %5674 = vmatpush3.bf16.msra.mxu1 %v3994_v62 }
 0xce8   :  { %v3996_v7 = vpack.c.bf16 %v3964_v4, %v3961_v13  ;;  %5675 = vmatprep.subr.bf16.mxu1 %v6038_v59 }
 0xce9   :  { %v3995_v18 = vpack.c.bf16 %v3956_v8, %v3953_v6 }
 0xceb   :  { %v5645_v10 = vpop.f32.mrb[236].mxu0  ;;  %5676 = vmatpush3.bf16.msra.mxu1 %v3995_v18 }
 0xcec   :  { %v3968_v11 = vpop.f32.mrb[237].mxu0  ;;  %5677 = vmatprep.subr.bf16.mxu1 %v6038_v59  ;;  %v3977_v14 = vadd.f32 %v5645_v10, %v6532_v2 }
 0xced   :  { %v5646_v12 = vpop.f32.mrb[238].mxu0  ;;  %v3969_v20 = vadd.f32 %v6532_v2, %v3968_v11 }
 0xcee   :  { %v3980_v15 = vadd.f32 %v5646_v12, %v6532_v2  ;;  %v3971_v19 = vpop.f32.mrb[239].mxu0 }
 0xcef   :  { %v3972_v16 = vadd.f32 %v6532_v2, %v3971_v19  ;;  %5678 = vmatpush3.bf16.msra.mxu1 %v3996_v7  ;;  %v5865_v2 = vld [vmem:[#allocation8 + $0x2f8] sm:$0xff]  }
 0xcf0   :  { %v3998_v38 = vpack.c.bf16 %v3980_v15, %v3977_v14  ;;  %5679 = vmatprep.subr.bf16.mxu1 %v6038_v59  ;;  %5702 = vmatpush3.bf16.msra.mxu0 %v5865_v2 }
 0xcf1   :  { %v3997_v17 = vpack.c.bf16 %v3972_v16, %v3969_v20 }
 0xcf3   :  { %5680 = vmatpush3.bf16.msra.mxu1 %v3997_v17 }
 0xcf4   :  { %5681 = vmatprep.subr.bf16.mxu1 %v6038_v59 }
 0xcf7   :  { %5682 = vmatpush3.bf16.msra.mxu1 %v3998_v38 }
 0xcf8   :  { %5707 = vmatprep.subr.bf16.mxu1 %v6038_v59 }
 0xcfa   :  { %5684 = vmatmul.mubr.bf16.vlgmr.msra.gmra.mrb[212].mxu1 %v4000_v21 }
 0xcfb   :  { %5723 = vmatprep.mubr.msk.bf16.mxu1 %vm6039_vm0, %v6038_v59  ;;  %5708 = vmatpush3.bf16.msra.mxu1 %v5866_v23 }
 0xcfc   :  { %5709 = vmatprep.subr.bf16.mxu1 %v6038_v59 }
 0xcff   :  { %5710 = vmatpush3.bf16.msra.mxu1 %v5867_v24 }
 0xd00   :  { %5711 = vmatprep.subr.bf16.mxu1 %v6038_v59 }
 0xd03   :  { %5712 = vmatpush3.bf16.msra.mxu1 %v5868_v25 }
 0xd04   :  { %5713 = vmatprep.subr.bf16.mxu1 %v6038_v59 }
 0xd07   :  { %5714 = vmatpush3.bf16.msra.mxu1 %v5869_v26 }
 0xd08   :  { %5715 = vmatprep.subr.bf16.mxu1 %v6038_v59 }
 0xd0b   :  { %5716 = vmatpush3.bf16.msra.mxu1 %v5870_v27 }
 0xd0c   :  { %5717 = vmatprep.subr.bf16.mxu1 %v6038_v59 }
 0xd0f   :  { %5718 = vmatpush3.bf16.msra.mxu1 %v5871_v28 }
 0xd10   :  { %5719 = vmatprep.subr.bf16.mxu1 %v6038_v59 }
 0xd13   :  { %5720 = vmatpush3.bf16.msra.mxu1 %v5872_v39 }
 0xd14   :  { %5721 = vmatprep.subr.bf16.mxu1 %v6038_v59  ;;  %v4521_v59 = vld [vmem:[%s6620_s4 + $0xc] ss:$0 sm:$0xff]  ;;  %s6040_s4 = smov [#allocation10]  }
 0xd15   :  { %s4354_s15 = sshll.u32 %s6040_s4, 4  ;;  %s4355_s15 = int_to_ptr.vmem [resolvable:$true] %s4354_s15 }
 0xd16   :  { %s6002_s2 = scalar_lea.vmem %s4355_s15, 256  ;;  %p6007_p5 = scmp.lt.s32.totalorder %s4355_s15, %s4355_s15 }
 0xd17   :  { %5722 = vmatpush3.bf16.msra.mxu1 %v5873_v40  ;;  %p6003_p4 = scmp.ne.s32.totalorder %s4355_s15, %s6002_s2  ;;  %p6008_p6 = scmp.lt.s32.totalorder %s6002_s2, %s6002_s2 }
 0xd19   :  { %p6009_p7 = por %p6008_p6, %p6007_p5 }
 0xd1b   :  { %p6010_p8 = pnand %p6009_p7, %p6003_p4 }
 0xdad   :  { %v4035_v29 = vpop.f32.mrb[208].mxu1 }
 0xdae   :  { %v5665_v30 = vpop.f32.mrb[209].mxu1 }
 0xdaf   :  { %v4038_v31 = vpop.f32.mrb[210].mxu1 }
 0xdb0   :  { %v5666_v32 = vpop.f32.mrb[211].mxu1 }
 0xdcd   :  { %v4075_v33 = vpop.f32.mrb[212].mxu1 }
 0xdce   :  { %v4530_v34 = vpack.c.bf16 %v4075_v33, %v4035_v29  ;;  %v5685_v35 = vpop.f32.mrb[213].mxu1 }
 0xdcf   :  { %v4078_v36 = vpop.f32.mrb[214].mxu1 }
 0xdd0   :  { %5704 = vmatmul.mubr.bf16.vlgmr.msra.gmra.mrb[240].mxu0 %v4530_v34  ;;  %v5686_v37 = vpop.f32.mrb[215].mxu1 }
 0xea3   :  { %v4196_v42 = vpop.f32.mrb[240].mxu0 }
 0xea4   :  { %v4197_v43 = vadd.f32 %v4510_v41, %v4196_v42  ;;  %v5705_v44 = vpop.f32.mrb[241].mxu0 }
 0xea5   :  { %v4199_v45 = vpop.f32.mrb[242].mxu0 }
 0xea6   :  { %v4200_v46 = vadd.f32 %v4510_v41, %v4199_v45  ;;  %v5706_v47 = vpop.f32.mrb[243].mxu0  ;;  %v4203_v48 = vmax.f32 %v4197_v43, 0.0 }
 0xea8   :  { %v4204_v49 = vmax.f32 %v4200_v46, 0.0 }
 0xeaa   :  { %v4205_v50 = vpack.c.bf16 %v4204_v49, %v4203_v48 }
 0xeac   :  { %5724 = vmatmul.mubr.bf16.vlgmr.msra.gmra.mrb[216].mxu1 %v4205_v50 }
 0xf7f   :  { %v4313_v53 = vpop.f32.mrb[216].mxu1 }
 0xf80   :  { %v4314_v54 = vadd.f32 %v4521_v59, %v4313_v53  ;;  %v5725_v55 = vpop.f32.mrb[217].mxu1 }
 0xf81   :  { %v4316_v56 = vpop.f32.mrb[218].mxu1 }
 0xf82   :  { %v4317_v57 = vadd.f32 %v4521_v59, %v4316_v56  ;;  %v5726_v58 = vpop.f32.mrb[219].mxu1  ;;  %v4323_v9 = vsel %vm4322_vm1, %v4314_v54, -1e+30 }
 0xf83   :  { %4325 = vmax.xlane.f32.xlu0 %v4323_v9 }
 0xf84   :  { %v4324_v60 = vsel %vm4322_vm1, %v4317_v57, -1e+30 }
 0xf87   :  { %4327 = vmax.xlane.f32.xlu0 %v4324_v60 }
0x1010   :  { %v4326_v61 = vpop.xlane.xlu0 %4325 }
0x1011   :  { %v4329_v62 = vsub.f32 %v4323_v9, %v4326_v61 }
0x1013   :  { %v4331_v63 = vmul.f32 1.442695, %v4329_v62 }
0x1014   :  { %v4328_v0 = vpop.xlane.xlu0 %4327 }
0x1015   :  { %5874 = vpow2.f32 %v4331_v63  ;;  %v4330_v1 = vsub.f32 %v4324_v60, %v4328_v0 }
0x1017   :  { %v4333_v3 = vmul.f32 1.442695, %v4330_v1 }
0x1019   :  { %5876 = vpow2.f32 %v4333_v3 }
0x101f   :  { %v5875_v13 = vpop.eup %5874 }
0x1020   :  { %v4335_v4 = vsel %vm4322_vm1, %v5875_v13, 0.0 }
0x1021   :  { %4337 = vadd.xlane.f32.xlu1 %v4335_v4 }
0x1023   :  { %v5877_v5 = vpop.eup %5876 }
0x1024   :  { %v4336_v6 = vsel %vm4322_vm1, %v5877_v5, 0.0 }
0x1025   :  { %4339 = vadd.xlane.f32.xlu1 %v4336_v6 }
0x10ae   :  { %v4338_v8 = vpop.xlane.xlu1 %4337 }
0x10af   :  { %5878 = vlog2.f32 %v4338_v8 }
0x10b2   :  { %v4340_v7 = vpop.xlane.xlu1 %4339 }
0x10b3   :  { %5880 = vlog2.f32 %v4340_v7 }
0x10b9   :  { %v5879_v18 = vpop.eup %5878 }
0x10ba   :  { %v4342_v10 = vmul.f32 0.6931472, %v5879_v18 }
0x10bc   :  { %v4345_v11 = vsub.f32 %v4329_v62, %v4342_v10 }
0x10bd   :  { %v5881_v12 = vpop.eup %5880 }
0x10be   :  { %4347 = vst [vmem:[#allocation10] sm:$0xff] %v4345_v11  ;;  %v4344_v14 = vmul.f32 0.6931472, %v5881_v12 }
0x10c0   :  { %v4346_v15 = vsub.f32 %v4330_v1, %v4344_v14 }
0x10c2   :  { %4348 = vst [vmem:[#allocation10 + $0x8] sm:$0xff] %v4346_v15 }
0x10c3   :  { %6013 = shalt.err (!%p6010_p8)
}
0x10c4   :  { %s6014_s30 = scalar_lea.hbm %s6621_s5, 256 }
0x10c5   :  { %p6015_p9 = scmp.ne.s32.totalorder %s6621_s5, %s6014_s30  ;;  %p6018_p10 = scmp.lt.u32.totalorder %s6014_s30, %s6621_s5 }
0x10c7   :  { %p6020_p11 = pnand %p6018_p10, %p6015_p9 }
0x10c9   :  { %6023 = shalt.err (!%p6020_p11)
}
0x10ca   :  { %s6041_s19 = smov 128   ;;  %s6042_s20 = smov 8  }
0x10cb   :  { %4360 = dma.vmem_to_hbm [thread:$0]  %s4355_s15, 256, %s6621_s5, [#allocation4], %s6041_s19, %s6041_s19, %s6042_s20  }
0x10cc   :  { %6030 = dma.done.wait [#allocation4], 256  }
0x10cd   :  { %6031 = vsyncadd [#allocation4], 4294967040 }
0x10ce   :  { %4364 = vsyncpa [#allocation3], 1 }
0x10cf   :  { %4365 = vsyncpa [#allocation6], 1 }
0x10d0   :  { %4366 = vsyncpa [#allocation9], 1 }
0x10d1   :  { %4367 = vsyncpa [#allocation4], 1 }

</bundles_post_ra>
